<compile_context>
chip_gen: v7x
topology: tpu7x:2x2x1
jax: 0.10.0
libtpu: 0.0.40
codegen_flags: <defaults>
</compile_context>

<pallas_src>
import numpy as np
import jax
import jax.numpy as jnp
from jax.experimental import pallas as pl
from jax.experimental.pallas import tpu as pltpu

EPS = 1e-5  # PyTorch BatchNorm2d default eps; inference-mode BN (running stats)

# 3x3 tap order with the CENTRE tap first, so the (stride-subsampled) shortcut input
# is the leading `cin` lanes of the K-stacked conv1 operand (aligned, offset 0).
_TAPS = [(1, 1)] + [(di, dj) for di in range(3) for dj in range(3) if (di, dj) != (1, 1)]


# ------------------------------- Pallas kernel ------------------------------- #

def _make_block_kernel(*, bb, cin, cout, ho, wo, prebuilt_im2col, has_proj,
                       pad_front, compute_dtype):
    """Fused ResBasicBlock kernel for `bb` images (one grid step)."""
    m = bb * ho * wo
    pad_back = cout - cin - pad_front

    def kernel(x_ref, w1_ref, b1_ref, w2_ref, b2_ref, o_ref):
        # ---- conv1 (+ folded bn1) as ONE K-stacked MXU matmul, then relu1 ----
        if prebuilt_im2col:
            xcol = x_ref[...]                                       # (m, 9*cin) bf16
            res = xcol[:, :cin]                                     # centre tap == x[:, ::s, ::s, :]
        else:
            xp = x_ref[...]                                         # (bb, ho+2, wo+2, cin) bf16
            cols = [xp[:, di:di + ho, dj:dj + wo, :] for (di, dj) in _TAPS]
            xcol = jnp.concatenate(cols, axis=-1).reshape(m, 9 * cin)
            res = cols[0].reshape(m, cin)                           # centre window == x
        acc1 = jnp.dot(xcol, w1_ref[...], preferred_element_type=jnp.float32)
        y1 = jnp.maximum(acc1 + b1_ref[...], 0.0)                   # (m, cout) f32

        # ---- conv2 (+ folded bn2): in-register halo pad + ONE K-stacked matmul ----
        y1b = y1.reshape(bb, ho, wo, cout).astype(compute_dtype)
        zrow = jnp.zeros((bb, 1, wo, cout), compute_dtype)
        zcol = jnp.zeros((bb, ho + 2, 1, cout), compute_dtype)
        y1p = jnp.concatenate([zrow, y1b, zrow], axis=1)            # pad H
        y1p = jnp.concatenate([zcol, y1p, zcol], axis=2)            # pad W -> (bb, ho+2, wo+2, cout)
        cols2 = [y1p[:, di:di + ho, dj:dj + wo, :]
                 for di in range(3) for dj in range(3)]             # raster order = w2 K order
        xcol2 = jnp.concatenate(cols2, axis=-1).reshape(m, 9 * cout)
        out = jnp.dot(xcol2, w2_ref[...], preferred_element_type=jnp.float32)
        out = out + b2_ref[...]                                     # (m, cout) f32

        # ---- shortcut ('option A') + relu2 ----
        res_f = res.astype(jnp.float32)
        if has_proj:
            pieces = []
            if pad_front > 0:
                pieces.append(jnp.zeros((m, pad_front), jnp.float32))
            pieces.append(res_f)
            if pad_back > 0:
                pieces.append(jnp.zeros((m, pad_back), jnp.float32))
            res_f = jnp.concatenate(pieces, axis=-1)                # zero channel pad
        out = jnp.maximum(out + res_f, 0.0)

        o_ref[...] = out.reshape(bb, ho, wo, cout).astype(o_ref.dtype)

    return kernel


# --------------------------------- Wrapper ----------------------------------- #

def _nbytes(shape, dt):
    return int(np.prod(shape)) * np.dtype(dt).itemsize


def _pick_batch_block(n):
    """Images per grid step: big enough M, but keep >=2 grid steps when possible."""
    target = max(1, min(8, n // 2)) if n >= 2 else 1
    for bb in range(target, 0, -1):
        if n % bb == 0:
            return bb
    return 1


def _vmem_limit_bytes(est):
    """Generation-aware VMEM limit (v7x only has 64 MiB per TensorCore)."""
    cap = 64 << 20  # conservative default if the query fails
    try:
        info = pltpu.get_tpu_info()
        cap = int(getattr(info, "vmem_capacity_bytes", cap) or cap)
    except Exception:
        pass
    ceiling = (cap * 3) // 4          # leave headroom for compiler-internal scratch
    want = max(4 * est + (4 << 20), 16 << 20)
    return int(max(min(want, ceiling), 8 << 20))


def res_basic_block(x_nhwc, params, *, out_dtype=jnp.float32,
                    compute_dtype=jnp.bfloat16):
    """Forward pass of ResBasicBlock (eval-mode BN) on an NHWC input tensor."""
    n, h, w, cin = x_nhwc.shape
    stride = int(params['stride'])
    cout = params['conv1'].shape[-1]
    assert params['conv1'].shape == (3, 3, cin, cout)
    assert params['conv2'].shape == (3, 3, cout, cout)
    ho = (h - 1) // stride + 1
    wo = (w - 1) // stride + 1

    has_proj = (stride != 1) or (cin != cout)
    if has_proj:
        assert stride == 2, "option-A shortcut subsamples spatially by 2 (needs stride==2)"
        pad_front = cout // 4
        # TODO(synk): negative channel pad (planes - inplanes - planes//4 < 0) unsupported.
        assert cout - cin - pad_front >= 0
    else:
        pad_front = 0

    # Fold eval-mode BN scale into the conv weights (f32 math); keep shift as f32 bias.
    def fold(wconv, bn):
        scale = bn['gamma'] * jax.lax.rsqrt(bn['var'] + EPS)
        shift = bn['beta'] - bn['mean'] * scale
        return wconv.astype(jnp.float32) * scale, shift.astype(jnp.float32)

    w1f, b1 = fold(params['conv1'], params['bn1'])
    w2f, b2 = fold(params['conv2'], params['bn2'])
    # K-stacked weights: conv1 taps in centre-first order, conv2 taps in raster order.
    w1k = jnp.concatenate([w1f[di, dj] for (di, dj) in _TAPS], axis=0).astype(compute_dtype)
    w2k = w2f.reshape(9 * cout, cout).astype(compute_dtype)
    b1 = b1.reshape(1, cout)
    b2 = b2.reshape(1, cout)

    bb = _pick_batch_block(n)
    grid = (n // bb,)
    m = bb * ho * wo

    # Cast to bf16 BEFORE padding / im2col (halves wrapper-side HBM traffic).
    xp = jnp.pad(x_nhwc.astype(compute_dtype), ((0, 0), (1, 1), (1, 1), (0, 0)))
    if stride == 1:
        # Compact padded input; the K-stacked im2col is built in-kernel (no 9x HBM blowup).
        x_in = xp
        x_spec = pl.BlockSpec((bb, h + 2, w + 2, cin), lambda b: (b, 0, 0, 0))
        x_block_shape = (bb, h + 2, w + 2, cin)
        prebuilt = False
    else:
        # Downsample block: wrapper-side im2col handles the stride cleanly (only ~2.25x
        # the activation bytes since ho*wo = h*w/4).
        cols = [xp[:, di:di + (ho - 1) * stride + 1:stride,
                   dj:dj + (wo - 1) * stride + 1:stride, :] for (di, dj) in _TAPS]
        x_in = jnp.concatenate(cols, axis=-1).reshape(n * ho * wo, 9 * cin)
        assert (bb * ho * wo) % 8 == 0
        x_spec = pl.BlockSpec((bb * ho * wo, 9 * cin), lambda b: (b, 0))
        x_block_shape = (bb * ho * wo, 9 * cin)
        prebuilt = True

    kernel = _make_block_kernel(bb=bb, cin=cin, cout=cout, ho=ho, wo=wo,
                                prebuilt_im2col=prebuilt, has_proj=has_proj,
                                pad_front=pad_front, compute_dtype=compute_dtype)

    in_specs = [
        x_spec,
        pl.BlockSpec((9 * cin, cout), lambda b: (0, 0)),    # VMEM-resident weights
        pl.BlockSpec((1, cout), lambda b: (0, 0)),
        pl.BlockSpec((9 * cout, cout), lambda b: (0, 0)),
        pl.BlockSpec((1, cout), lambda b: (0, 0)),
    ]
    out_spec = pl.BlockSpec((bb, ho, wo, cout), lambda b: (b, 0, 0, 0))

    # VMEM budget: double-buffered per-step blocks + resident weights + live temporaries.
    est = (2 * _nbytes(x_block_shape, compute_dtype)
           + 2 * _nbytes((bb, ho, wo, cout), out_dtype)
           + _nbytes((9 * cin, cout), compute_dtype)
           + _nbytes((9 * cout, cout), compute_dtype)
           + 2 * _nbytes((1, cout), jnp.float32)
           + _nbytes((m, 9 * cin), compute_dtype)
           + _nbytes((m, 9 * cout), compute_dtype)
           + _nbytes((bb, ho + 2, wo + 2, cout), compute_dtype)
           + 3 * _nbytes((m, cout), jnp.float32))

    flops = int(2 * n * ho * wo * 9 * (cin * cout + cout * cout))
    bytes_accessed = int(_nbytes(x_in.shape, compute_dtype)
                         + _nbytes(w1k.shape, compute_dtype)
                         + _nbytes(w2k.shape, compute_dtype)
                         + _nbytes((n, ho, wo, cout), out_dtype))

    return pl.pallas_call(
        kernel,
        grid=grid,
        in_specs=in_specs,
        out_specs=out_spec,
        out_shape=jax.ShapeDtypeStruct((n, ho, wo, cout), out_dtype),
        compiler_params=pltpu.CompilerParams(
            dimension_semantics=("parallel",),          # batch steps independent (v7x: 2 TCs)
            vmem_limit_bytes=_vmem_limit_bytes(est)),
        cost_estimate=pl.CostEstimate(flops=flops, transcendentals=0,
                                      bytes_accessed=bytes_accessed),
    )(x_in, w1k, b1, w2k, b2)


# ------------------------- Plain-JAX reference (f32) ------------------------- #

def _bn_eval(x, bn):
    scale = bn['gamma'] / jnp.sqrt(bn['var'] + EPS)
    return x * scale + (bn['beta'] - bn['mean'] * scale)


def res_basic_block_reference(x_nhwc, params):
    x = x_nhwc.astype(jnp.float32)
    stride = params['stride']
    cin = x.shape[-1]
    cout = params['conv1'].shape[-1]
    dn = jax.lax.conv_dimension_numbers(x.shape, params['conv1'].shape,
                                        ('NHWC', 'HWIO', 'NHWC'))
    out = jax.lax.conv_general_dilated(x, params['conv1'], (stride, stride),
                                       ((1, 1), (1, 1)), dimension_numbers=dn)
    out = jnp.maximum(_bn_eval(out, params['bn1']), 0.0)
    out = jax.lax.conv_general_dilated(out, params['conv2'], (1, 1),
                                       ((1, 1), (1, 1)), dimension_numbers=dn)
    out = _bn_eval(out, params['bn2'])
    if stride != 1 or cin != cout:
        sc = x[:, ::2, ::2, :]
        pf = cout // 4
        sc = jnp.pad(sc, ((0, 0), (0, 0), (0, 0), (pf, cout - cin - pf)))
    else:
        sc = x
    return jnp.maximum(out + sc, 0.0)


# ------------------------------- Parameters ---------------------------------- #

def make_block_params(key, inplanes, planes, stride):
    k1, k2, k3, k4 = jax.random.split(key, 4)

    def conv3x3_init(k, cin_, cout_):
        fan_in = 9 * cin_
        return jax.random.normal(k, (3, 3, cin_, cout_), jnp.float32) * (2.0 / fan_in) ** 0.5

    def bn_init(k, c):
        kg, kb, km, kv = jax.random.split(k, 4)
        return dict(
            gamma=jax.random.uniform(kg, (c,), jnp.float32, minval=0.5, maxval=1.5),
            beta=0.1 * jax.random.normal(kb, (c,), jnp.float32),
            mean=0.1 * jax.random.normal(km, (c,), jnp.float32),
            var=jax.random.uniform(kv, (c,), jnp.float32, minval=0.5, maxval=1.5))

    return dict(stride=stride,
                conv1=conv3x3_init(k1, inplanes, planes), bn1=bn_init(k2, planes),
                conv2=conv3x3_init(k3, planes, planes), bn2=bn_init(k4, planes))


# ----------------------------------- Main ------------------------------------ #

if __name__ == "__main__":
    key = jax.random.PRNGKey(0)
    kx, kb1, kb2 = jax.random.split(key, 3)

    # Small NHWC input consistent with the CIFAR ResNet-110 block: batch=2, C=16, 16x16.
    x = jax.random.normal(kx, (2, 16, 16, 16), jnp.float32)

    # Block A: identity shortcut (16 -> 16, stride 1).
    params_a = make_block_params(kb1, 16, 16, stride=1)
    # Block B: downsample, 'option A' zero-pad shortcut (16 -> 32, stride 2).
    params_b = make_block_params(kb2, 16, 32, stride=2)

    y_a = res_basic_block(x, params_a, out_dtype=jnp.bfloat16)   # bf16 inter-block act
    y_b = res_basic_block(y_a, params_b, out_dtype=jnp.float32)
    y_b = jax.block_until_ready(y_b)

    assert y_a.shape == (2, 16, 16, 16), y_a.shape
    assert y_b.shape == (2, 8, 8, 32), y_b.shape

    # Validate against a plain-JAX f32 reference (loose tol: bf16 matmul operands).
    r_a = res_basic_block_reference(x, params_a)
    r_b = res_basic_block_reference(r_a, params_b)
    err = float(jnp.max(jnp.abs(y_b.astype(jnp.float32) - r_b)))
    assert np.isfinite(err) and err < 0.3, f"max abs err {err}"
    print("KERNEL_OK")
</pallas_src>

<mosaic_0001>
module attributes {stable_mosaic.version = 11 : i64} {
  func.func @kernel(%arg0: i32, %arg1: memref<1x18x18x16xbf16, #tpu.memory_space<vmem>>, %arg2: memref<144x16xbf16, #tpu.memory_space<vmem>>, %arg3: memref<1x16xf32, #tpu.memory_space<vmem>>, %arg4: memref<144x16xbf16, #tpu.memory_space<vmem>>, %arg5: memref<1x16xf32, #tpu.memory_space<vmem>>, %arg6: memref<1x16x16x16xbf16, #tpu.memory_space<vmem>>) attributes {dimension_semantics = [#tpu.dimension_semantics<parallel>], iteration_bounds = array<i64: 2>, scalar_prefetch = 0 : i64, scratch_operands = 0 : i64, tpu.core_type = #tpu.core_type<tc>, window_params = [{transform_indices = @transform_0, window_bounds = array<i64: 1, 18, 18, 16>}, {pipeline_mode = #tpu.pipeline_mode<synchronous>, transform_indices = @transform_1, window_bounds = array<i64: 144, 16>}, {pipeline_mode = #tpu.pipeline_mode<synchronous>, transform_indices = @transform_2, window_bounds = array<i64: 1, 16>}, {pipeline_mode = #tpu.pipeline_mode<synchronous>, transform_indices = @transform_3, window_bounds = array<i64: 144, 16>}, {pipeline_mode = #tpu.pipeline_mode<synchronous>, transform_indices = @transform_4, window_bounds = array<i64: 1, 16>}, {transform_indices = @transform_5, window_bounds = array<i64: 1, 16, 16, 16>}]} {
    %c0 = arith.constant 0 : index
    %c0_0 = arith.constant 0 : index
    %c0_1 = arith.constant 0 : index
    %c0_2 = arith.constant 0 : index
    %0 = vector.load %arg1[%c0, %c0_0, %c0_1, %c0_2] : memref<1x18x18x16xbf16, #tpu.memory_space<vmem>>, vector<1x18x18x16xbf16>
    %1 = vector.extract_strided_slice %0 {offsets = [0, 1, 1, 0], sizes = [1, 16, 16, 16], strides = [1, 1, 1, 1]} : vector<1x18x18x16xbf16> to vector<1x16x16x16xbf16>
    %2 = vector.extract_strided_slice %0 {offsets = [0, 0, 0, 0], sizes = [1, 16, 16, 16], strides = [1, 1, 1, 1]} : vector<1x18x18x16xbf16> to vector<1x16x16x16xbf16>
    %3 = vector.extract_strided_slice %0 {offsets = [0, 0, 1, 0], sizes = [1, 16, 16, 16], strides = [1, 1, 1, 1]} : vector<1x18x18x16xbf16> to vector<1x16x16x16xbf16>
    %4 = vector.extract_strided_slice %0 {offsets = [0, 0, 2, 0], sizes = [1, 16, 16, 16], strides = [1, 1, 1, 1]} : vector<1x18x18x16xbf16> to vector<1x16x16x16xbf16>
    %5 = vector.extract_strided_slice %0 {offsets = [0, 1, 0, 0], sizes = [1, 16, 16, 16], strides = [1, 1, 1, 1]} : vector<1x18x18x16xbf16> to vector<1x16x16x16xbf16>
    %6 = vector.extract_strided_slice %0 {offsets = [0, 1, 2, 0], sizes = [1, 16, 16, 16], strides = [1, 1, 1, 1]} : vector<1x18x18x16xbf16> to vector<1x16x16x16xbf16>
    %7 = vector.extract_strided_slice %0 {offsets = [0, 2, 0, 0], sizes = [1, 16, 16, 16], strides = [1, 1, 1, 1]} : vector<1x18x18x16xbf16> to vector<1x16x16x16xbf16>
    %8 = vector.extract_strided_slice %0 {offsets = [0, 2, 1, 0], sizes = [1, 16, 16, 16], strides = [1, 1, 1, 1]} : vector<1x18x18x16xbf16> to vector<1x16x16x16xbf16>
    %9 = vector.extract_strided_slice %0 {offsets = [0, 2, 2, 0], sizes = [1, 16, 16, 16], strides = [1, 1, 1, 1]} : vector<1x18x18x16xbf16> to vector<1x16x16x16xbf16>
    %10 = tpu.concatenate %1, %2, %3, %4, %5, %6, %7, %8, %9 in 3 : vector<1x16x16x16xbf16>, vector<1x16x16x16xbf16>, vector<1x16x16x16xbf16>, vector<1x16x16x16xbf16>, vector<1x16x16x16xbf16>, vector<1x16x16x16xbf16>, vector<1x16x16x16xbf16>, vector<1x16x16x16xbf16>, vector<1x16x16x16xbf16> -> vector<1x16x16x144xbf16>
    %11 = vector.shape_cast %10 : vector<1x16x16x144xbf16> to vector<256x144xbf16>
    %12 = vector.shape_cast %1 : vector<1x16x16x16xbf16> to vector<256x16xbf16>
    %c0_3 = arith.constant 0 : index
    %c0_4 = arith.constant 0 : index
    %13 = vector.load %arg2[%c0_3, %c0_4] : memref<144x16xbf16, #tpu.memory_space<vmem>>, vector<144x16xbf16>
    %cst = arith.constant dense<0.000000e+00> : vector<256x16xf32>
    %14 = tpu.matmul %11, %13, %cst {dimension_numbers = #tpu.dot_dimension_numbers<[1], [0], [0], [1], [0, 0, 1, 1], [], []>} : vector<256x144xbf16>, vector<144x16xbf16>, vector<256x16xf32> -> vector<256x16xf32>
    %c0_5 = arith.constant 0 : index
    %c0_6 = arith.constant 0 : index
    %15 = vector.load %arg3[%c0_5, %c0_6] : memref<1x16xf32, #tpu.memory_space<vmem>>, vector<1x16xf32>
    %16 = vector.broadcast %15 : vector<1x16xf32> to vector<256x16xf32>
    %17 = arith.addf %14, %16 : vector<256x16xf32>
    %cst_7 = arith.constant 0.000000e+00 : f32
    %18 = vector.broadcast %cst_7 : f32 to vector<256x16xf32>
    %19 = arith.maximumf %17, %18 : vector<256x16xf32>
    %20 = vector.shape_cast %19 : vector<256x16xf32> to vector<1x16x16x16xf32>
    %21 = arith.truncf %20 : vector<1x16x16x16xf32> to vector<1x16x16x16xbf16>
    %cst_8 = arith.constant 0.000000e+00 : bf16
    %22 = vector.broadcast %cst_8 : bf16 to vector<1x1x16x16xbf16>
    %cst_9 = arith.constant 0.000000e+00 : bf16
    %23 = vector.broadcast %cst_9 : bf16 to vector<1x18x1x16xbf16>
    %24 = tpu.concatenate %22, %21, %22 in 1 : vector<1x1x16x16xbf16>, vector<1x16x16x16xbf16>, vector<1x1x16x16xbf16> -> vector<1x18x16x16xbf16>
    %25 = tpu.concatenate %23, %24, %23 in 2 : vector<1x18x1x16xbf16>, vector<1x18x16x16xbf16>, vector<1x18x1x16xbf16> -> vector<1x18x18x16xbf16>
    %26 = vector.extract_strided_slice %25 {offsets = [0, 0, 0, 0], sizes = [1, 16, 16, 16], strides = [1, 1, 1, 1]} : vector<1x18x18x16xbf16> to vector<1x16x16x16xbf16>
    %27 = vector.extract_strided_slice %25 {offsets = [0, 0, 1, 0], sizes = [1, 16, 16, 16], strides = [1, 1, 1, 1]} : vector<1x18x18x16xbf16> to vector<1x16x16x16xbf16>
    %28 = vector.extract_strided_slice %25 {offsets = [0, 0, 2, 0], sizes = [1, 16, 16, 16], strides = [1, 1, 1, 1]} : vector<1x18x18x16xbf16> to vector<1x16x16x16xbf16>
    %29 = vector.extract_strided_slice %25 {offsets = [0, 1, 0, 0], sizes = [1, 16, 16, 16], strides = [1, 1, 1, 1]} : vector<1x18x18x16xbf16> to vector<1x16x16x16xbf16>
    %30 = vector.extract_strided_slice %25 {offsets = [0, 1, 1, 0], sizes = [1, 16, 16, 16], strides = [1, 1, 1, 1]} : vector<1x18x18x16xbf16> to vector<1x16x16x16xbf16>
    %31 = vector.extract_strided_slice %25 {offsets = [0, 1, 2, 0], sizes = [1, 16, 16, 16], strides = [1, 1, 1, 1]} : vector<1x18x18x16xbf16> to vector<1x16x16x16xbf16>
    %32 = vector.extract_strided_slice %25 {offsets = [0, 2, 0, 0], sizes = [1, 16, 16, 16], strides = [1, 1, 1, 1]} : vector<1x18x18x16xbf16> to vector<1x16x16x16xbf16>
    %33 = vector.extract_strided_slice %25 {offsets = [0, 2, 1, 0], sizes = [1, 16, 16, 16], strides = [1, 1, 1, 1]} : vector<1x18x18x16xbf16> to vector<1x16x16x16xbf16>
    %34 = vector.extract_strided_slice %25 {offsets = [0, 2, 2, 0], sizes = [1, 16, 16, 16], strides = [1, 1, 1, 1]} : vector<1x18x18x16xbf16> to vector<1x16x16x16xbf16>
    %35 = tpu.concatenate %26, %27, %28, %29, %30, %31, %32, %33, %34 in 3 : vector<1x16x16x16xbf16>, vector<1x16x16x16xbf16>, vector<1x16x16x16xbf16>, vector<1x16x16x16xbf16>, vector<1x16x16x16xbf16>, vector<1x16x16x16xbf16>, vector<1x16x16x16xbf16>, vector<1x16x16x16xbf16>, vector<1x16x16x16xbf16> -> vector<1x16x16x144xbf16>
    %36 = vector.shape_cast %35 : vector<1x16x16x144xbf16> to vector<256x144xbf16>
    %c0_10 = arith.constant 0 : index
    %c0_11 = arith.constant 0 : index
    %37 = vector.load %arg4[%c0_10, %c0_11] : memref<144x16xbf16, #tpu.memory_space<vmem>>, vector<144x16xbf16>
    %cst_12 = arith.constant dense<0.000000e+00> : vector<256x16xf32>
    %38 = tpu.matmul %36, %37, %cst_12 {dimension_numbers = #tpu.dot_dimension_numbers<[1], [0], [0], [1], [0, 0, 1, 1], [], []>} : vector<256x144xbf16>, vector<144x16xbf16>, vector<256x16xf32> -> vector<256x16xf32>
    %c0_13 = arith.constant 0 : index
    %c0_14 = arith.constant 0 : index
    %39 = vector.load %arg5[%c0_13, %c0_14] : memref<1x16xf32, #tpu.memory_space<vmem>>, vector<1x16xf32>
    %40 = vector.broadcast %39 : vector<1x16xf32> to vector<256x16xf32>
    %41 = arith.addf %38, %40 : vector<256x16xf32>
    %42 = arith.extf %12 : vector<256x16xbf16> to vector<256x16xf32>
    %43 = arith.addf %41, %42 : vector<256x16xf32>
    %cst_15 = arith.constant 0.000000e+00 : f32
    %44 = vector.broadcast %cst_15 : f32 to vector<256x16xf32>
    %45 = arith.maximumf %43, %44 : vector<256x16xf32>
    %46 = vector.shape_cast %45 : vector<256x16xf32> to vector<1x16x16x16xf32>
    %47 = arith.truncf %46 : vector<1x16x16x16xf32> to vector<1x16x16x16xbf16>
    %c0_16 = arith.constant 0 : index
    %c0_17 = arith.constant 0 : index
    %c0_18 = arith.constant 0 : index
    %c0_19 = arith.constant 0 : index
    %48 = vector.load %arg6[%c0_16, %c0_17, %c0_18, %c0_19] : memref<1x16x16x16xbf16, #tpu.memory_space<vmem>>, vector<1x16x16x16xbf16>
    tpu.vector_store %arg6[%c0_16, %c0_17, %c0_18, %c0_19], %47 {strides = array<i32>} : memref<1x16x16x16xbf16, #tpu.memory_space<vmem>>, vector<1x16x16x16xbf16>,
    return
  }
  func.func @transform_0(%arg0: i32) -> (i32, i32, i32, i32) {
    %c0_i32 = arith.constant 0 : i32
    %c0_i32_0 = arith.constant 0 : i32
    %c0_i32_1 = arith.constant 0 : i32
    %c0_i32_2 = arith.constant 0 : i32
    return %arg0, %c0_i32, %c0_i32_0, %c0_i32_1 : i32, i32, i32, i32
  }
  func.func @transform_1(%arg0: i32) -> (i32, i32) {
    %c0_i32 = arith.constant 0 : i32
    %c0_i32_0 = arith.constant 0 : i32
    %c0_i32_1 = arith.constant 0 : i32
    return %c0_i32, %c0_i32_0 : i32, i32
  }
  func.func @transform_2(%arg0: i32) -> (i32, i32) {
    %c0_i32 = arith.constant 0 : i32
    %c0_i32_0 = arith.constant 0 : i32
    %c0_i32_1 = arith.constant 0 : i32
    return %c0_i32, %c0_i32_0 : i32, i32
  }
  func.func @transform_3(%arg0: i32) -> (i32, i32) {
    %c0_i32 = arith.constant 0 : i32
    %c0_i32_0 = arith.constant 0 : i32
    %c0_i32_1 = arith.constant 0 : i32
    return %c0_i32, %c0_i32_0 : i32, i32
  }
  func.func @transform_4(%arg0: i32) -> (i32, i32) {
    %c0_i32 = arith.constant 0 : i32
    %c0_i32_0 = arith.constant 0 : i32
    %c0_i32_1 = arith.constant 0 : i32
    return %c0_i32, %c0_i32_0 : i32, i32
  }
  func.func @transform_5(%arg0: i32) -> (i32, i32, i32, i32) {
    %c0_i32 = arith.constant 0 : i32
    %c0_i32_0 = arith.constant 0 : i32
    %c0_i32_1 = arith.constant 0 : i32
    %c0_i32_2 = arith.constant 0 : i32
    return %arg0, %c0_i32, %c0_i32_0, %c0_i32_1 : i32, i32, i32, i32
  }
}

</mosaic_0001>

<bundles_post_ra>
// kernel: tpu_custom_call.1
= control target key start
LH: loop header
LB: loop body
LE: loop exit
PB: predicated region body
PF: predicated region fallthrough
CT: control target
= control target key end

     0   :  { %10 = vsyncpa [#allocation3], 0  ;;  %s6947_s0 = inlined_call_operand.vmem [shape: bf16[2,18,18,16], index: 0, kind: input, shape index: {}]   ;;  %s6948_s1 = inlined_call_operand.vmem [shape: bf16[144,16], index: 1, kind: input, shape index: {}]   ;;  %s6949_s2 = inlined_call_operand.vmem [shape: f32[1,16], index: 2, kind: input, shape index: {}]   ;;  %s6950_s3 = inlined_call_operand.vmem [shape: bf16[144,16], index: 3, kind: input, shape index: {}]   ;;  %s6951_s4 = inlined_call_operand.vmem [shape: f32[1,16], index: 4, kind: input, shape index: {}]   ;;  %s6952_s5 = inlined_call_operand.hbm [shape: bf16[2,16,16,16], index: 5, kind: output, shape index: {}]  }
   0x1   :  { %12 = vsyncpa [#allocation3 + $0x1], 0  ;;  %s4724_s18 = smov 0   ;;  %s4726_s19 = smov 0  }
   0x2   :  { %s4728_s20 = smov 0   ;;  %s4730_s21 = smov 0  }
   0x3 LB: > { %s4745_s22 = sadd.s32 4294967295, %s4682_s21   ;;  %s4302_s23 = sadd.s32 4294967294, %s4682_s21   ;;  %s4682_s21 = sphi %s4730_s21, %s6962_s21   ;;  %s4678_s20 = sphi %s4728_s20, %s6961_s20   ;;  %s4674_s19 = sphi %s4726_s19, %s6960_s19   ;;  %s4670_s18 = sphi %s4724_s18, %s6959_s18  }
   0x4   : > { %s4749_s24 = sadd.s32 1, %s4682_s21   ;;  %s135_s25 = sadd.s32 1, %s4678_s20 }
   0x5   : > { %s132_s26 = ssub.s32 %s4682_s21, %s4749_s24  ;;  %p145_p0 = scmp.ne.s32.totalorder %s4678_s20, %s4674_s19 }
   0x6   : > { %p133_p1 = scmp.eq.s32.totalorder %s132_s26, 0  ;;  %p146_p2 = scmp.eq.s32.totalorder %s4745_s22, 1 }
   0x7   : > { %p151_p3 = scmp.ne.s32.totalorder %s4674_s19, %s4670_s18  ;;  %p152_p4 = scmp.eq.s32.totalorder %s4302_s23, 1 }
   0x8   : > { %s4760_s27 = scalar_select %p133_p1, %s4678_s20, %s135_s25  }
   0x9   : > { %p4762_p5 = por %p146_p2, %p145_p0  ;;  %p4766_p6 = por %p152_p4, %p151_p3 }
   0xa   : > { %p4305_p7 = scmp.ge.s32.totalorder %s4682_s21, 1  ;;  %p190_p8 = scmp.lt.s32.totalorder %s4682_s21, 3 }
   0xc   : > { %p191_p9 = pnand %p4305_p7, %p190_p8 }
   0xd   : > { %p218_p10 = scmp.lt.s32.totalorder (!%p191_p9), %s4745_s22, 1  ;;  %v4527_v0 = vld [vmem:[%s6948_s1] sm:$0xff] (!%p191_p9)   ;;  %v4684_v1 = vmov (!%p191_p9), 0   ;;  %v4528_v2 = vld [vmem:[%s6948_s1 + $0x8] sm:$0xff] (!%p191_p9)   ;;  %v4529_v3 = vld [vmem:[%s6948_s1 + $0x10] sm:$0xff] (!%p191_p9)   ;;  %s4685_s16 = smov (!%p191_p9), 32  }
   0xe   : > { %194 = sbr.rel (%p191_p9) target bundleno = 1197 (0x4ad), region = 40  ;;  %2528 = vmatprep.subr.bf16.mxu0 (!%p191_p9), %v4684_v1  ;;  %3808 = vmatprep.subr.bf16.mxu1 (!%p191_p9), %v4684_v1  ;;  %v4530_v12 = vld [vmem:[%s6948_s1 + $0x18] sm:$0xff] (!%p191_p9)   ;;  %s4686_s25 = smov (!%p191_p9), 16   ;;  %v4531_v24 = vld [vmem:[%s6948_s1 + $0x20] sm:$0xff] (!%p191_p9)   ;;  %v4533_v32 = vld [vmem:[%s6948_s1 + $0x28] sm:$0xff] (!%p191_p9)   ;;  %vm1159_vm1 = vcmask (!%p191_p9), 130048  }
   0xf   : > { %2529 = vmatpush1.bf16.msra.mxu0 (!%p191_p9), %v4527_v0  ;;  %s4687_s6 = smov (!%p191_p9), 48   ;;  %vm654_vm0 = vsmask.f32 (!%p191_p9), 7424  ;;  %v4534_v40 = vld [vmem:[%s6948_s1 + $0x30] sm:$0xff] (!%p191_p9)   ;;  %v4536_v47 = vld [vmem:[%s6948_s1 + $0x38] sm:$0xff] (!%p191_p9)   ;;  %s4690_s17 = smov (!%p191_p9), 80  }
  0x10   : > { %2530 = vmatprep.subr.bf16.mxu0 (!%p191_p9), %v4684_v1  ;;  %v4537_v51 = vld [vmem:[%s6948_s1 + $0x40] sm:$0xff] (!%p191_p9)   ;;  %s4691_s30 = smov (!%p191_p9), 112   ;;  %vm1224_vm2 = vcmask (!%p191_p9), 261120   ;;  %vm1289_vm3 = vcmask (!%p191_p9), 392192   ;;  %vm1354_vm4 = vcmask (!%p191_p9), 523264   ;;  %vm1419_vm5 = vcmask (!%p191_p9), 654336  }
  0x11   : > { %vm1484_vm6 = vcmask (!%p191_p9), 785408   ;;  %vm1549_vm7 = vcmask (!%p191_p9), 916480   ;;  %vm2890_vm8 = vcmask (!%p191_p9), 1040384   ;;  %vm2891_vm9 = vsmask.f32 (!%p191_p9), 256  ;;  %s215_s11 = sand.u32 (!%p191_p9), 1, %s4674_s19  }
  0x12   : > { %vm5770_vm10 = vmand (!%p191_p9), %vm2890_vm8, %vm2891_vm9  ;;  %vm3183_vm11 = vcmask (!%p191_p9), 1046528   ;;  %vm1982_vm12 = vsmask.f32 (!%p191_p9), 3328  ;;  %vm1983_vm13 = vsmask.f32 (!%p191_p9), 7440  ;;  %s4306_s12 = sshll.u32 (!%p191_p9), %s215_s11, 7 }
  0x13   : > { %2531 = vmatpush1.bf16.msra.mxu0 (!%p191_p9), %v4528_v2  ;;  %vm6582_vm14 = vmor (!%p191_p9), %vm1982_vm12, %vm1983_vm13  ;;  %vm4193_vm15 = vcmask (!%p191_p9), 125952   ;;  %s6618_s14 = scalar_lea.vmem (!%p191_p9), [#allocation2], %s4306_s12  ;;  %s4692_s23 = smov (!%p191_p9), [#allocation2]  }
  0x14   : > { %2532 = vmatprep.subr.bf16.mxu0 (!%p191_p9), %v4684_v1  ;;  %s4624_s26 = sshll.u32 (!%p191_p9), %s4692_s23, 4  ;;  %s4625_s26 = int_to_ptr.vmem [resolvable:$false] %s4624_s26 }
  0x15   : > { %s219_s7 = scalar_select %p218_p10, %s4745_s22, 1 }
  0x16   : > { %s4626_s8 = scalar_lea.vmem %s4625_s26, 4096 }
  0x17   : > { %s4466_s10 = smul.u32 216, %s219_s7  ;;  %2533 = vmatpush1.bf16.msra.mxu0 %v4529_v3  ;;  %s4688_s7 = smov 64  }
  0x18   : > { %2534 = vmatprep.subr.bf16.mxu0 %v4684_v1 }
  0x19   : > { %s4786_s13 = scalar_lea.vmem %s6947_s0, %s4466_s10  ;;  %s4689_s10 = smov 96  }
  0x1a   : > { %v4515_v4 = vld [vmem:[%s4786_s13] sm:$0xff]   ;;  %v4516_v5 = vld [vmem:[%s4786_s13 + $0x8] ss:$0 sps:$4 sm:$0x11]   ;;  %v227_v7 = vld [vmem:[%s4786_s13 + $0xc] sm:$0xf] }
  0x1b   : > { %590 = vrot.lane.b32.xlu0 %v4515_v4, %s4685_s16  ;;  %v412_v6 = vshrl.u32 %v4515_v4, 16  ;;  %v228_v8 = vld [vmem:[%s4786_s13 + $0x10] sm:$0xf]  ;;  %v230_v10 = vld [vmem:[%s4786_s13 + $0x18] sm:$0xf]  ;;  %v415_v14 = vshll.u32 %v4515_v4, 16  ;;  %2535 = vmatpush1.bf16.msra.mxu0 %v4530_v12 }
  0x1c   : > { %v4797_v9 = vcombine.low %v227_v7, %v228_v8  ;;  %v231_v11 = vld [vmem:[%s4786_s13 + $0x1c] sm:$0xf]  ;;  %v229_v18 = vld [vmem:[%s4786_s13 + $0x14] sm:$0x1]  ;;  %v662_v19 = vshrl.u32 %v4516_v5, 16  ;;  %v658_v23 = vshll.u32 %v4516_v5, 16  ;;  %2536 = vmatprep.subr.bf16.mxu0 %v4684_v1 }
  0x1d   : > { %v414_v13 = vrot.slane %v412_v6, 7  ;;  %v4804_v15 = vcombine.low %v230_v10, %v231_v11  ;;  %v655_v25 = vrot.slane %v415_v14, 1  ;;  %v4821_v27 = vcombine.low %v229_v18, %v229_v18  ;;  %v232_v29 = vld [vmem:[%s4786_s13 + $0x20] sm:$0x1]  ;;  %v233_v59 = vld [vmem:[%s4786_s13 + $0x24] sm:$0xf] }
  0x1e   : > { %v419_v16 = vshrl.u32 %v4797_v9, 16  ;;  %v422_v17 = vshll.u32 %v4797_v9, 16  ;;  %v660_v31 = vrot.slane %v658_v23, 1  ;;  %v4836_v36 = vcombine.low %v232_v29, %v232_v29  ;;  %v234_v60 = vld [vmem:[%s4786_s13 + $0x28] sm:$0xf] }
  0x1f   : > { %592 = vrot.lane.b32.xlu0 %v4516_v5, %s4685_s16  ;;  %525 = vrot.lane.b32.xlu1 %v414_v13, %s4686_s25  ;;  %v426_v20 = vshrl.u32 %v4804_v15, 16  ;;  %v429_v22 = vshll.u32 %v4804_v15, 16  ;;  %v656_v33 = vor.u32 %v655_v25, %v412_v6  ;;  %v667_v35 = vshll.u32 %v4821_v27, 16  ;;  %v235_v3 = vld [vmem:[%s4786_s13 + $0x2c] sm:$0x1] }
  0x20   : > { %v4813_v21 = vrot.slane %v419_v16, 7  ;;  %2537 = vmatpush1.bf16.msra.mxu0 %v4531_v24  ;;  %v664_v34 = vrot.slane %v422_v17, 1  ;;  %v417_v37 = vor.u32 %v415_v14, %v414_v13  ;;  %v676_v39 = vshll.u32 %v4836_v36, 16  ;;  %v236_v5 = vld [vmem:[%s4786_s13 + $0x30] sm:$0xf] }
  0x21   : > { %v4819_v26 = vrot.slane %v426_v20, 7  ;;  %2538 = vmatprep.subr.bf16.mxu0 %v4684_v1  ;;  %v673_v38 = vrot.slane %v429_v22, 1  ;;  %v661_v41 = vsel %vm654_vm0, %v656_v33, %v660_v31  ;;  %v669_v43 = vrot.slane %v667_v35, 1  ;;  %v237_v6 = vld [vmem:[%s4786_s13 + $0x34] sm:$0xf] }
  0x22   : > { %v424_v28 = vor.u32 %v422_v17, %v4813_v21  ;;  %v665_v42 = vor.u32 %v664_v34, %v419_v16  ;;  %v671_v44 = vshrl.u32 %v4821_v27, 16  ;;  %v678_v46 = vrot.slane %v676_v39, 1  ;;  %v240_v23 = vld [vmem:[%s4786_s13 + $0x40] sm:$0xf] }
  0x23   : > { %801 = vrot.lane.b32.xlu0 %v662_v19, %s4687_s6  ;;  %v4829_v30 = vor.u32 %v429_v22, %v4819_v26  ;;  %v674_v45 = vor.u32 %v673_v38, %v426_v20  ;;  %v680_v50 = vshrl.u32 %v4836_v36, 16  ;;  %v4879_v61 = vcombine.low %v233_v59, %v234_v60  ;;  %v238_v20 = vld [vmem:[%s4786_s13 + $0x38] sm:$0x1]  ;;  %v239_v22 = vld [vmem:[%s4786_s13 + $0x3c] sm:$0xf] }
  0x24   : > { %870 = vrot.lane.b32.xlu1 %v424_v28, %s4688_s7  ;;  %2539 = vmatpush1.bf16.msra.mxu0 %v4533_v32  ;;  %v670_v48 = vsel %vm654_vm0, %v665_v42, %v669_v43  ;;  %v4896_v4 = vcombine.low %v235_v3, %v235_v3  ;;  %v4910_v7 = vcombine.low %v236_v5, %v237_v6 }
  0x25   : > { %2540 = vmatprep.subr.bf16.mxu0 %v4684_v1  ;;  %v679_v49 = vsel %vm654_vm0, %v674_v45, %v678_v46  ;;  %v1632_v54 = vshll.u32 %v680_v50, 16  ;;  %v433_v62 = vshrl.u32 %v4879_v61, 16  ;;  %v436_v0 = vshll.u32 %v4879_v61, 16 }
  0x26   : > { %v1625_v52 = vshrl.u32 %v679_v49, 16  ;;  %v1627_v53 = vshll.u32 %v679_v49, 16  ;;  %v685_v10 = vshll.u32 %v4896_v4, 16  ;;  %v440_v11 = vshrl.u32 %v4910_v7, 16 }
  0x27   : > { %872 = vrot.lane.b32.xlu0 %v4813_v21, %s4688_s7  ;;  %v1634_v56 = vrot.slane %v1632_v54, 1  ;;  %v435_v63 = vrot.slane %v433_v62, 7  ;;  %v682_v8 = vrot.slane %v436_v0, 1  ;;  %v443_v16 = vshll.u32 %v4910_v7, 16 }
  0x28   : > { %1019 = vrot.lane.b32.xlu1 %v4829_v30, %s4689_s10  ;;  %2541 = vmatpush1.bf16.msra.mxu0 %v4534_v40  ;;  %v1629_v55 = vrot.slane %v1627_v53, 1  ;;  %v687_v13 = vrot.slane %v685_v10, 1  ;;  %v442_v14 = vrot.slane %v440_v11, 7  ;;  %v4925_v18 = vshrl.u32 %v4896_v4, 16  ;;  %v242_v40 = vld [vmem:[%s4786_s13 + $0x48] sm:$0xf] }
  0x29   : > { %2542 = vmatprep.subr.bf16.mxu0 %v4684_v1  ;;  %v438_v2 = vor.u32 %v436_v0, %v435_v63  ;;  %v683_v12 = vor.u32 %v682_v8, %v433_v62  ;;  %v4946_v24 = vcombine.low %v239_v22, %v240_v23  ;;  %v691_v25 = vrot.slane %v443_v16, 1 }
  0x2a   : > { %v1630_v57 = vor.u32 %v1629_v55, %v1625_v52  ;;  %v445_v19 = vor.u32 %v443_v16, %v442_v14  ;;  %v1654_v22 = vshll.u32 %v4925_v18, 16 }
  0x2b   : > { %523 = vrot.lane.b32.xlu0 %v417_v37, %s4686_s25  ;;  %v4921_v17 = vsel %vm654_vm0, %v683_v12, %v687_v13  ;;  %v692_v29 = vor.u32 %v691_v25, %v440_v11  ;;  %v450_v32 = vshll.u32 %v4946_v24, 16  ;;  %v241_v37 = vld [vmem:[%s4786_s13 + $0x44] sm:$0x1] }
  0x2c   : > { %799 = vrot.lane.b32.xlu1 %v661_v41, %s4687_s6  ;;  %2543 = vmatpush1.bf16.msra.mxu0 %v4536_v47  ;;  %v1635_v58 = vsel %vm654_vm0, %v1630_v57, %v1634_v56  ;;  %v4979_v38 = vcombine.low %v241_v37, %v241_v37  ;;  %v243_v41 = vld [vmem:[%s4786_s13 + $0x4c] sm:$0xf]  ;;  %v1649_v6 = vshll.u32 %v4921_v17, 16  ;;  %v1647_v12 = vshrl.u32 %v4921_v17, 16 }
  0x2d   : > { %2544 = vmatprep.subr.bf16.mxu0 %v4684_v1  ;;  %4354 = vmatprep.mubr.msk.bf16.mxu0 %vm1159_vm1, %v1635_v58  ;;  %v4991_v42 = vcombine.low %v242_v40, %v243_v41  ;;  %v700_v43 = vrot.slane %v450_v32, 1  ;;  %v1656_v41 = vrot.slane %v1654_v22, 1 }
  0x2e   : > { %v703_v46 = vshll.u32 %v4979_v38, 16  ;;  %v5014_v57 = vshrl.u32 %v4979_v38, 16 }
  0x2f   : > { %945 = vrot.lane.b32.xlu0 %v671_v44, %s4690_s17  ;;  %v454_v47 = vshrl.u32 %v4991_v42, 16  ;;  %v457_v53 = vshll.u32 %v4991_v42, 16 }
  0x30   : > { %943 = vrot.lane.b32.xlu1 %v670_v48, %s4690_s17  ;;  %2545 = vmatpush1.bf16.msra.mxu0 %v4537_v51 }
  0x31   : > { %v5005_v52 = vrot.slane %v454_v47, 7 }
  0x33   : > { %1021 = vrot.lane.b32.xlu0 %v4819_v26, %s4689_s10  ;;  %v5019_v58 = vor.u32 %v457_v53, %v5005_v52 }
  0x34   : > { %1086 = vrot.lane.b32.xlu1 %v4804_v15, %s4691_s30 }
  0x37   : > { %1088 = vrot.lane.b32.xlu0 %v4836_v36, %s4691_s30 }
  0x38   : > { %527 = vrot.lane.b32.xlu1 %v424_v28, %s4686_s25  ;;  %v447_v28 = vshrl.u32 %v4946_v24, 16 }
  0x3a   : > { %v4957_v31 = vrot.slane %v447_v28, 7 }
  0x3b   : > { %529 = vrot.lane.b32.xlu0 %v4813_v21, %s4686_s25  ;;  %v4934_v21 = vcombine.low %v238_v20, %v238_v20 }
  0x3c   : > { %594 = vrot.lane.b32.xlu1 %v4797_v9, %s4685_s16  ;;  %v4970_v35 = vor.u32 %v450_v32, %v4957_v31  ;;  %v246_v32 = vld [vmem:[%s4786_s13 + $0x58] sm:$0xf] }
  0x3d   : > { %v4965_v34 = vshrl.u32 %v4934_v21, 16 }
  0x3f   : > { %596 = vrot.lane.b32.xlu0 %v4821_v27, %s4685_s16 }
  0x40   : > { %803 = vrot.lane.b32.xlu1 %v670_v48, %s4687_s6 }
  0x43   : > { %805 = vrot.lane.b32.xlu0 %v671_v44, %s4687_s6 }
  0x44   : > { %874 = vrot.lane.b32.xlu1 %v4829_v30, %s4688_s7 }
  0x47   : > { %876 = vrot.lane.b32.xlu0 %v4819_v26, %s4688_s7 }
  0x48   : > { %947 = vrot.lane.b32.xlu1 %v679_v49, %s4690_s17 }
  0x4b   : > { %949 = vrot.lane.b32.xlu0 %v680_v50, %s4690_s17 }
  0x4c   : > { %1023 = vrot.lane.b32.xlu1 %v438_v2, %s4689_s10 }
  0x4f   : > { %1025 = vrot.lane.b32.xlu0 %v435_v63, %s4689_s10 }
  0x50   : > { %1090 = vrot.lane.b32.xlu1 %v4879_v61, %s4691_s30 }
  0x53   : > { %1092 = vrot.lane.b32.xlu0 %v4896_v4, %s4691_s30 }
  0x54   : > { %531 = vrot.lane.b32.xlu1 %v4829_v30, %s4686_s25 }
  0x57   : > { %533 = vrot.lane.b32.xlu0 %v4819_v26, %s4686_s25  ;;  %v694_v26 = vshll.u32 %v4934_v21, 16 }
  0x58   : > { %598 = vrot.lane.b32.xlu1 %v4804_v15, %s4685_s16 }
  0x59   : > { %v696_v30 = vrot.slane %v694_v26, 1 }
  0x5b   : > { %600 = vrot.lane.b32.xlu0 %v4836_v36, %s4685_s16  ;;  %v4961_v33 = vsel %vm654_vm0, %v692_v29, %v696_v30  ;;  %v245_v30 = vld [vmem:[%s4786_s13 + $0x54] sm:$0xf] }
  0x5c   : > { %807 = vrot.lane.b32.xlu1 %v679_v49, %s4687_s6  ;;  %v701_v49 = vor.u32 %v700_v43, %v447_v28 }
  0x5f   : > { %809 = vrot.lane.b32.xlu0 %v680_v50, %s4687_s6  ;;  %v705_v50 = vrot.slane %v703_v46, 1 }
  0x60   : > { %878 = vrot.lane.b32.xlu1 %v438_v2, %s4688_s7 }
  0x61   : > { %v5009_v55 = vsel %vm654_vm0, %v701_v49, %v705_v50 }
  0x63   : > { %880 = vrot.lane.b32.xlu0 %v435_v63, %s4688_s7 }
  0x64   : > { %951 = vrot.lane.b32.xlu1 %v4921_v17, %s4690_s17 }
  0x67   : > { %953 = vrot.lane.b32.xlu0 %v4925_v18, %s4690_s17 }
  0x68   : > { %1027 = vrot.lane.b32.xlu1 %v445_v19, %s4689_s10 }
  0x6b   : > { %1029 = vrot.lane.b32.xlu0 %v442_v14, %s4689_s10 }
  0x6c   : > { %1094 = vrot.lane.b32.xlu1 %v4910_v7, %s4691_s30 }
  0x6f   : > { %1096 = vrot.lane.b32.xlu0 %v4934_v21, %s4691_s30 }
  0x70   : > { %535 = vrot.lane.b32.xlu1 %v438_v2, %s4686_s25  ;;  %v244_v2 = vld [vmem:[%s4786_s13 + $0x50] sm:$0x1] }
  0x71   : > { %v5037_v11 = vcombine.low %v244_v2, %v244_v2 }
  0x73   : > { %537 = vrot.lane.b32.xlu0 %v435_v63, %s4686_s25  ;;  %v712_v50 = vshll.u32 %v5037_v11, 16 }
  0x74   : > { %602 = vrot.lane.b32.xlu1 %v4879_v61, %s4685_s16 }
  0x77   : > { %604 = vrot.lane.b32.xlu0 %v4896_v4, %s4685_s16 }
  0x78   : > { %811 = vrot.lane.b32.xlu1 %v4921_v17, %s4687_s6 }
  0x7b   : > { %813 = vrot.lane.b32.xlu0 %v4925_v18, %s4687_s6 }
  0x7c   : > { %882 = vrot.lane.b32.xlu1 %v445_v19, %s4688_s7 }
  0x7f   : > { %884 = vrot.lane.b32.xlu0 %v442_v14, %s4688_s7 }
  0x80   : > { %955 = vrot.lane.b32.xlu1 %v4961_v33, %s4690_s17 }
  0x83   : > { %957 = vrot.lane.b32.xlu0 %v4965_v34, %s4690_s17 }
  0x84   : > { %1031 = vrot.lane.b32.xlu1 %v4970_v35, %s4689_s10 }
  0x87   : > { %1033 = vrot.lane.b32.xlu0 %v4957_v31, %s4689_s10 }
  0x88   : > { %1098 = vrot.lane.b32.xlu1 %v4946_v24, %s4691_s30 }
  0x8b   : > { %1100 = vrot.lane.b32.xlu0 %v4979_v38, %s4691_s30 }
  0x8c   : > { %539 = vrot.lane.b32.xlu1 %v445_v19, %s4686_s25 }
  0x8d   : > { %v591_v39 = vpop.permute.xlu0 %590 }
  0x8f   : > { %541 = vrot.lane.b32.xlu0 %v442_v14, %s4686_s25  ;;  %v1651_v14 = vrot.slane %v1649_v6, 1 }
  0x90   : > { %606 = vrot.lane.b32.xlu1 %v4910_v7, %s4685_s16 }
  0x91   : > { %v593_v44 = vpop.permute.xlu0 %592  ;;  %v526_v45 = vpop.permute.xlu1 %525  ;;  %v1652_v40 = vor.u32 %v1651_v14, %v1647_v12 }
  0x93   : > { %608 = vrot.lane.b32.xlu0 %v4934_v21, %s4685_s16 }
  0x94   : > { %815 = vrot.lane.b32.xlu1 %v4961_v33, %s4687_s6 }
  0x95   : > { %v802_v48 = vpop.permute.xlu0 %801 }
  0x96   : > { %v871_v51 = vpop.permute.xlu1 %870 }
  0x97   : > { %817 = vrot.lane.b32.xlu0 %v4965_v34, %s4687_s6 }
  0x98   : > { %886 = vrot.lane.b32.xlu1 %v4970_v35, %s4688_s7 }
  0x99   : > { %v873_v54 = vpop.permute.xlu0 %872 }
  0x9a   : > { %v1020_v56 = vpop.permute.xlu1 %1019 }
  0x9b   : > { %888 = vrot.lane.b32.xlu0 %v4957_v31, %s4688_s7 }
  0x9c   : > { %959 = vrot.lane.b32.xlu1 %v5009_v55, %s4690_s17 }
  0x9d   : > { %v524_v59 = vpop.permute.xlu0 %523 }
  0x9e   : > { %v800_v60 = vpop.permute.xlu1 %799  ;;  %v1161_v62 = vsel %vm1159_vm1, %v4797_v9, %v524_v59  ;;  %v1163_v9 = vsel %vm1159_vm1, %v4821_v27, %v526_v45  ;;  %v709_v45 = vrot.slane %v457_v53, 1 }
  0x9f   : > { %v1226_v63 = vsel %vm1224_vm2, %v1161_v62, %v591_v39  ;;  %961 = vrot.lane.b32.xlu0 %v5014_v57, %s4690_s17  ;;  %v1228_v13 = vsel %vm1224_vm2, %v1163_v9, %v593_v44 }
  0xa0   : > { %1035 = vrot.lane.b32.xlu1 %v5019_v58, %s4689_s10  ;;  %v1291_v0 = vsel %vm1289_vm3, %v1226_v63, %v800_v60  ;;  %v1293_v16 = vsel %vm1289_vm3, %v1228_v13, %v802_v48  ;;  %v710_v59 = vor.u32 %v709_v45, %v454_v47  ;;  %v714_v60 = vrot.slane %v712_v50, 1 }
  0xa1   : > { %v1356_v3 = vsel %vm1354_vm4, %v1291_v0, %v871_v51  ;;  %v946_v5 = vpop.permute.xlu0 %945  ;;  %v1358_v23 = vsel %vm1354_vm4, %v1293_v16, %v873_v54  ;;  %v1657_v54 = vsel %vm654_vm0, %v1652_v40, %v1656_v41 }
  0xa2   : > { %v944_v8 = vpop.permute.xlu1 %943  ;;  %v1423_v17 = vsel %vm1419_vm5, %v1358_v23, %v946_v5  ;;  %v5084_v47 = vsel %vm654_vm0, %v710_v59, %v714_v60  ;;  %v5089_v5 = vshrl.u32 %v5037_v11, 16 }
  0xa3   : > { %v1421_v10 = vsel %vm1419_vm5, %v1356_v3, %v944_v8  ;;  %1037 = vrot.lane.b32.xlu0 %v5005_v52, %s4689_s10 }
  0xa4   : > { %1102 = vrot.lane.b32.xlu1 %v4991_v42, %s4691_s30  ;;  %v1486_v20 = vsel %vm1484_vm6, %v1421_v10, %v1020_v56  ;;  %v247_v10 = vld [vmem:[%s4786_s13 + $0x5c] sm:$0x1] }
  0xa5   : > { %v1022_v27 = vpop.permute.xlu0 %1021  ;;  %v5110_v22 = vcombine.low %v247_v10, %v247_v10 }
  0xa6   : > { %v1087_v19 = vpop.permute.xlu1 %1086  ;;  %v1488_v28 = vsel %vm1484_vm6, %v1423_v17, %v1022_v27  ;;  %v1671_v27 = vshll.u32 %v4961_v33, 16 }
  0xa7   : > { %v1551_v25 = vsel %vm1549_vm7, %v1486_v20, %v1087_v19  ;;  %1104 = vrot.lane.b32.xlu0 %v5037_v11, %s4691_s30  ;;  %v721_v60 = vshll.u32 %v5110_v22, 16 }
  0xa8   : > { %v1616_v26 = vshll.u32 %v1551_v25, 16  ;;  %543 = vrot.lane.b32.xlu1 %v4970_v35, %s4686_s25  ;;  %v1614_v43 = vshrl.u32 %v1551_v25, 16  ;;  %v5061_v35 = vcombine.low %v245_v30, %v246_v32  ;;  %v1676_v32 = vshll.u32 %v4965_v34, 16 }
  0xa9   : > { %v1089_v29 = vpop.permute.xlu0 %1088 }
  0xaa   : > { %v1618_v37 = vrot.slane %v1616_v26, 1  ;;  %v528_v18 = vpop.permute.xlu1 %527  ;;  %v1553_v39 = vsel %vm1549_vm7, %v1488_v28, %v1089_v29  ;;  %v464_v0 = vshll.u32 %v5061_v35, 16  ;;  %v1673_v26 = vrot.slane %v1671_v27, 1 }
  0xab   : > { %v1620_v44 = vshll.u32 %v1553_v39, 16  ;;  %545 = vrot.lane.b32.xlu0 %v4957_v31, %s4686_s25  ;;  %v461_v31 = vshrl.u32 %v5061_v35, 16  ;;  %v1165_v12 = vsel %vm1159_vm1, %v4804_v15, %v528_v18  ;;  %v1669_v15 = vshrl.u32 %v4961_v33, 16 }
  0xac   : > { %610 = vrot.lane.b32.xlu1 %v4946_v24, %s4685_s16  ;;  %v1619_v46 = vor.u32 %v1618_v37, %v1614_v43  ;;  %v248_v43 = vld [vmem:[%s4786_s13 + $0x60] sm:$0xf] }
  0xad   : > { %v1622_v48 = vrot.slane %v1620_v44, 1  ;;  %v530_v49 = vpop.permute.xlu0 %529  ;;  %v5080_v63 = vrot.slane %v461_v31, 7  ;;  %v249_v44 = vld [vmem:[%s4786_s13 + $0x64] sm:$0xf] }
  0xae   : > { %v595_v51 = vpop.permute.xlu1 %594  ;;  %v1167_v16 = vsel %vm1159_vm1, %v4836_v36, %v530_v49  ;;  %v1678_v49 = vrot.slane %v1676_v32, 1 }
  0xaf   : > { %612 = vrot.lane.b32.xlu0 %v4979_v38, %s4685_s16  ;;  %v1623_v56 = vsel %vm654_vm0, %v1619_v46, %v1622_v48  ;;  %v5094_v6 = vor.u32 %v464_v0, %v5080_v63  ;;  %v1230_v14 = vsel %vm1224_vm2, %v1165_v12, %v595_v51  ;;  %v1674_v48 = vor.u32 %v1673_v26, %v1669_v15  ;;  %v250_v15 = vld [vmem:[%s4786_s13 + $0x68] sm:$0x1] }
  0xb0   : > { %819 = vrot.lane.b32.xlu1 %v5009_v55, %s4687_s6  ;;  %2561 = vmatmul.mubr.bf16.vlgmr.msra.gmra.mrb[0].mxu0 %v1623_v56  ;;  %v5185_v32 = vcombine.low %v250_v15, %v250_v15 }
  0xb1   : > { %v597_v53 = vpop.permute.xlu0 %596  ;;  %4355 = vmatprep.mubr.msk.bf16.mxu0 %vm1159_vm1, %v1657_v54  ;;  %v718_v54 = vrot.slane %v464_v0, 1 }
  0xb2   : > { %v804_v62 = vpop.permute.xlu1 %803  ;;  %v1232_v25 = vsel %vm1224_vm2, %v1167_v16, %v597_v53  ;;  %v5164_v16 = vshrl.u32 %v5110_v22, 16 }
  0xb3   : > { %821 = vrot.lane.b32.xlu0 %v5014_v57, %s4687_s6  ;;  %v1295_v20 = vsel %vm1289_vm3, %v1230_v14, %v804_v62 }
  0xb4   : > { %890 = vrot.lane.b32.xlu1 %v5019_v58, %s4688_s7 }
  0xb5   : > { %v806_v2 = vpop.permute.xlu0 %805 }
  0xb6   : > { %v875_v3 = vpop.permute.xlu1 %874  ;;  %v1297_v28 = vsel %vm1289_vm3, %v1232_v25, %v806_v2  ;;  %v1679_v2 = vsel %vm654_vm0, %v1674_v48, %v1678_v49 }
  0xb7   : > { %892 = vrot.lane.b32.xlu0 %v5005_v52, %s4688_s7  ;;  %v1360_v23 = vsel %vm1354_vm4, %v1295_v20, %v875_v3 }
  0xb8   : > { %963 = vrot.lane.b32.xlu1 %v5084_v47, %s4690_s17 }
  0xb9   : > { %v877_v9 = vpop.permute.xlu0 %876 }
  0xba   : > { %v948_v8 = vpop.permute.xlu1 %947  ;;  %v1362_v37 = vsel %vm1354_vm4, %v1297_v28, %v877_v9  ;;  %v719_v9 = vor.u32 %v718_v54, %v461_v31 }
  0xbb   : > { %965 = vrot.lane.b32.xlu0 %v5089_v5, %s4690_s17  ;;  %v1425_v36 = vsel %vm1419_vm5, %v1360_v23, %v948_v8  ;;  %v723_v8 = vrot.slane %v721_v60, 1 }
  0xbc   : > { %1039 = vrot.lane.b32.xlu1 %v5094_v6, %s4689_s10 }
  0xbd   : > { %v950_v13 = vpop.permute.xlu0 %949  ;;  %v5159_v31 = vsel %vm654_vm0, %v719_v9, %v723_v8  ;;  %v730_v8 = vshll.u32 %v5185_v32, 16 }
  0xbe   : > { %v1024_v19 = vpop.permute.xlu1 %1023  ;;  %v1427_v33 = vsel %vm1419_vm5, %v1362_v37, %v950_v13 }
  0xbf   : > { %1041 = vrot.lane.b32.xlu0 %v5080_v63, %s4689_s10  ;;  %v1490_v29 = vsel %vm1484_vm6, %v1425_v36, %v1024_v19 }
  0xc0   : > { %1106 = vrot.lane.b32.xlu1 %v5061_v35, %s4691_s30 }
  0xc1   : > { %v1026_v17 = vpop.permute.xlu0 %1025 }
  0xc2   : > { %v1091_v30 = vpop.permute.xlu1 %1090  ;;  %v1492_v40 = vsel %vm1484_vm6, %v1427_v33, %v1026_v17  ;;  %v1693_v17 = vshll.u32 %v5009_v55, 16 }
  0xc3   : > { %v1555_v18 = vsel %vm1549_vm7, %v1490_v29, %v1091_v30  ;;  %1108 = vrot.lane.b32.xlu0 %v5110_v22, %s4691_s30 }
  0xc4   : > { %v1638_v39 = vshll.u32 %v1555_v18, 16  ;;  %547 = vrot.lane.b32.xlu1 %v5019_v58, %s4686_s25  ;;  %v1636_v50 = vshrl.u32 %v1555_v18, 16  ;;  %v5136_v58 = vcombine.low %v248_v43, %v249_v44  ;;  %v1698_v44 = vshll.u32 %v5014_v57, 16 }
  0xc5   : > { %v1093_v41 = vpop.permute.xlu0 %1092 }
  0xc6   : > { %v1640_v45 = vrot.slane %v1638_v39, 1  ;;  %v532_v34 = vpop.permute.xlu1 %531  ;;  %v1557_v46 = vsel %vm1549_vm7, %v1492_v40, %v1093_v41  ;;  %v471_v13 = vshll.u32 %v5136_v58, 16  ;;  %v1695_v39 = vrot.slane %v1693_v17, 1 }
  0xc7   : > { %v1642_v51 = vshll.u32 %v1557_v46, 16  ;;  %549 = vrot.lane.b32.xlu0 %v5005_v52, %s4686_s25  ;;  %v468_v52 = vshrl.u32 %v5136_v58, 16  ;;  %v1169_v25 = vsel %vm1159_vm1, %v4879_v61, %v532_v34  ;;  %v1691_v61 = vshrl.u32 %v5009_v55, 16 }
  0xc8   : > { %614 = vrot.lane.b32.xlu1 %v4991_v42, %s4685_s16  ;;  %v1641_v56 = vor.u32 %v1640_v45, %v1636_v50  ;;  %v251_v50 = vld [vmem:[%s4786_s13 + $0x6c] sm:$0xf] }
  0xc9   : > { %v1644_v53 = vrot.slane %v1642_v51, 1  ;;  %v534_v59 = vpop.permute.xlu0 %533  ;;  %v5155_v12 = vrot.slane %v468_v52, 7  ;;  %v252_v51 = vld [vmem:[%s4786_s13 + $0x70] sm:$0xf] }
  0xca   : > { %v599_v62 = vpop.permute.xlu1 %598  ;;  %v1171_v28 = vsel %vm1159_vm1, %v4896_v4, %v534_v59  ;;  %v1700_v59 = vrot.slane %v1698_v44, 1 }
  0xcb   : > { %616 = vrot.lane.b32.xlu0 %v5037_v11, %s4685_s16  ;;  %v1645_v3 = vsel %vm654_vm0, %v1641_v56, %v1644_v53  ;;  %v5169_v19 = vor.u32 %v471_v13, %v5155_v12  ;;  %v1234_v26 = vsel %vm1224_vm2, %v1169_v25, %v599_v62  ;;  %v1696_v53 = vor.u32 %v1695_v39, %v1691_v61  ;;  %v253_v61 = vld [vmem:[%s4786_s13 + $0x74] sm:$0x1] }
  0xcc   : > { %823 = vrot.lane.b32.xlu1 %v5084_v47, %s4687_s6  ;;  %2569 = vmatmul.mubr.bf16.gmra.mrb[4].mxu0 %v1645_v3  ;;  %v5260_v44 = vcombine.low %v253_v61, %v253_v61 }
  0xcd   : > { %v601_v0 = vpop.permute.xlu0 %600  ;;  %4356 = vmatprep.mubr.msk.bf16.mxu0 %vm1159_vm1, %v1679_v2  ;;  %v727_v2 = vrot.slane %v471_v13, 1 }
  0xce   : > { %v808_v10 = vpop.permute.xlu1 %807  ;;  %v1236_v18 = vsel %vm1224_vm2, %v1171_v28, %v601_v0  ;;  %v5239_v28 = vshrl.u32 %v5185_v32, 16 }
  0xcf   : > { %825 = vrot.lane.b32.xlu0 %v5089_v5, %s4687_s6  ;;  %v1299_v30 = vsel %vm1289_vm3, %v1234_v26, %v808_v10 }
  0xd0   : > { %894 = vrot.lane.b32.xlu1 %v5094_v6, %s4688_s7 }
  0xd1   : > { %v810_v27 = vpop.permute.xlu0 %809 }
  0xd2   : > { %v879_v14 = vpop.permute.xlu1 %878  ;;  %v1301_v40 = vsel %vm1289_vm3, %v1236_v18, %v810_v27  ;;  %v1701_v27 = vsel %vm654_vm0, %v1696_v53, %v1700_v59 }
  0xd3   : > { %896 = vrot.lane.b32.xlu0 %v5080_v63, %s4688_s7  ;;  %v1364_v37 = vsel %vm1354_vm4, %v1299_v30, %v879_v14 }
  0xd4   : > { %967 = vrot.lane.b32.xlu1 %v5159_v31, %s4690_s17 }
  0xd5   : > { %v881_v20 = vpop.permute.xlu0 %880 }
  0xd6   : > { %v952_v23 = vpop.permute.xlu1 %951  ;;  %v1366_v45 = vsel %vm1354_vm4, %v1301_v40, %v881_v20  ;;  %v728_v20 = vor.u32 %v727_v2, %v468_v52 }
  0xd7   : > { %969 = vrot.lane.b32.xlu0 %v5164_v16, %s4690_s17  ;;  %v1429_v4 = vsel %vm1419_vm5, %v1364_v37, %v952_v23  ;;  %v732_v23 = vrot.slane %v730_v8, 1 }
  0xd8   : > { %1043 = vrot.lane.b32.xlu1 %v5169_v19, %s4689_s10 }
  0xd9   : > { %v954_v36 = vpop.permute.xlu0 %953  ;;  %v5234_v52 = vsel %vm654_vm0, %v728_v20, %v732_v23  ;;  %v739_v23 = vshll.u32 %v5260_v44, 16 }
  0xda   : > { %v1028_v29 = vpop.permute.xlu1 %1027  ;;  %v1431_v55 = vsel %vm1419_vm5, %v1366_v45, %v954_v36 }
  0xdb   : > { %1045 = vrot.lane.b32.xlu0 %v5155_v12, %s4689_s10  ;;  %v1494_v41 = vsel %vm1484_vm6, %v1429_v4, %v1028_v29 }
  0xdc   : > { %1110 = vrot.lane.b32.xlu1 %v5136_v58, %s4691_s30 }
  0xdd   : > { %v1030_v33 = vpop.permute.xlu0 %1029 }
  0xde   : > { %v1095_v43 = vpop.permute.xlu1 %1094  ;;  %v1496_v48 = vsel %vm1484_vm6, %v1431_v55, %v1030_v33  ;;  %v1715_v33 = vshll.u32 %v5084_v47, 16 }
  0xdf   : > { %v1559_v34 = vsel %vm1549_vm7, %v1494_v41, %v1095_v43  ;;  %1112 = vrot.lane.b32.xlu0 %v5185_v32, %s4691_s30 }
  0xe0   : > { %v1660_v46 = vshll.u32 %v1559_v34, 16  ;;  %551 = vrot.lane.b32.xlu1 %v5094_v6, %s4686_s25  ;;  %v1658_v60 = vshrl.u32 %v1559_v34, 16  ;;  %v5211_v6 = vcombine.low %v251_v50, %v252_v51  ;;  %v1720_v51 = vshll.u32 %v5089_v5, 16 }
  0xe1   : > { %v1097_v49 = vpop.permute.xlu0 %1096 }
  0xe2   : > { %v1662_v54 = vrot.slane %v1660_v46, 1  ;;  %v536_v57 = vpop.permute.xlu1 %535  ;;  %v1561_v56 = vsel %vm1549_vm7, %v1496_v48, %v1097_v49  ;;  %v478_v36 = vshll.u32 %v5211_v6, 16  ;;  %v1717_v46 = vrot.slane %v1715_v33, 1 }
  0xe3   : > { %v1664_v62 = vshll.u32 %v1561_v56, 16  ;;  %553 = vrot.lane.b32.xlu0 %v5080_v63, %s4686_s25  ;;  %v475_v63 = vshrl.u32 %v5211_v6, 16  ;;  %v1173_v18 = vsel %vm1159_vm1, %v4910_v7, %v536_v57  ;;  %v1713_v7 = vshrl.u32 %v5084_v47, 16 }
  0xe4   : > { %618 = vrot.lane.b32.xlu1 %v5061_v35, %s4685_s16  ;;  %v1663_v3 = vor.u32 %v1662_v54, %v1658_v60  ;;  %v254_v60 = vld [vmem:[%s4786_s13 + $0x78] sm:$0xf]  ;;  %v736_v20 = vrot.slane %v478_v36, 1 }
  0xe5   : > { %v1666_v0 = vrot.slane %v1664_v62, 1  ;;  %v538_v9 = vpop.permute.xlu0 %537  ;;  %v5230_v25 = vrot.slane %v475_v63, 7  ;;  %v255_v62 = vld [vmem:[%s4786_s13 + $0x7c] sm:$0xf] }
  0xe6   : > { %v603_v10 = vpop.permute.xlu1 %602  ;;  %v1175_v40 = vsel %vm1159_vm1, %v4934_v21, %v538_v9  ;;  %v1722_v9 = vrot.slane %v1720_v51, 1 }
  0xe7   : > { %620 = vrot.lane.b32.xlu0 %v5110_v22, %s4685_s16  ;;  %v1667_v14 = vsel %vm654_vm0, %v1663_v3, %v1666_v0  ;;  %v5244_v29 = vor.u32 %v478_v36, %v5230_v25  ;;  %v1238_v39 = vsel %vm1224_vm2, %v1173_v18, %v603_v10  ;;  %v1718_v0 = vor.u32 %v1717_v46, %v1713_v7  ;;  %v256_v7 = vld [vmem:[%s4786_s13 + $0x80] sm:$0x1] }
  0xe8   : > { %827 = vrot.lane.b32.xlu1 %v5159_v31, %s4687_s6  ;;  %2577 = vmatmul.mubr.bf16.gmra.mrb[8].mxu0 %v1667_v14  ;;  %v737_v36 = vor.u32 %v736_v20, %v475_v63  ;;  %v5335_v51 = vcombine.low %v256_v7, %v256_v7 }
  0xe9   : > { %v605_v13 = vpop.permute.xlu0 %604  ;;  %4357 = vmatprep.mubr.msk.bf16.mxu0 %vm1159_vm1, %v1701_v27 }
  0xea   : > { %v812_v15 = vpop.permute.xlu1 %811  ;;  %v1240_v34 = vsel %vm1224_vm2, %v1175_v40, %v605_v13  ;;  %v5314_v40 = vshrl.u32 %v5260_v44, 16 }
  0xeb   : > { %829 = vrot.lane.b32.xlu0 %v5164_v16, %s4687_s6  ;;  %v1303_v43 = vsel %vm1289_vm3, %v1238_v39, %v812_v15 }
  0xec   : > { %898 = vrot.lane.b32.xlu1 %v5169_v19, %s4688_s7 }
  0xed   : > { %v814_v17 = vpop.permute.xlu0 %813 }
  0xee   : > { %v883_v26 = vpop.permute.xlu1 %882  ;;  %v1305_v48 = vsel %vm1289_vm3, %v1240_v34, %v814_v17  ;;  %v1723_v17 = vsel %vm654_vm0, %v1718_v0, %v1722_v9 }
  0xef   : > { %900 = vrot.lane.b32.xlu0 %v5155_v12, %s4688_s7  ;;  %v1368_v45 = vsel %vm1354_vm4, %v1303_v43, %v883_v26 }
  0xf0   : > { %971 = vrot.lane.b32.xlu1 %v5234_v52, %s4690_s17 }
  0xf1   : > { %v885_v30 = vpop.permute.xlu0 %884 }
  0xf2   : > { %v956_v37 = vpop.permute.xlu1 %955  ;;  %v1370_v54 = vsel %vm1354_vm4, %v1305_v48, %v885_v30 }
  0xf3   : > { %973 = vrot.lane.b32.xlu0 %v5239_v28, %s4690_s17  ;;  %v1433_v21 = vsel %vm1419_vm5, %v1368_v45, %v956_v37  ;;  %v741_v37 = vrot.slane %v739_v23, 1 }
  0xf4   : > { %1047 = vrot.lane.b32.xlu1 %v5244_v29, %s4689_s10 }
  0xf5   : > { %v958_v4 = vpop.permute.xlu0 %957  ;;  %v5309_v63 = vsel %vm654_vm0, %v737_v36, %v741_v37  ;;  %v748_v37 = vshll.u32 %v5335_v51, 16 }
  0xf6   : > { %v1032_v41 = vpop.permute.xlu1 %1031  ;;  %v1435_v47 = vsel %vm1419_vm5, %v1370_v54, %v958_v4 }
  0xf7   : > { %1049 = vrot.lane.b32.xlu0 %v5230_v25, %s4689_s10  ;;  %v1498_v49 = vsel %vm1484_vm6, %v1433_v21, %v1032_v41 }
  0xf8   : > { %1114 = vrot.lane.b32.xlu1 %v5211_v6, %s4691_s30 }
  0xf9   : > { %v1034_v55 = vpop.permute.xlu0 %1033 }
  0xfa   : > { %v1099_v50 = vpop.permute.xlu1 %1098  ;;  %v1500_v53 = vsel %vm1484_vm6, %v1435_v47, %v1034_v55  ;;  %v1737_v55 = vshll.u32 %v5159_v31, 16 }
  0xfb   : > { %v1563_v57 = vsel %vm1549_vm7, %v1498_v49, %v1099_v50  ;;  %1116 = vrot.lane.b32.xlu0 %v5260_v44, %s4691_s30 }
  0xfc   : > { %v1682_v56 = vshll.u32 %v1563_v57, 16  ;;  %555 = vrot.lane.b32.xlu1 %v5169_v19, %s4686_s25  ;;  %v1680_v8 = vshrl.u32 %v1563_v57, 16  ;;  %v5286_v19 = vcombine.low %v254_v60, %v255_v62  ;;  %v1742_v62 = vshll.u32 %v5164_v16, 16 }
  0xfd   : > { %v1101_v59 = vpop.permute.xlu0 %1100 }
  0xfe   : > { %v1684_v2 = vrot.slane %v1682_v56, 1  ;;  %v540_v5 = vpop.permute.xlu1 %539  ;;  %v1565_v3 = vsel %vm1549_vm7, %v1500_v53, %v1101_v59  ;;  %v485_v4 = vshll.u32 %v5286_v19, 16  ;;  %v1739_v56 = vrot.slane %v1737_v55, 1 }
  0xff   : > { %v1686_v10 = vshll.u32 %v1565_v3, 16  ;;  %557 = vrot.lane.b32.xlu0 %v5155_v12, %s4686_s25  ;;  %v482_v12 = vshrl.u32 %v5286_v19, 16  ;;  %v1177_v34 = vsel %vm1159_vm1, %v4946_v24, %v540_v5  ;;  %v1735_v24 = vshrl.u32 %v5159_v31, 16 }
 0x100   : > { %622 = vrot.lane.b32.xlu1 %v5136_v58, %s4685_s16  ;;  %v1685_v27 = vor.u32 %v1684_v2, %v1680_v8  ;;  %v257_v8 = vld [vmem:[%s4786_s13 + $0x84] sm:$0xf]  ;;  %v1744_v20 = vrot.slane %v1742_v62, 1  ;;  %v745_v36 = vrot.slane %v485_v4, 1 }
 0x101   : > { %v1688_v14 = vrot.slane %v1686_v10, 1  ;;  %v542_v13 = vpop.permute.xlu0 %541  ;;  %v5305_v18 = vrot.slane %v482_v12, 7  ;;  %v258_v10 = vld [vmem:[%s4786_s13 + $0x88] sm:$0xf] }
 0x102   : > { %v607_v15 = vpop.permute.xlu1 %606  ;;  %v1179_v48 = vsel %vm1159_vm1, %v4979_v38, %v542_v13  ;;  %v1740_v13 = vor.u32 %v1739_v56, %v1735_v24  ;;  %v259_v24 = vld [vmem:[%s4786_s13 + $0x8c] sm:$0x1] }
 0x103   : > { %624 = vrot.lane.b32.xlu0 %v5185_v32, %s4685_s16  ;;  %v1689_v26 = vsel %vm654_vm0, %v1685_v27, %v1688_v14  ;;  %v5319_v41 = vor.u32 %v485_v4, %v5305_v18  ;;  %v1242_v46 = vsel %vm1224_vm2, %v1177_v34, %v607_v15  ;;  %v746_v4 = vor.u32 %v745_v36, %v482_v12 }
 0x104   : > { %831 = vrot.lane.b32.xlu1 %v5234_v52, %s4687_s6  ;;  %2585 = vmatmul.mubr.bf16.gmra.mrb[12].mxu0 %v1689_v26  ;;  %v5410_v62 = vcombine.low %v259_v24, %v259_v24 }
 0x105   : > { %v609_v30 = vpop.permute.xlu0 %608  ;;  %4358 = vmatprep.mubr.msk.bf16.mxu0 %vm1159_vm1, %v1723_v17 }
 0x106   : > { %v816_v61 = vpop.permute.xlu1 %815  ;;  %v1244_v57 = vsel %vm1224_vm2, %v1179_v48, %v609_v30  ;;  %v5389_v48 = vshrl.u32 %v5335_v51, 16 }
 0x107   : > { %833 = vrot.lane.b32.xlu0 %v5239_v28, %s4687_s6  ;;  %v1307_v50 = vsel %vm1289_vm3, %v1242_v46, %v816_v61 }
 0x108   : > { %902 = vrot.lane.b32.xlu1 %v5244_v29, %s4688_s7 }
 0x109   : > { %v818_v33 = vpop.permute.xlu0 %817 }
 0x10a   : > { %v887_v39 = vpop.permute.xlu1 %886  ;;  %v1309_v53 = vsel %vm1289_vm3, %v1244_v57, %v818_v33  ;;  %v1745_v33 = vsel %vm654_vm0, %v1740_v13, %v1744_v20 }
 0x10b   : > { %904 = vrot.lane.b32.xlu0 %v5230_v25, %s4688_s7  ;;  %v1372_v54 = vsel %vm1354_vm4, %v1307_v50, %v887_v39 }
 0x10c   : > { %975 = vrot.lane.b32.xlu1 %v5309_v63, %s4690_s17 }
 0x10d   : > { %v889_v43 = vpop.permute.xlu0 %888 }
 0x10e   : > { %v960_v45 = vpop.permute.xlu1 %959  ;;  %v1374_v2 = vsel %vm1354_vm4, %v1309_v53, %v889_v43 }
 0x10f   : > { %977 = vrot.lane.b32.xlu0 %v5314_v40, %s4690_s17  ;;  %v1437_v38 = vsel %vm1419_vm5, %v1372_v54, %v960_v45  ;;  %v750_v45 = vrot.slane %v748_v37, 1 }
 0x110   : > { %1051 = vrot.lane.b32.xlu1 %v5319_v41, %s4689_s10 }
 0x111   : > { %v962_v21 = vpop.permute.xlu0 %961  ;;  %v5384_v12 = vsel %vm654_vm0, %v746_v4, %v750_v45  ;;  %v757_v45 = vshll.u32 %v5410_v62, 16 }
 0x112   : > { %v1036_v49 = vpop.permute.xlu1 %1035  ;;  %v1439_v31 = vsel %vm1419_vm5, %v1374_v2, %v962_v21 }
 0x113   : > { %1053 = vrot.lane.b32.xlu0 %v5305_v18, %s4689_s10  ;;  %v1502_v59 = vsel %vm1484_vm6, %v1437_v38, %v1036_v49 }
 0x114   : > { %1118 = vrot.lane.b32.xlu1 %v5286_v19, %s4691_s30 }
 0x115   : > { %v1038_v47 = vpop.permute.xlu0 %1037 }
 0x116   : > { %v1103_v60 = vpop.permute.xlu1 %1102  ;;  %v1504_v0 = vsel %vm1484_vm6, %v1439_v31, %v1038_v47  ;;  %v1759_v47 = vshll.u32 %v5234_v52, 16 }
 0x117   : > { %v1567_v5 = vsel %vm1549_vm7, %v1502_v59, %v1103_v60  ;;  %1120 = vrot.lane.b32.xlu0 %v5335_v51, %s4691_s30 }
 0x118   : > { %v1704_v3 = vshll.u32 %v1567_v5, 16  ;;  %559 = vrot.lane.b32.xlu1 %v5244_v29, %s4686_s25  ;;  %v1702_v23 = vshrl.u32 %v1567_v5, 16  ;;  %v5361_v29 = vcombine.low %v257_v8, %v258_v10  ;;  %v1764_v10 = vshll.u32 %v5239_v28, 16 }
 0x119   : > { %v1105_v9 = vpop.permute.xlu0 %1104 }
 0x11a   : > { %v1706_v27 = vrot.slane %v1704_v3, 1  ;;  %v544_v16 = vpop.permute.xlu1 %543  ;;  %v1569_v14 = vsel %vm1549_vm7, %v1504_v0, %v1105_v9  ;;  %v492_v21 = vshll.u32 %v5361_v29, 16  ;;  %v1761_v3 = vrot.slane %v1759_v47, 1 }
 0x11b   : > { %v1708_v15 = vshll.u32 %v1569_v14, 16  ;;  %561 = vrot.lane.b32.xlu0 %v5230_v25, %s4686_s25  ;;  %v489_v25 = vshrl.u32 %v5361_v29, 16  ;;  %v1181_v57 = vsel %vm1159_vm1, %v4991_v42, %v544_v16  ;;  %v1757_v42 = vshrl.u32 %v5234_v52, 16 }
 0x11c   : > { %626 = vrot.lane.b32.xlu1 %v5211_v6, %s4685_s16  ;;  %v1707_v17 = vor.u32 %v1706_v27, %v1702_v23  ;;  %v260_v23 = vld [vmem:[%s4786_s13 + $0x90] sm:$0xf]  ;;  %v1766_v36 = vrot.slane %v1764_v10, 1  ;;  %v754_v4 = vrot.slane %v492_v21, 1 }
 0x11d   : > { %v1710_v26 = vrot.slane %v1708_v15, 1  ;;  %v546_v30 = vpop.permute.xlu0 %545  ;;  %v5380_v34 = vrot.slane %v489_v25, 7  ;;  %v261_v15 = vld [vmem:[%s4786_s13 + $0x94] sm:$0xf] }
 0x11e   : > { %v611_v61 = vpop.permute.xlu1 %610  ;;  %v1183_v53 = vsel %vm1159_vm1, %v5037_v11, %v546_v30  ;;  %v1762_v30 = vor.u32 %v1761_v3, %v1757_v42  ;;  %v262_v42 = vld [vmem:[%s4786_s13 + $0x98] sm:$0x1] }
 0x11f   : > { %628 = vrot.lane.b32.xlu0 %v5260_v44, %s4685_s16  ;;  %v1711_v39 = vsel %vm654_vm0, %v1707_v17, %v1710_v26  ;;  %v5394_v49 = vor.u32 %v492_v21, %v5380_v34  ;;  %v1246_v56 = vsel %vm1224_vm2, %v1181_v57, %v611_v61  ;;  %v755_v21 = vor.u32 %v754_v4, %v489_v25 }
 0x120   : > { %835 = vrot.lane.b32.xlu1 %v5309_v63, %s4687_s6  ;;  %2593 = vmatmul.mubr.bf16.gmra.mrb[16].mxu0 %v1711_v39  ;;  %v5485_v10 = vcombine.low %v262_v42, %v262_v42 }
 0x121   : > { %v613_v43 = vpop.permute.xlu0 %612  ;;  %4359 = vmatprep.mubr.msk.bf16.mxu0 %vm1159_vm1, %v1745_v33 }
 0x122   : > { %v820_v7 = vpop.permute.xlu1 %819  ;;  %v1248_v5 = vsel %vm1224_vm2, %v1183_v53, %v613_v43  ;;  %v5464_v53 = vshrl.u32 %v5410_v62, 16 }
 0x123   : > { %837 = vrot.lane.b32.xlu0 %v5314_v40, %s4687_s6  ;;  %v1311_v60 = vsel %vm1289_vm3, %v1246_v56, %v820_v7 }
 0x124   : > { %906 = vrot.lane.b32.xlu1 %v5319_v41, %s4688_s7 }
 0x125   : > { %v822_v55 = vpop.permute.xlu0 %821 }
 0x126   : > { %v891_v46 = vpop.permute.xlu1 %890  ;;  %v1313_v0 = vsel %vm1289_vm3, %v1248_v5, %v822_v55  ;;  %v1767_v55 = vsel %vm654_vm0, %v1762_v30, %v1766_v36 }
 0x127   : > { %908 = vrot.lane.b32.xlu0 %v5305_v18, %s4688_s7  ;;  %v1376_v2 = vsel %vm1354_vm4, %v1311_v60, %v891_v46 }
 0x128   : > { %979 = vrot.lane.b32.xlu1 %v5384_v12, %s4690_s17 }
 0x129   : > { %v893_v50 = vpop.permute.xlu0 %892 }
 0x12a   : > { %v964_v54 = vpop.permute.xlu1 %963  ;;  %v1378_v27 = vsel %vm1354_vm4, %v1313_v0, %v893_v50 }
 0x12b   : > { %981 = vrot.lane.b32.xlu0 %v5389_v48, %s4690_s17  ;;  %v1441_v11 = vsel %vm1419_vm5, %v1376_v2, %v964_v54  ;;  %v759_v54 = vrot.slane %v757_v45, 1 }
 0x12c   : > { %1055 = vrot.lane.b32.xlu1 %v5394_v49, %s4689_s10 }
 0x12d   : > { %v966_v38 = vpop.permute.xlu0 %965  ;;  %v5459_v25 = vsel %vm654_vm0, %v755_v21, %v759_v54 }
 0x12e   : > { %v1040_v59 = vpop.permute.xlu1 %1039  ;;  %v1443_v52 = vsel %vm1419_vm5, %v1378_v27, %v966_v38 }
 0x12f   : > { %1057 = vrot.lane.b32.xlu0 %v5380_v34, %s4689_s10  ;;  %v1506_v9 = vsel %vm1484_vm6, %v1441_v11, %v1040_v59 }
 0x130   : > { %1122 = vrot.lane.b32.xlu1 %v5361_v29, %s4691_s30 }
 0x131   : > { %v1042_v31 = vpop.permute.xlu0 %1041 }
 0x132   : > { %v1107_v8 = vpop.permute.xlu1 %1106  ;;  %v1508_v13 = vsel %vm1484_vm6, %v1443_v52, %v1042_v31  ;;  %v1781_v31 = vshll.u32 %v5309_v63, 16 }
 0x133   : > { %v1571_v16 = vsel %vm1549_vm7, %v1506_v9, %v1107_v8  ;;  %1124 = vrot.lane.b32.xlu0 %v5410_v62, %s4691_s30 }
 0x134   : > { %v1726_v14 = vshll.u32 %v1571_v16, 16  ;;  %563 = vrot.lane.b32.xlu1 %v5319_v41, %s4686_s25  ;;  %v1724_v37 = vshrl.u32 %v1571_v16, 16  ;;  %v5436_v41 = vcombine.low %v260_v23, %v261_v15  ;;  %v1786_v15 = vshll.u32 %v5314_v40, 16  ;;  %v264_v40 = vld [vmem:[%s4786_s13 + $0xa0] sm:$0xf] }
 0x135   : > { %v1109_v20 = vpop.permute.xlu0 %1108 }
 0x136   : > { %v1728_v17 = vrot.slane %v1726_v14, 1  ;;  %v548_v28 = vpop.permute.xlu1 %547  ;;  %v1573_v26 = vsel %vm1549_vm7, %v1508_v13, %v1109_v20  ;;  %v499_v38 = vshll.u32 %v5436_v41, 16  ;;  %v1783_v14 = vrot.slane %v1781_v31, 1 }
 0x137   : > { %v1730_v61 = vshll.u32 %v1573_v26, 16  ;;  %565 = vrot.lane.b32.xlu0 %v5305_v18, %s4686_s25  ;;  %v496_v18 = vshrl.u32 %v5436_v41, 16  ;;  %v1185_v5 = vsel %vm1159_vm1, %v5061_v35, %v548_v28  ;;  %v1779_v35 = vshrl.u32 %v5309_v63, 16  ;;  %v5501_v63 = vld [vmem:[%s4786_s13 + $0xcc] sm:$0xff]  }
 0x138   : > { %630 = vrot.lane.b32.xlu1 %v5286_v19, %s4685_s16  ;;  %v1729_v33 = vor.u32 %v1728_v17, %v1724_v37  ;;  %v763_v21 = vrot.slane %v499_v38, 1 }
 0x139   : > { %v1732_v39 = vrot.slane %v1730_v61, 1  ;;  %v550_v43 = vpop.permute.xlu0 %549  ;;  %v5455_v57 = vrot.slane %v496_v18, 7  ;;  %v263_v61 = vld [vmem:[%s4786_s13 + $0x9c] sm:$0xf]  ;;  %v1784_v45 = vor.u32 %v1783_v14, %v1779_v35 }
 0x13a   : > { %v615_v7 = vpop.permute.xlu1 %614  ;;  %v1187_v0 = vsel %vm1159_vm1, %v5110_v22, %v550_v43  ;;  %v5518_v54 = vcombine.low %v263_v61, %v264_v40  ;;  %v764_v31 = vor.u32 %v763_v21, %v496_v18 }
 0x13b   : > { %632 = vrot.lane.b32.xlu0 %v5335_v51, %s4685_s16  ;;  %v1733_v46 = vsel %vm654_vm0, %v1729_v33, %v1732_v39  ;;  %v5469_v59 = vor.u32 %v499_v38, %v5455_v57  ;;  %v1250_v3 = vsel %vm1224_vm2, %v1185_v5, %v615_v7  ;;  %v1016_v33 = vshll.u32 %v5501_v63, 16 }
 0x13c   : > { %839 = vrot.lane.b32.xlu1 %v5384_v12, %s4687_s6  ;;  %2601 = vmatmul.mubr.bf16.gmra.mrb[20].mxu0 %v1733_v46  ;;  %v1788_v7 = vrot.slane %v1786_v15, 1  ;;  %v503_v38 = vshrl.u32 %v5518_v54, 16  ;;  %v1803_v15 = vshll.u32 %v5384_v12, 16 }
 0x13d   : > { %v617_v50 = vpop.permute.xlu0 %616  ;;  %4360 = vmatprep.mubr.msk.bf16.mxu0 %vm1159_vm1, %v1767_v55 }
 0x13e   : > { %v824_v24 = vpop.permute.xlu1 %823  ;;  %v1252_v16 = vsel %vm1224_vm2, %v1187_v0, %v617_v50  ;;  %v1150_v50 = vrot.slane %v1016_v33, 1  ;;  %v1789_v42 = vsel %vm654_vm0, %v1784_v45, %v1788_v7  ;;  %v1808_v7 = vshll.u32 %v5389_v48, 16 }
 0x13f   : > { %841 = vrot.lane.b32.xlu0 %v5389_v48, %s4687_s6  ;;  %v1315_v8 = vsel %vm1289_vm3, %v1250_v3, %v824_v24 }
 0x140   : > { %910 = vrot.lane.b32.xlu1 %v5394_v49, %s4688_s7 }
 0x141   : > { %v826_v47 = vpop.permute.xlu0 %825 }
 0x142   : > { %v895_v56 = vpop.permute.xlu1 %894  ;;  %v1317_v13 = vsel %vm1289_vm3, %v1252_v16, %v826_v47  ;;  %v5550_v16 = vshrl.u32 %v5485_v10, 16 }
 0x143   : > { %912 = vrot.lane.b32.xlu0 %v5380_v34, %s4688_s7  ;;  %v1380_v27 = vsel %vm1354_vm4, %v1315_v8, %v895_v56  ;;  %v506_v8 = vshll.u32 %v5518_v54, 16 }
 0x144   : > { %983 = vrot.lane.b32.xlu1 %v5459_v25, %s4690_s17 }
 0x145   : > { %v897_v60 = vpop.permute.xlu0 %896 }
 0x146   : > { %v968_v2 = vpop.permute.xlu1 %967  ;;  %v1382_v17 = vsel %vm1354_vm4, %v1317_v13, %v897_v60  ;;  %v766_v60 = vshll.u32 %v5485_v10, 16  ;;  %v265_v13 = vld [vmem:[%s4786_s13 + $0xa4] sm:$0x1] }
 0x147   : > { %985 = vrot.lane.b32.xlu0 %v5464_v53, %s4690_s17  ;;  %v1445_v22 = vsel %vm1419_vm5, %v1380_v27, %v968_v2 }
 0x148   : > { %1059 = vrot.lane.b32.xlu1 %v5469_v59, %s4689_s10  ;;  %v768_v3 = vrot.slane %v766_v60, 1 }
 0x149   : > { %v970_v11 = vpop.permute.xlu0 %969 }
 0x14a   : > { %v1044_v9 = vpop.permute.xlu1 %1043  ;;  %v1447_v26 = vsel %vm1419_vm5, %v1382_v17, %v970_v11  ;;  %v5545_v18 = vsel %vm654_vm0, %v764_v31, %v768_v3 }
 0x14b   : > { %1061 = vrot.lane.b32.xlu0 %v5455_v57, %s4689_s10  ;;  %v1510_v20 = vsel %vm1484_vm6, %v1445_v22, %v1044_v9  ;;  %v5541_v9 = vrot.slane %v503_v38, 7 }
 0x14c   : > { %1126 = vrot.lane.b32.xlu1 %v5436_v41, %s4691_s30 }
 0x14d   : > { %v1046_v52 = vpop.permute.xlu0 %1045  ;;  %v5555_v22 = vor.u32 %v506_v8, %v5541_v9 }
 0x14e   : > { %v1111_v23 = vpop.permute.xlu1 %1110  ;;  %v1512_v36 = vsel %vm1484_vm6, %v1447_v26, %v1046_v52 }
 0x14f   : > { %v1575_v28 = vsel %vm1549_vm7, %v1510_v20, %v1111_v23  ;;  %1128 = vrot.lane.b32.xlu0 %v5485_v10, %s4691_s30 }
 0x150   : > { %v1748_v30 = vshll.u32 %v1575_v28, 16  ;;  %567 = vrot.lane.b32.xlu1 %v5394_v49, %s4686_s25  ;;  %v1746_v55 = vshrl.u32 %v1575_v28, 16  ;;  %v1013_v49 = vshrl.u32 %v5501_v63, 16 }
 0x151   : > { %v1113_v37 = vpop.permute.xlu0 %1112 }
 0x152   : > { %v1750_v39 = vrot.slane %v1748_v30, 1  ;;  %v552_v43 = vpop.permute.xlu1 %551  ;;  %v1577_v4 = vsel %vm1549_vm7, %v1512_v36, %v1113_v37  ;;  %v5523_v2 = vor.u32 %v1150_v50, %v1013_v49  ;;  %v5571_v36 = vcombine.low %v265_v13, %v265_v13 }
 0x153   : > { %v1752_v46 = vshll.u32 %v1577_v4, 16  ;;  %569 = vrot.lane.b32.xlu0 %v5380_v34, %s4686_s25  ;;  %v1189_v20 = vsel %vm1159_vm1, %v5136_v58, %v552_v43  ;;  %v1801_v58 = vshrl.u32 %v5384_v12, 16 }
 0x154   : > { %634 = vrot.lane.b32.xlu1 %v5361_v29, %s4685_s16  ;;  %v1751_v24 = vor.u32 %v1750_v39, %v1746_v55  ;;  %v1805_v39 = vrot.slane %v1803_v15, 1 }
 0x155   : > { %v1754_v47 = vrot.slane %v1752_v46, 1  ;;  %v554_v56 = vpop.permute.xlu0 %553 }
 0x156   : > { %v619_v34 = vpop.permute.xlu1 %618  ;;  %v1191_v28 = vsel %vm1159_vm1, %v5185_v32, %v554_v56  ;;  %v267_v56 = vld [vmem:[%s4786_s13 + $0xac] sm:$0xf] }
 0x157   : > { %636 = vrot.lane.b32.xlu0 %v5410_v62, %s4685_s16  ;;  %v1755_v5 = vsel %vm654_vm0, %v1751_v24, %v1754_v47  ;;  %v1254_v17 = vsel %vm1224_vm2, %v1189_v20, %v619_v34  ;;  %v266_v47 = vld [vmem:[%s4786_s13 + $0xa8] sm:$0xf] }
 0x158   : > { %843 = vrot.lane.b32.xlu1 %v5459_v25, %s4687_s6  ;;  %2609 = vmatmul.mubr.bf16.gmra.mrb[24].mxu0 %v1755_v5  ;;  %v1810_v5 = vrot.slane %v1808_v7, 1  ;;  %v5645_v7 = vld [vmem:[%s6949_s2] ss:$0 sm:$0xff] }
 0x159   : > { %v621_v11 = vpop.permute.xlu0 %620  ;;  %4361 = vmatprep.mubr.msk.bf16.mxu0 %vm1159_vm1, %v1789_v42  ;;  %v1806_v42 = vor.u32 %v1805_v39, %v1801_v58  ;;  %v5625_v58 = vshrl.u32 %v5571_v36, 16  ;;  %v268_v39 = vld [vmem:[%s4786_s13 + $0xb0] sm:$0x1] }
 0x15a   : > { %v828_v0 = vpop.permute.xlu1 %827  ;;  %v1256_v61 = vsel %vm1224_vm2, %v1191_v28, %v621_v11 }
 0x15b   : > { %845 = vrot.lane.b32.xlu0 %v5464_v53, %s4687_s6  ;;  %v1319_v30 = vsel %vm1289_vm3, %v1254_v17, %v828_v0  ;;  %v1811_v13 = vsel %vm654_vm0, %v1806_v42, %v1810_v5 }
 0x15c   : > { %914 = vrot.lane.b32.xlu1 %v5469_v59, %s4688_s7 }
 0x15d   : > { %v830_v27 = vpop.permute.xlu0 %829 }
 0x15e   : > { %v899_v35 = vpop.permute.xlu1 %898  ;;  %v1321_v43 = vsel %vm1289_vm3, %v1256_v61, %v830_v27 }
 0x15f   : > { %916 = vrot.lane.b32.xlu0 %v5455_v57, %s4688_s7  ;;  %v1384_v37 = vsel %vm1354_vm4, %v1319_v30, %v899_v35  ;;  %v772_v35 = vrot.slane %v506_v8, 1 }
 0x160   : > { %987 = vrot.lane.b32.xlu1 %v5545_v18, %s4690_s17 }
 0x161   : > { %v901_v52 = vpop.permute.xlu0 %900  ;;  %v773_v8 = vor.u32 %v772_v35, %v503_v38  ;;  %v1830_v35 = vshll.u32 %v5464_v53, 16  ;;  %v270_v53 = vld [vmem:[%s4786_s13 + $0xb8] sm:$0xf] }
 0x162   : > { %v972_v14 = vpop.permute.xlu1 %971  ;;  %v1386_v55 = vsel %vm1354_vm4, %v1321_v43, %v901_v52  ;;  %v775_v52 = vshll.u32 %v5571_v36, 16  ;;  %v1825_v43 = vshll.u32 %v5459_v25, 16 }
 0x163   : > { %989 = vrot.lane.b32.xlu0 %v5550_v16, %s4690_s17  ;;  %v1449_v32 = vsel %vm1419_vm5, %v1384_v37, %v972_v14 }
 0x164   : > { %1063 = vrot.lane.b32.xlu1 %v5555_v22, %s4689_s10  ;;  %v777_v15 = vrot.slane %v775_v52, 1 }
 0x165   : > { %v974_v23 = vpop.permute.xlu0 %973 }
 0x166   : > { %v1048_v26 = vpop.permute.xlu1 %1047  ;;  %v1451_v12 = vsel %vm1419_vm5, %v1386_v55, %v974_v23  ;;  %v5620_v38 = vsel %vm654_vm0, %v773_v8, %v777_v15 }
 0x167   : > { %1065 = vrot.lane.b32.xlu0 %v5541_v9, %s4689_s10  ;;  %v1514_v4 = vsel %vm1484_vm6, %v1449_v32, %v1048_v26 }
 0x168   : > { %1130 = vrot.lane.b32.xlu1 %v5518_v54, %s4691_s30 }
 0x169   : > { %v1050_v40 = vpop.permute.xlu0 %1049 }
 0x16a   : > { %v1115_v45 = vpop.permute.xlu1 %1114  ;;  %v1516_v21 = vsel %vm1484_vm6, %v1451_v12, %v1050_v40 }
 0x16b   : > { %v1579_v46 = vsel %vm1549_vm7, %v1514_v4, %v1115_v45  ;;  %1132 = vrot.lane.b32.xlu0 %v5571_v36, %s4691_s30 }
 0x16c   : > { %v1770_v50 = vshll.u32 %v1579_v46, 16  ;;  %571 = vrot.lane.b32.xlu1 %v5469_v59, %s4686_s25  ;;  %v1768_v11 = vshrl.u32 %v1579_v46, 16  ;;  %v5597_v59 = vcombine.low %v266_v47, %v267_v56 }
 0x16d   : > { %v1117_v24 = vpop.permute.xlu0 %1116 }
 0x16e   : > { %v1772_v60 = vrot.slane %v1770_v50, 1  ;;  %v556_v48 = vpop.permute.xlu1 %555  ;;  %v1581_v34 = vsel %vm1549_vm7, %v1516_v21, %v1117_v24  ;;  %v513_v26 = vshll.u32 %v5597_v59, 16  ;;  %v5653_v24 = vcombine.low %v268_v39, %v268_v39 }
 0x16f   : > { %v1774_v31 = vshll.u32 %v1581_v34, 16  ;;  %573 = vrot.lane.b32.xlu0 %v5455_v57, %s4686_s25  ;;  %v510_v57 = vshrl.u32 %v5597_v59, 16  ;;  %v1193_v4 = vsel %vm1159_vm1, %v5211_v6, %v556_v48 }
 0x170   : > { %638 = vrot.lane.b32.xlu1 %v5436_v41, %s4685_s16  ;;  %v1773_v3 = vor.u32 %v1772_v60, %v1768_v11  ;;  %v1823_v60 = vshrl.u32 %v5459_v25, 16 }
 0x171   : > { %v1776_v0 = vrot.slane %v1774_v31, 1  ;;  %v558_v27 = vpop.permute.xlu0 %557  ;;  %v5616_v28 = vrot.slane %v510_v57, 7 }
 0x172   : > { %v623_v14 = vpop.permute.xlu1 %622  ;;  %v1195_v46 = vsel %vm1159_vm1, %v5260_v44, %v558_v27  ;;  %v1827_v44 = vrot.slane %v1825_v43, 1  ;;  %v1832_v43 = vrot.slane %v1830_v35, 1  ;;  %v271_v35 = vld [vmem:[%s4786_s13 + $0xbc] sm:$0x1] }
 0x173   : > { %640 = vrot.lane.b32.xlu0 %v5485_v10, %s4685_s16  ;;  %v1777_v20 = vsel %vm654_vm0, %v1773_v3, %v1776_v0  ;;  %v5632_v61 = vor.u32 %v513_v26, %v5616_v28  ;;  %v1258_v55 = vsel %vm1224_vm2, %v1193_v4, %v623_v14 }
 0x174   : > { %847 = vrot.lane.b32.xlu1 %v5545_v18, %s4687_s6  ;;  %2617 = vmatmul.mubr.bf16.gmra.mrb[28].mxu0 %v1777_v20 }
 0x175   : > { %v625_v23 = vpop.permute.xlu0 %624  ;;  %4362 = vmatprep.mubr.msk.bf16.mxu0 %vm1159_vm1, %v1811_v13 }
 0x176   : > { %v832_v17 = vpop.permute.xlu1 %831  ;;  %v1260_v48 = vsel %vm1224_vm2, %v1195_v46, %v625_v23 }
 0x177   : > { %849 = vrot.lane.b32.xlu0 %v5550_v16, %s4687_s6  ;;  %v1323_v50 = vsel %vm1289_vm3, %v1258_v55, %v832_v17  ;;  %v269_v17 = vld [vmem:[%s4786_s13 + $0xb4] sm:$0xf] }
 0x178   : > { %918 = vrot.lane.b32.xlu1 %v5555_v22, %s4688_s7 }
 0x179   : > { %v834_v30 = vpop.permute.xlu0 %833 }
 0x17a   : > { %v903_v37 = vpop.permute.xlu1 %902  ;;  %v1325_v11 = vsel %vm1289_vm3, %v1260_v48, %v834_v30  ;;  %v1828_v30 = vor.u32 %v1827_v44, %v1823_v60 }
 0x17b   : > { %920 = vrot.lane.b32.xlu0 %v5541_v9, %s4688_s7  ;;  %v1388_v6 = vsel %vm1354_vm4, %v1323_v50, %v903_v37  ;;  %v781_v50 = vrot.slane %v513_v26, 1 }
 0x17c   : > { %991 = vrot.lane.b32.xlu1 %v5620_v38, %s4690_s17 }
 0x17d   : > { %v905_v32 = vpop.permute.xlu0 %904  ;;  %v782_v26 = vor.u32 %v781_v50, %v510_v57 }
 0x17e   : > { %v976_v40 = vpop.permute.xlu1 %975  ;;  %v1390_v25 = vsel %vm1354_vm4, %v1325_v11, %v905_v32 }
 0x17f   : > { %993 = vrot.lane.b32.xlu0 %v5625_v58, %s4690_s17  ;;  %v1453_v34 = vsel %vm1419_vm5, %v1388_v6, %v976_v40 }
 0x180   : > { %1067 = vrot.lane.b32.xlu1 %v5632_v61, %s4689_s10 }
 0x181   : > { %v978_v45 = vpop.permute.xlu0 %977 }
 0x182   : > { %v1052_v12 = vpop.permute.xlu1 %1051  ;;  %v1455_v14 = vsel %vm1419_vm5, %v1390_v25, %v978_v45  ;;  %v1847_v25 = vshll.u32 %v5545_v18, 16 }
 0x183   : > { %v2562_v21 = vpop.f32.mrb[0].mxu0  ;;  %1069 = vrot.lane.b32.xlu0 %v5616_v28, %s4689_s10  ;;  %v1518_v31 = vsel %vm1484_vm6, %v1453_v34, %v1052_v12 }
 0x184   : > { %1134 = vrot.lane.b32.xlu1 %v5597_v59, %s4691_s30  ;;  %v2563_v47 = vadd.f32 %v5645_v7, %v2562_v21  ;;  %v2564_v56 = vpop.f32.mrb[1].mxu0  ;;  %v784_v21 = vshll.u32 %v5653_v24, 16 }
 0x185   : > { %v2565_v42 = vpop.f32.mrb[2].mxu0  ;;  %v1054_v5 = vpop.permute.xlu0 %1053 }
 0x186   : > { %v1119_v3 = vpop.permute.xlu1 %1118  ;;  %v2566_v0 = vadd.f32 %v5645_v7, %v2565_v42  ;;  %v2567_v27 = vpop.f32.mrb[3].mxu0  ;;  %v2689_v13 = vmax.f32 %v2563_v47, 0.0  ;;  %v1520_v8 = vsel %vm1484_vm6, %v1455_v14, %v1054_v5  ;;  %v1833_v47 = vsel %vm654_vm0, %v1828_v30, %v1832_v43 }
 0x187   : > { %v1583_v52 = vsel %vm1549_vm7, %v1518_v31, %v1119_v3  ;;  %1136 = vrot.lane.b32.xlu0 %v5653_v24, %s4691_s30  ;;  %v786_v44 = vrot.slane %v784_v21, 1  ;;  %v5713_v31 = vshrl.u32 %v5653_v24, 16  ;;  %v1852_v21 = vshll.u32 %v5550_v16, 16  ;;  %v273_v16 = vld [vmem:[%s4786_s13 + $0xc4] sm:$0xf] }
 0x188   : > { %v1792_v20 = vshll.u32 %v1583_v52, 16  ;;  %v2690_v23 = vmax.f32 %v2566_v0, 0.0  ;;  %575 = vrot.lane.b32.xlu1 %v5555_v22, %s4686_s25  ;;  %v1790_v4 = vshrl.u32 %v1583_v52, 16  ;;  %v5683_v22 = vcombine.low %v269_v17, %v270_v53 }
 0x189   : > { %v1121_v15 = vpop.permute.xlu0 %1120  ;;  %v5708_v57 = vsel %vm654_vm0, %v782_v26, %v786_v44  ;;  %v5736_v17 = vcombine.low %v271_v35, %v271_v35 }
 0x18a   : > { %v1794_v37 = vrot.slane %v1792_v20, 1  ;;  %v5676_v32 = vpack.c.bf16 %v2690_v23, %v2689_v13  ;;  %v560_v40 = vpop.permute.xlu1 %559  ;;  %v1585_v39 = vsel %vm1549_vm7, %v1520_v8, %v1121_v15  ;;  %v517_v56 = vshrl.u32 %v5683_v22, 16 }
 0x18b   : > { %v1796_v45 = vshll.u32 %v1585_v39, 16  ;;  %577 = vrot.lane.b32.xlu0 %v5541_v9, %s4686_s25  ;;  %v520_v42 = vshll.u32 %v5683_v22, 16  ;;  %v1197_v52 = vsel %vm1159_vm1, %v5286_v19, %v560_v40 }
 0x18c   : > { %642 = vrot.lane.b32.xlu1 %v5518_v54, %s4685_s16  ;;  %v1795_v55 = vor.u32 %v1794_v37, %v1790_v4  ;;  %v5704_v34 = vrot.slane %v517_v56, 7  ;;  %v1845_v37 = vshrl.u32 %v5545_v18, 16 }
 0x18d   : > { %v1798_v46 = vrot.slane %v1796_v45, 1  ;;  %v562_v12 = vpop.permute.xlu0 %561 }
 0x18e   : > { %v627_v6 = vpop.permute.xlu1 %626  ;;  %v5720_v3 = vor.u32 %v520_v42, %v5704_v34  ;;  %v1199_v20 = vsel %vm1159_vm1, %v5335_v51, %v562_v12  ;;  %v1849_v51 = vrot.slane %v1847_v25, 1 }
 0x18f   : > { %644 = vrot.lane.b32.xlu0 %v5571_v36, %s4685_s16  ;;  %v1799_v9 = vsel %vm654_vm0, %v1795_v55, %v1798_v46  ;;  %v1262_v13 = vsel %vm1224_vm2, %v1197_v52, %v627_v6  ;;  %v1854_v52 = vrot.slane %v1852_v21, 1 }
 0x190   : > { %851 = vrot.lane.b32.xlu1 %v5620_v38, %s4687_s6  ;;  %2625 = vmatmul.mubr.bf16.gmra.mrb[32].mxu0 %v1799_v9 }
 0x191   : > { %v629_v60 = vpop.permute.xlu0 %628  ;;  %4363 = vmatprep.mubr.msk.bf16.mxu0 %vm1159_vm1, %v1833_v47 }
 0x192   : > { %v836_v48 = vpop.permute.xlu1 %835  ;;  %v1264_v40 = vsel %vm1224_vm2, %v1199_v20, %v629_v60 }
 0x193   : > { %853 = vrot.lane.b32.xlu0 %v5625_v58, %s4687_s6  ;;  %v1327_v8 = vsel %vm1289_vm3, %v1262_v13, %v836_v48 }
 0x194   : > { %922 = vrot.lane.b32.xlu1 %v5632_v61, %s4688_s7 }
 0x195   : > { %v838_v5 = vpop.permute.xlu0 %837 }
 0x196   : > { %v907_v11 = vpop.permute.xlu1 %906  ;;  %v1329_v45 = vsel %vm1289_vm3, %v1264_v40, %v838_v5  ;;  %v272_v5 = vld [vmem:[%s4786_s13 + $0xc0] sm:$0xf] }
 0x197   : > { %924 = vrot.lane.b32.xlu0 %v5616_v28, %s4688_s7  ;;  %v1392_v53 = vsel %vm1354_vm4, %v1327_v8, %v907_v11  ;;  %v1850_v11 = vor.u32 %v1849_v51, %v1845_v37  ;;  %v5764_v20 = vcombine.low %v272_v5, %v273_v16 }
 0x198   : > { %995 = vrot.lane.b32.xlu1 %v5708_v57, %s4690_s17 }
 0x199   : > { %v909_v0 = vpop.permute.xlu0 %908 }
 0x19a   : > { %v980_v27 = vpop.permute.xlu1 %979  ;;  %v1394_v18 = vsel %vm1354_vm4, %v1329_v45, %v909_v0 }
 0x19b   : > { %997 = vrot.lane.b32.xlu0 %v5713_v31, %s4690_s17  ;;  %v1457_v39 = vsel %vm1419_vm5, %v1392_v53, %v980_v27  ;;  %v790_v53 = vrot.slane %v520_v42, 1 }
 0x19c   : > { %1071 = vrot.lane.b32.xlu1 %v5720_v3, %s4689_s10 }
 0x19d   : > { %v982_v14 = vpop.permute.xlu0 %981 }
 0x19e   : > { %v1056_v23 = vpop.permute.xlu1 %1055  ;;  %v1459_v47 = vsel %vm1419_vm5, %v1394_v18, %v982_v14 }
 0x19f   : > { %v2570_v15 = vpop.f32.mrb[4].mxu0  ;;  %1073 = vrot.lane.b32.xlu0 %v5704_v34, %s4689_s10  ;;  %v1522_v55 = vsel %vm1484_vm6, %v1457_v39, %v1056_v23 }
 0x1a0   : > { %1138 = vrot.lane.b32.xlu1 %v5683_v22, %s4691_s30  ;;  %v2571_v19 = vadd.f32 %v5645_v7, %v2570_v15  ;;  %v2572_v30 = vpop.f32.mrb[5].mxu0 }
 0x1a1   : > { %v2573_v43 = vpop.f32.mrb[6].mxu0  ;;  %v1058_v4 = vpop.permute.xlu0 %1057 }
 0x1a2   : > { %v1123_v46 = vpop.permute.xlu1 %1122  ;;  %v2574_v12 = vadd.f32 %v5645_v7, %v2573_v43  ;;  %v2575_v50 = vpop.f32.mrb[7].mxu0  ;;  %v2691_v9 = vmax.f32 %v2571_v19, 0.0  ;;  %v1524_v44 = vsel %vm1484_vm6, %v1459_v47, %v1058_v4  ;;  %v793_v19 = vshll.u32 %v5736_v17, 16 }
 0x1a3   : > { %v1587_v6 = vsel %vm1549_vm7, %v1522_v55, %v1123_v46  ;;  %1140 = vrot.lane.b32.xlu0 %v5736_v17, %s4691_s30  ;;  %v864_v4 = vshrl.u32 %v5764_v20, 16  ;;  %v791_v55 = vor.u32 %v790_v53, %v517_v56 }
 0x1a4   : > { %v1814_v60 = vshll.u32 %v1587_v6, 16  ;;  %v2692_v26 = vmax.f32 %v2574_v12, 0.0  ;;  %579 = vrot.lane.b32.xlu1 %v5632_v61, %s4686_s25  ;;  %v1812_v13 = vshrl.u32 %v1587_v6, 16  ;;  %v795_v46 = vrot.slane %v793_v19, 1 }
 0x1a5   : > { %v1125_v48 = vpop.permute.xlu0 %1124  ;;  %v5799_v56 = vrot.slane %v864_v4, 7  ;;  %v867_v6 = vshll.u32 %v5764_v20, 16  ;;  %v1867_v19 = vshrl.u32 %v5620_v38, 16 }
 0x1a6   : > { %v1816_v0 = vrot.slane %v1814_v60, 1  ;;  %v2722_v27 = vpack.c.bf16 %v2692_v26, %v2691_v9  ;;  %v564_v35 = vpop.permute.xlu1 %563  ;;  %v1589_v25 = vsel %vm1549_vm7, %v1524_v44, %v1125_v48  ;;  %v5806_v60 = vsel %vm654_vm0, %v791_v55, %v795_v46 }
 0x1a7   : > { %v1818_v14 = vshll.u32 %v1589_v25, 16  ;;  %581 = vrot.lane.b32.xlu0 %v5616_v28, %s4686_s25  ;;  %v1855_v28 = vsel %vm654_vm0, %v1850_v11, %v1854_v52  ;;  %v5813_v44 = vshrl.u32 %v5736_v17, 16  ;;  %v5820_v48 = vor.u32 %v867_v6, %v5799_v56  ;;  %v274_v11 = vld [vmem:[%s4786_s13 + $0xc8] sm:$0x1] }
 0x1a8   : > { %v2752_v61 = vshrl.u32 %v2722_v27, 16  ;;  %646 = vrot.lane.b32.xlu1 %v5597_v59, %s4685_s16  ;;  %v1817_v23 = vor.u32 %v1816_v0, %v1812_v13  ;;  %v2755_v37 = vshll.u32 %v2722_v27, 16  ;;  %v4560_v0 = vld [vmem:[%s6950_s3] sm:$0xff]   ;;  %v1869_v27 = vshll.u32 %v5620_v38, 16 }
 0x1a9   : > { %v1820_v8 = vrot.slane %v1818_v14, 1  ;;  %v566_v15 = vpop.permute.xlu0 %565  ;;  %v1201_v25 = vsel %vm1159_vm1, %v5361_v29, %v564_v35  ;;  %3809 = vmatpush1.bf16.msra.mxu1 %v4560_v0  ;;  %v5839_v53 = vcombine.low %v274_v11, %v274_v11  ;;  %v4561_v29 = vld [vmem:[%s6950_s3 + $0x8] sm:$0xff]  }
 0x1aa   : > { %v2754_v30 = vrot.slane %v2752_v61, 7  ;;  %v631_v51 = vpop.permute.xlu1 %630  ;;  %v1203_v14 = vsel %vm1159_vm1, %v5410_v62, %v566_v15  ;;  %3810 = vmatprep.subr.bf16.mxu1 %v4684_v1 }
 0x1ab   : > { %648 = vrot.lane.b32.xlu0 %v5653_v24, %s4685_s16  ;;  %v1821_v39 = vsel %vm654_vm0, %v1817_v23, %v1820_v8  ;;  %v1266_v13 = vsel %vm1224_vm2, %v1201_v25, %v631_v51 }
 0x1ac   : > { %v2757_v43 = vor.u32 %v2755_v37, %v2754_v30  ;;  %855 = vrot.lane.b32.xlu1 %v5708_v57, %s4687_s6  ;;  %2633 = vmatmul.mubr.bf16.gmra.mrb[36].mxu0 %v1821_v39  ;;  %v5781_v42 = vsel %vm5770_vm10, %v2754_v30, 0  ;;  %v1871_v30 = vrot.slane %v1869_v27, 1 }
 0x1ad   : > { %v633_v45 = vpop.permute.xlu0 %632  ;;  %4364 = vmatprep.mubr.msk.bf16.mxu0 %vm1159_vm1, %v1855_v28  ;;  %v3191_v18 = vrot.slane %v5781_v42, 1  ;;  %3811 = vmatpush1.bf16.msra.mxu1 %v4561_v29  ;;  %v2740_v29 = vrot.slane %v4684_v1, 7 }
 0x1ae   : > { %v5789_v12 = vsel %vm5770_vm10, 0, %v2757_v43  ;;  %v840_v50 = vpop.permute.xlu1 %839  ;;  %v1268_v37 = vsel %vm1224_vm2, %v1203_v14, %v633_v45  ;;  %3812 = vmatprep.subr.bf16.mxu1 %v4684_v1  ;;  %v4562_v45 = vld [vmem:[%s6950_s3 + $0x10] sm:$0xff]   ;;  %v1872_v27 = vor.u32 %v1871_v30, %v1867_v19  ;;  %v934_v19 = vrot.slane %v867_v6, 1 }
 0x1af   : > { %857 = vrot.lane.b32.xlu0 %v5713_v31, %s4687_s6  ;;  %v3190_v21 = vrot.slane %v5789_v12, 1  ;;  %v1331_v23 = vsel %vm1289_vm3, %v1266_v13, %v840_v50  ;;  %v5897_v6 = vsel %vm5770_vm10, 0, %v2740_v29 }
 0x1b0   : > { %926 = vrot.lane.b32.xlu1 %v5720_v3, %s4688_s7 }
 0x1b1   : > { %v842_v47 = vpop.permute.xlu0 %841  ;;  %v5803_v9 = vsel %vm3183_vm11, %v3190_v21, %v3191_v18  ;;  %v1874_v18 = vshll.u32 %v5625_v58, 16  ;;  %3813 = vmatpush1.bf16.msra.mxu1 %v4562_v45 }
 0x1b2   : > { %v911_v26 = vpop.permute.xlu1 %910  ;;  %4380 = vmatprep.mubr.msk.bf16.mxu1 %vm1159_vm1, %v5803_v9  ;;  %v1333_v43 = vsel %vm1289_vm3, %v1268_v37, %v842_v47  ;;  %3814 = vmatprep.subr.bf16.mxu1 %v4684_v1 }
 0x1b3   : > { %928 = vrot.lane.b32.xlu0 %v5704_v34, %s4688_s7  ;;  %v1396_v35 = vsel %vm1354_vm4, %v1331_v23, %v911_v26  ;;  %v1876_v23 = vrot.slane %v1874_v18, 1 }
 0x1b4   : > { %999 = vrot.lane.b32.xlu1 %v5806_v60, %s4690_s17 }
 0x1b5   : > { %v913_v5 = vpop.permute.xlu0 %912  ;;  %v1877_v37 = vsel %vm654_vm0, %v1872_v27, %v1876_v23  ;;  %v1891_v27 = vshll.u32 %v5708_v57, 16  ;;  %v1889_v23 = vshrl.u32 %v5708_v57, 16  ;;  %v4567_v57 = vld [vmem:[%s6950_s3 + $0x38] sm:$0xff]  }
 0x1b6   : > { %v984_v16 = vpop.permute.xlu1 %983  ;;  %v1398_v38 = vsel %vm1354_vm4, %v1333_v43, %v913_v5 }
 0x1b7   : > { %1001 = vrot.lane.b32.xlu0 %v5813_v44, %s4690_s17  ;;  %v1461_v51 = vsel %vm1419_vm5, %v1396_v35, %v984_v16 }
 0x1b8   : > { %1075 = vrot.lane.b32.xlu1 %v5820_v48, %s4689_s10 }
 0x1b9   : > { %v986_v52 = vpop.permute.xlu0 %985 }
 0x1ba   : > { %v1060_v61 = vpop.permute.xlu1 %1059  ;;  %v1463_v47 = vsel %vm1419_vm5, %v1398_v38, %v986_v52  ;;  %v1015_v38 = vrot.slane %v1013_v49, 7  ;;  %v941_v49 = vshrl.u32 %v5839_v53, 16 }
 0x1bb   : > { %v2578_v8 = vpop.f32.mrb[8].mxu0  ;;  %1077 = vrot.lane.b32.xlu0 %v5799_v56, %s4689_s10  ;;  %v1526_v55 = vsel %vm1484_vm6, %v1461_v51, %v1060_v61 }
 0x1bc   : > { %1142 = vrot.lane.b32.xlu1 %v5764_v20, %s4691_s30  ;;  %v2579_v62 = vadd.f32 %v5645_v7, %v2578_v8  ;;  %v2580_v15 = vpop.f32.mrb[9].mxu0 }
 0x1bd   : > { %v2581_v28 = vpop.f32.mrb[10].mxu0  ;;  %v1062_v39 = vpop.permute.xlu0 %1061 }
 0x1be   : > { %v1127_v46 = vpop.permute.xlu1 %1126  ;;  %v2582_v50 = vadd.f32 %v5645_v7, %v2581_v28  ;;  %v2583_v21 = vpop.f32.mrb[11].mxu0  ;;  %v2693_v16 = vmax.f32 %v2579_v62, 0.0  ;;  %v1528_v58 = vsel %vm1484_vm6, %v1463_v47, %v1062_v39  ;;  %v2745_v28 = vshrl.u32 %v5676_v32, 16  ;;  %v4564_v39 = vld [vmem:[%s6950_s3 + $0x20] sm:$0xff]  }
 0x1bf   : > { %v1591_v26 = vsel %vm1549_vm7, %v1526_v55, %v1127_v46  ;;  %1144 = vrot.lane.b32.xlu0 %v5839_v53, %s4691_s30  ;;  %v935_v55 = vor.u32 %v934_v19, %v864_v4  ;;  %v2930_v21 = vshll.u32 %v5897_v6, 16  ;;  %v2910_v4 = vsel %vm5770_vm10, %v2740_v29, 0 }
 0x1c0   : > { %v1836_v11 = vshll.u32 %v1591_v26, 16  ;;  %v2694_v0 = vmax.f32 %v2582_v50, 0.0  ;;  %583 = vrot.lane.b32.xlu1 %v5720_v3, %s4686_s25  ;;  %v1834_v52 = vshrl.u32 %v1591_v26, 16  ;;  %v4563_v3 = vld [vmem:[%s6950_s3 + $0x18] sm:$0xff]   ;;  %v2747_v18 = vrot.slane %v2745_v28, 7  ;;  %v4565_v26 = vld [vmem:[%s6950_s3 + $0x28] sm:$0xff]  }
 0x1c1   : > { %v1129_v5 = vpop.permute.xlu0 %1128  ;;  %3815 = vmatpush1.bf16.msra.mxu1 %v4563_v3  ;;  %v1893_v3 = vrot.slane %v1891_v27, 1  ;;  %v3185_v29 = vrot.slane %v2910_v4, 1  ;;  %v2954_v27 = vshll.u32 %v5789_v12, 16 }
 0x1c2   : > { %v1838_v25 = vrot.slane %v1836_v11, 1  ;;  %v5868_v13 = vpack.c.bf16 %v2694_v0, %v2693_v16  ;;  %v5870_v14 = vpop.permute.xlu1 %567  ;;  %v1593_v61 = vsel %vm1549_vm7, %v1528_v58, %v1129_v5  ;;  %3816 = vmatprep.subr.bf16.mxu1 %v4684_v1  ;;  %v2748_v16 = vshll.u32 %v5676_v32, 16 }
 0x1c3   : > { %v1840_v8 = vshll.u32 %v1593_v61, 16  ;;  %585 = vrot.lane.b32.xlu0 %v5704_v34, %s4686_s25  ;;  %v937_v34 = vshll.u32 %v5839_v53, 16  ;;  %v2932_v0 = vrot.slane %v2930_v21, 1  ;;  %v2935_v58 = vshll.u32 %v2910_v4, 16  ;;  %v4568_v21 = vld [vmem:[%s6950_s3 + $0x40] sm:$0xff]  }
 0x1c4   : > { %650 = vrot.lane.b32.xlu1 %v5683_v22, %s4685_s16  ;;  %v1839_v35 = vor.u32 %v1838_v25, %v1834_v52  ;;  %v2750_v5 = vor.u32 %v2748_v16, %v2747_v18  ;;  %v1018_v32 = vor.u32 %v1016_v33, %v1015_v38  ;;  %v3184_v33 = vrot.slane %v5897_v6, 1 }
 0x1c5   : > { %v1842_v62 = vrot.slane %v1840_v8, 1  ;;  %v5882_v15 = vpop.permute.xlu0 %569  ;;  %v939_v46 = vrot.slane %v937_v34, 1  ;;  %3817 = vmatpush1.bf16.msra.mxu1 %v4564_v39  ;;  %v2937_v8 = vrot.slane %v2935_v58, 1  ;;  %v1896_v34 = vshll.u32 %v5713_v31, 16 }
 0x1c6   : > { %v635_v30 = vpop.permute.xlu1 %634  ;;  %3818 = vmatprep.subr.bf16.mxu1 %v4684_v1 }
 0x1c7   : > { %652 = vrot.lane.b32.xlu0 %v5736_v17, %s4685_s16  ;;  %v1843_v51 = vsel %vm654_vm0, %v1839_v35, %v1842_v62  ;;  %v5921_v47 = vsel %vm654_vm0, %v935_v55, %v939_v46  ;;  %v5946_v35 = vsel %vm5770_vm10, 0, %v2750_v5  ;;  %v1205_v62 = vsel %vm1159_vm1, %v5436_v41, %v5870_v14 }
 0x1c8   : > { %859 = vrot.lane.b32.xlu1 %v5806_v60, %s4687_s6  ;;  %2641 = vmatmul.mubr.bf16.gmra.mrb[40].mxu0 %v1843_v51  ;;  %v1207_v51 = vsel %vm1159_vm1, %v5485_v10, %v5882_v15  ;;  %v2942_v41 = vshll.u32 %v5946_v35, 16  ;;  %v5971_v15 = vld [vmem:[%s4786_s13 + $0xd4] ss:$0 sps:$4 sm:$0x11]   ;;  %v1898_v16 = vrot.slane %v1896_v34, 1 }
 0x1c9   : > { %v5902_v43 = vpop.permute.xlu0 %636  ;;  %4365 = vmatprep.mubr.msk.bf16.mxu0 %vm1159_vm1, %v1877_v37  ;;  %3819 = vmatpush1.bf16.msra.mxu1 %v4565_v26  ;;  %v1270_v37 = vsel %vm1224_vm2, %v1205_v62, %v635_v30  ;;  %v5974_v30 = vsel %vm3183_vm11, %v3184_v33, %v3185_v29  ;;  %v2940_v33 = vshrl.u32 %v5946_v35, 16  ;;  %v3187_v29 = vrot.slane %v5946_v35, 1 }
 0x1ca   : > { %v844_v50 = vpop.permute.xlu1 %843  ;;  %3820 = vmatprep.subr.bf16.mxu1 %v4684_v1 }
 0x1cb   : > { %861 = vrot.lane.b32.xlu0 %v5813_v44, %s4687_s6  ;;  %v1335_v39 = vsel %vm1289_vm3, %v1270_v37, %v844_v50  ;;  %v1894_v50 = vor.u32 %v1893_v3, %v1889_v23 }
 0x1cc   : > { %930 = vrot.lane.b32.xlu1 %v5820_v48, %s4688_s7  ;;  %v2928_v48 = vshrl.u32 %v5897_v6, 16 }
 0x1cd   : > { %v846_v45 = vpop.permute.xlu0 %845 }
 0x1ce   : > { %v915_v11 = vpop.permute.xlu1 %914  ;;  %v2933_v52 = vor.u32 %v2932_v0, %v2928_v48 }
 0x1cf   : > { %932 = vrot.lane.b32.xlu0 %v5799_v56, %s4688_s7  ;;  %v4566_v56 = vld [vmem:[%s6950_s3 + $0x30] sm:$0xff]   ;;  %v1400_v31 = vsel %vm1354_vm4, %v1335_v39, %v915_v11 }
 0x1d0   : > { %1003 = vrot.lane.b32.xlu1 %v5921_v47, %s4690_s17  ;;  %3821 = vmatpush1.bf16.msra.mxu1 %v4566_v56  ;;  %v5962_v46 = vsel %vm654_vm0, %v2933_v52, %v2937_v8  ;;  %v2944_v56 = vrot.slane %v2942_v41, 1 }
 0x1d1   : > { %v917_v25 = vpop.permute.xlu0 %916  ;;  %3822 = vmatprep.subr.bf16.mxu1 %v4684_v1 }
 0x1d2   : > { %v988_v61 = vpop.permute.xlu1 %987  ;;  %v2945_v39 = vor.u32 %v2944_v56, %v2940_v33 }
 0x1d3   : > { %1005 = vrot.lane.b32.xlu0 %v941_v49, %s4690_s17 }
 0x1d4   : > { %1079 = vrot.lane.b32.xlu1 %v1018_v32, %s4689_s10  ;;  %3823 = vmatpush1.bf16.msra.mxu1 %v4567_v57 }
 0x1d5   : > { %v990_v19 = vpop.permute.xlu0 %989  ;;  %3824 = vmatprep.subr.bf16.mxu1 %v4684_v1  ;;  %v2911_v1 = vsel %vm5770_vm10, %v2747_v18, 0  ;;  %v2759_v18 = vshrl.u32 %v5868_v13, 16 }
 0x1d6   : > { %v1064_v28 = vpop.permute.xlu1 %1063 }
 0x1d7   : > { %v2586_v55 = vpop.f32.mrb[12].mxu0  ;;  %1081 = vrot.lane.b32.xlu0 %v1015_v38, %s4689_s10  ;;  %v1272_v38 = vsel %vm1224_vm2, %v1207_v51, %v5902_v43  ;;  %v2761_v41 = vrot.slane %v2759_v18, 7 }
 0x1d8   : > { %1146 = vrot.lane.b32.xlu1 %v5501_v63, %s4691_s30  ;;  %v2587_v10 = vadd.f32 %v5645_v7, %v2586_v55  ;;  %v2588_v14 = vpop.f32.mrb[13].mxu0  ;;  %v1465_v63 = vsel %vm1419_vm5, %v1400_v31, %v988_v61  ;;  %v1337_v11 = vsel %vm1289_vm3, %v1272_v38, %v846_v45  ;;  %3825 = vmatpush1.bf16.msra.mxu1 %v4568_v21  ;;  %v2959_v55 = vshll.u32 %v5781_v42, 16 }
 0x1d9   : > { %v2589_v4 = vpop.f32.mrb[14].mxu0  ;;  %v1066_v26 = vpop.permute.xlu0 %1065  ;;  %v1530_v48 = vsel %vm1484_vm6, %v1465_v63, %v1064_v28  ;;  %v1402_v43 = vsel %vm1354_vm4, %v1337_v11, %v917_v25  ;;  %v2947_v25 = vshll.u32 %v2911_v1, 16  ;;  %v3188_v31 = vrot.slane %v2911_v1, 1 }
 0x1da   : > { %v1131_v0 = vpop.permute.xlu1 %1130  ;;  %v2590_v58 = vadd.f32 %v5645_v7, %v2589_v4  ;;  %v2591_v5 = vpop.f32.mrb[15].mxu0  ;;  %v1467_v45 = vsel %vm1419_vm5, %v1402_v43, %v990_v19  ;;  %v2695_v61 = vmax.f32 %v2587_v10, 0.0  ;;  %v2956_v19 = vrot.slane %v2954_v27, 1 }
 0x1db   : > { %v1595_v32 = vsel %vm1549_vm7, %v1530_v48, %v1131_v0  ;;  %3119 = vrot.lane.b32.xlu0 %v5962_v46, %s4686_s25  ;;  %v1532_v8 = vsel %vm1484_vm6, %v1467_v45, %v1066_v26  ;;  %v2952_v10 = vshrl.u32 %v5789_v12, 16  ;;  %v2949_v63 = vrot.slane %v2947_v25, 1 }
 0x1dc   : > { %v1858_v23 = vshll.u32 %v1595_v32, 16  ;;  %v2696_v52 = vmax.f32 %v2590_v58, 0.0  ;;  %1148 = vrot.lane.b32.xlu1 %v5971_v15, %s4691_s30  ;;  %v1856_v51 = vshrl.u32 %v1595_v32, 16  ;;  %v2762_v4 = vshll.u32 %v5868_v13, 16 }
 0x1dd   : > { %v1133_v3 = vpop.permute.xlu0 %1132  ;;  %v3189_v11 = vsel %vm3183_vm11, %v3187_v29, %v3188_v31  ;;  %v2957_v48 = vor.u32 %v2956_v19, %v2952_v10  ;;  %v1899_v0 = vsel %vm654_vm0, %v1894_v50, %v1898_v16  ;;  %v2950_v42 = vsel %vm654_vm0, %v2945_v39, %v2949_v63 }
 0x1de   : > { %v1860_v57 = vrot.slane %v1858_v23, 1  ;;  %v2724_v62 = vpack.c.bf16 %v2696_v52, %v2695_v61  ;;  %v572_v34 = vpop.permute.xlu1 %571  ;;  %v1597_v37 = vsel %vm1549_vm7, %v1532_v8, %v1133_v3  ;;  %v2764_v58 = vor.u32 %v2762_v4, %v2761_v41 }
 0x1df   : > { %v1862_v28 = vshll.u32 %v1597_v37, 16  ;;  %3265 = vrot.lane.b32.xlu0 %v5946_v35, %s4687_s6  ;;  %v2961_v5 = vrot.slane %v2959_v55, 1  ;;  %v6027_v52 = vsel %vm5770_vm10, %v2761_v41, 0  ;;  %v1913_v3 = vshll.u32 %v5806_v60, 16 }
 0x1e0   : > { %3232 = vrot.lane.b32.xlu1 %v5974_v30, %s4685_s16  ;;  %v1861_v14 = vor.u32 %v1860_v57, %v1856_v51  ;;  %v2766_v43 = vshrl.u32 %v2724_v62, 16  ;;  %v6020_v50 = vsel %vm5770_vm10, 0, %v2764_v58  ;;  %v2769_v61 = vshll.u32 %v2724_v62, 16 }
 0x1e1   : > { %v1864_v21 = vrot.slane %v1862_v28, 1  ;;  %v574_v38 = vpop.permute.xlu0 %573  ;;  %v2962_v18 = vsel %vm654_vm0, %v2957_v48, %v2961_v5  ;;  %v2966_v45 = vshll.u32 %v6020_v50, 16  ;;  %v1209_v29 = vsel %vm1159_vm1, %v5518_v54, %v572_v34 }
 0x1e2   : > { %v639_v26 = vpop.permute.xlu1 %638  ;;  %v2768_v56 = vrot.slane %v2766_v43, 7  ;;  %v2964_v62 = vshrl.u32 %v6020_v50, 16  ;;  %v2971_v37 = vshll.u32 %v6027_v52, 16  ;;  %v1911_v19 = vshrl.u32 %v5806_v60, 16 }
 0x1e3   : > { %3345 = vrot.lane.b32.xlu0 %v3189_v11, %s4690_s17  ;;  %v1865_v1 = vsel %vm654_vm0, %v1861_v14, %v1864_v21  ;;  %v2968_v25 = vrot.slane %v2966_v45, 1  ;;  %v1274_v51 = vsel %vm1224_vm2, %v1209_v29, %v639_v26  ;;  %v1211_v28 = vsel %vm1159_vm1, %v5571_v36, %v574_v38 }
 0x1e4   : > { %3309 = vrot.lane.b32.xlu1 %v2950_v42, %s4688_s7  ;;  %2649 = vmatmul.mubr.bf16.gmra.mrb[44].mxu0 %v1865_v1  ;;  %v2771_v33 = vor.u32 %v2769_v61, %v2768_v56  ;;  %v1915_v55 = vrot.slane %v1913_v3, 1  ;;  %v2973_v4 = vrot.slane %v2971_v37, 1  ;;  %v1918_v26 = vshll.u32 %v5813_v44, 16 }
 0x1e5   : > { %v641_v27 = vpop.permute.xlu0 %640  ;;  %4366 = vmatprep.mubr.msk.bf16.mxu0 %vm1159_vm1, %v1899_v0  ;;  %v2969_v54 = vor.u32 %v2968_v25, %v2964_v62  ;;  %v6067_v61 = vsel %vm5770_vm10, %v2768_v56, 0  ;;  %v3193_v3 = vrot.slane %v6020_v50, 1  ;;  %v3194_v56 = vrot.slane %v6027_v52, 1 }
 0x1e6   : > { %v848_v13 = vpop.permute.xlu1 %847  ;;  %v6046_v34 = vsel %vm5770_vm10, 0, %v2771_v33  ;;  %v1276_v14 = vsel %vm1224_vm2, %v1211_v28, %v641_v27  ;;  %v1916_v43 = vor.u32 %v1915_v55, %v1911_v19  ;;  %v1920_v33 = vrot.slane %v1918_v26, 1 }
 0x1e7   : > { %3409 = vrot.lane.b32.xlu0 %v2962_v18, %s4691_s30  ;;  %v1339_v41 = vsel %vm1289_vm3, %v1274_v51, %v848_v13  ;;  %v2978_v58 = vshll.u32 %v6046_v34, 16  ;;  %v2974_v13 = vsel %vm654_vm0, %v2969_v54, %v2973_v4  ;;  %v2976_v28 = vshrl.u32 %v6046_v34, 16 }
 0x1e8   : > { %3377 = vrot.lane.b32.xlu1 %v5789_v12, %s4689_s10  ;;  %v1921_v54 = vsel %vm654_vm0, %v1916_v43, %v1920_v33 }
 0x1e9   : > { %v850_v16 = vpop.permute.xlu0 %849  ;;  %v2980_v62 = vrot.slane %v2978_v58, 1 }
 0x1ea   : > { %v919_v32 = vpop.permute.xlu1 %918 }
 0x1eb   : > { %3234 = vrot.lane.b32.xlu0 %v3189_v11, %s4685_s16  ;;  %v1404_v60 = vsel %vm1354_vm4, %v1339_v41, %v919_v32  ;;  %v1341_v11 = vsel %vm1289_vm3, %v1276_v14, %v850_v16  ;;  %v6081_v14 = vsel %vm3183_vm11, %v3193_v3, %v3194_v56 }
 0x1ec   : > { %3121 = vrot.lane.b32.xlu1 %v2950_v42, %s4686_s25 }
 0x1ed   : > { %v921_v23 = vpop.permute.xlu0 %920 }
 0x1ee   : > { %v992_v8 = vpop.permute.xlu1 %991  ;;  %v1406_v5 = vsel %vm1354_vm4, %v1341_v11, %v921_v23 }
 0x1ef   : > { %3311 = vrot.lane.b32.xlu0 %v2962_v18, %s4688_s7  ;;  %v1469_v21 = vsel %vm1419_vm5, %v1404_v60, %v992_v8 }
 0x1f0   : > { %3267 = vrot.lane.b32.xlu1 %v5789_v12, %s4687_s6 }
 0x1f1   : > { %v994_v57 = vpop.permute.xlu0 %993 }
 0x1f2   : > { %v1068_v39 = vpop.permute.xlu1 %1067  ;;  %v1471_v44 = vsel %vm1419_vm5, %v1406_v5, %v994_v57 }
 0x1f3   : > { %v2594_v31 = vpop.f32.mrb[16].mxu0  ;;  %3379 = vrot.lane.b32.xlu0 %v6020_v50, %s4689_s10  ;;  %v1534_v48 = vsel %vm1484_vm6, %v1469_v21, %v1068_v39  ;;  %v2983_v39 = vshll.u32 %v6067_v61, 16  ;;  %v2981_v21 = vor.u32 %v2980_v62, %v2976_v28 }
 0x1f4   : > { %3347 = vrot.lane.b32.xlu1 %v5803_v9, %s4690_s17  ;;  %v2595_v36 = vadd.f32 %v5645_v7, %v2594_v31  ;;  %v2596_v10 = vpop.f32.mrb[17].mxu0 }
 0x1f5   : > { %v2597_v38 = vpop.f32.mrb[18].mxu0  ;;  %v1070_v63 = vpop.permute.xlu0 %1069 }
 0x1f6   : > { %v1135_v0 = vpop.permute.xlu1 %1134  ;;  %v2598_v42 = vadd.f32 %v5645_v7, %v2597_v38  ;;  %v2599_v1 = vpop.f32.mrb[19].mxu0  ;;  %v2697_v16 = vmax.f32 %v2595_v36, 0.0  ;;  %v1536_v23 = vsel %vm1484_vm6, %v1471_v44, %v1070_v63  ;;  %v2985_v38 = vrot.slane %v2983_v39, 1 }
 0x1f7   : > { %v1599_v27 = vsel %vm1549_vm7, %v1534_v48, %v1135_v0  ;;  %3123 = vrot.lane.b32.xlu0 %v2962_v18, %s4686_s25  ;;  %v1935_v44 = vshll.u32 %v5921_v47, 16 }
 0x1f8   : > { %v1880_v32 = vshll.u32 %v1599_v27, 16  ;;  %v2698_v45 = vmax.f32 %v2598_v42, 0.0  ;;  %3411 = vrot.lane.b32.xlu1 %v2974_v13, %s4691_s30  ;;  %v1878_v37 = vshrl.u32 %v1599_v27, 16  ;;  %v2986_v26 = vsel %vm654_vm0, %v2981_v21, %v2985_v38 }
 0x1f9   : > { %v1137_v8 = vpop.permute.xlu0 %1136  ;;  %v3196_v27 = vrot.slane %v6046_v34, 1 }
 0x1fa   : > { %v1882_v25 = vrot.slane %v1880_v32, 1  ;;  %v2725_v18 = vpack.c.bf16 %v2698_v45, %v2697_v16  ;;  %v576_v29 = vpop.permute.xlu1 %575  ;;  %v1601_v57 = vsel %vm1549_vm7, %v1536_v23, %v1137_v8  ;;  %v3197_v32 = vrot.slane %v6067_v61, 1 }
 0x1fb   : > { %v1884_v19 = vshll.u32 %v1601_v57, 16  ;;  %3269 = vrot.lane.b32.xlu0 %v6020_v50, %s4687_s6  ;;  %v1213_v16 = vsel %vm1159_vm1, %v5597_v59, %v576_v29  ;;  %v1933_v61 = vshrl.u32 %v5921_v47, 16  ;;  %v1937_v29 = vrot.slane %v1935_v44, 1 }
 0x1fc   : > { %v2773_v51 = vshrl.u32 %v2725_v18, 16  ;;  %3236 = vrot.lane.b32.xlu1 %v5803_v9, %s4685_s16  ;;  %v1883_v55 = vor.u32 %v1882_v25, %v1878_v37  ;;  %v2776_v36 = vshll.u32 %v2725_v18, 16  ;;  %v6119_v18 = vsel %vm3183_vm11, %v3196_v27, %v3197_v32 }
 0x1fd   : > { %v1886_v41 = vrot.slane %v1884_v19, 1  ;;  %v578_v31 = vpop.permute.xlu0 %577 }
 0x1fe   : > { %v2775_v60 = vrot.slane %v2773_v51, 7  ;;  %v643_v10 = vpop.permute.xlu1 %642  ;;  %v1215_v3 = vsel %vm1159_vm1, %v5653_v24, %v578_v31 }
 0x1ff   : > { %3349 = vrot.lane.b32.xlu0 %v6081_v14, %s4690_s17  ;;  %v1887_v9 = vsel %vm654_vm0, %v1883_v55, %v1886_v41  ;;  %v1278_v8 = vsel %vm1224_vm2, %v1213_v16, %v643_v10  ;;  %v1940_v55 = vshll.u32 %v941_v49, 16 }
 0x200   : > { %v2778_v52 = vor.u32 %v2776_v36, %v2775_v60  ;;  %3313 = vrot.lane.b32.xlu1 %v2974_v13, %s4688_s7  ;;  %2657 = vmatmul.mubr.bf16.gmra.mrb[48].mxu0 %v1887_v9  ;;  %v6102_v58 = vsel %vm5770_vm10, %v2775_v60, 0 }
 0x201   : > { %v645_v63 = vpop.permute.xlu0 %644  ;;  %4367 = vmatprep.mubr.msk.bf16.mxu0 %vm1159_vm1, %v1921_v54  ;;  %v2995_v23 = vshll.u32 %v6102_v58, 16 }
 0x202   : > { %v852_v4 = vpop.permute.xlu1 %851  ;;  %v6094_v11 = vsel %vm5770_vm10, 0, %v2778_v52  ;;  %v1280_v19 = vsel %vm1224_vm2, %v1215_v3, %v645_v63  ;;  %v1938_v63 = vor.u32 %v1937_v29, %v1933_v61 }
 0x203   : > { %3413 = vrot.lane.b32.xlu0 %v2986_v26, %s4691_s30  ;;  %v2990_v42 = vshll.u32 %v6094_v11, 16  ;;  %v2988_v45 = vshrl.u32 %v6094_v11, 16  ;;  %v1343_v25 = vsel %vm1289_vm3, %v1278_v8, %v852_v4  ;;  %v2997_v39 = vrot.slane %v2995_v23, 1 }
 0x204   : > { %3381 = vrot.lane.b32.xlu1 %v6046_v34, %s4689_s10 }
 0x205   : > { %v854_v48 = vpop.permute.xlu0 %853  ;;  %v2992_v43 = vrot.slane %v2990_v42, 1 }
 0x206   : > { %v923_v0 = vpop.permute.xlu1 %922  ;;  %v1345_v47 = vsel %vm1289_vm3, %v1280_v19, %v854_v48 }
 0x207   : > { %3238 = vrot.lane.b32.xlu0 %v6081_v14, %s4685_s16  ;;  %v2993_v59 = vor.u32 %v2992_v43, %v2988_v45  ;;  %v1408_v62 = vsel %vm1354_vm4, %v1343_v25, %v923_v0  ;;  %v1942_v0 = vrot.slane %v1940_v55, 1  ;;  %v3199_v43 = vrot.slane %v6094_v11, 1 }
 0x208   : > { %3125 = vrot.lane.b32.xlu1 %v2974_v13, %s4686_s25 }
 0x209   : > { %v925_v1 = vpop.permute.xlu0 %924  ;;  %v2998_v21 = vsel %vm654_vm0, %v2993_v59, %v2997_v39 }
 0x20a   : > { %v996_v5 = vpop.permute.xlu1 %995  ;;  %v1410_v36 = vsel %vm1354_vm4, %v1345_v47, %v925_v1 }
 0x20b   : > { %3315 = vrot.lane.b32.xlu0 %v2986_v26, %s4688_s7  ;;  %v1473_v51 = vsel %vm1419_vm5, %v1408_v62, %v996_v5  ;;  %v1153_v62 = vshll.u32 %v5971_v15, 16 }
 0x20c   : > { %3271 = vrot.lane.b32.xlu1 %v6046_v34, %s4687_s6 }
 0x20d   : > { %v998_v13 = vpop.permute.xlu0 %997  ;;  %v1155_v55 = vrot.slane %v1153_v62, 1 }
 0x20e   : > { %v1072_v33 = vpop.permute.xlu1 %1071  ;;  %v1475_v49 = vsel %vm1419_vm5, %v1410_v36, %v998_v13  ;;  %v3200_v13 = vrot.slane %v6102_v58, 1 }
 0x20f   : > { %v2602_v57 = vpop.f32.mrb[20].mxu0  ;;  %3383 = vrot.lane.b32.xlu0 %v6094_v11, %s4689_s10  ;;  %v1538_v41 = vsel %vm1484_vm6, %v1473_v51, %v1072_v33 }
 0x210   : > { %3351 = vrot.lane.b32.xlu1 %v6119_v18, %s4690_s17  ;;  %v2603_v24 = vadd.f32 %v5645_v7, %v2602_v57  ;;  %v2604_v37 = vpop.f32.mrb[21].mxu0  ;;  %v6137_v7 = vld [vmem:[%s6949_s2] ss:$0 sm:$0xff]  ;;  %v6155_v25 = vsel %vm3183_vm11, %v3199_v43, %v3200_v13  ;;  %v1943_v57 = vsel %vm654_vm0, %v1938_v63, %v1942_v0 }
 0x211   : > { %v2605_v56 = vpop.f32.mrb[22].mxu0  ;;  %v1074_v28 = vpop.permute.xlu0 %1073 }
 0x212   : > { %v1139_v31 = vpop.permute.xlu1 %1138  ;;  %v2606_v54 = vadd.f32 %v6137_v7, %v2605_v56  ;;  %v2607_v60 = vpop.f32.mrb[23].mxu0  ;;  %v2699_v9 = vmax.f32 %v2603_v24, 0.0  ;;  %v1540_v4 = vsel %vm1484_vm6, %v1475_v49, %v1074_v28 }
 0x213   : > { %v1603_v10 = vsel %vm1549_vm7, %v1538_v41, %v1139_v31  ;;  %3127 = vrot.lane.b32.xlu0 %v2986_v26, %s4686_s25 }
 0x214   : > { %v1902_v52 = vshll.u32 %v1603_v10, 16  ;;  %v2700_v38 = vmax.f32 %v2606_v54, 0.0  ;;  %3415 = vrot.lane.b32.xlu1 %v2998_v21, %s4691_s30  ;;  %v1900_v26 = vshrl.u32 %v1603_v10, 16  ;;  %v1156_v10 = vsel %vm654_vm0, %v5523_v2, %v1155_v55 }
 0x215   : > { %v1141_v48 = vpop.permute.xlu0 %1140  ;;  %v1157_v2 = vshrl.u32 %v5971_v15, 16 }
 0x216   : > { %v1904_v42 = vrot.slane %v1902_v52, 1  ;;  %v2726_v1 = vpack.c.bf16 %v2700_v38, %v2699_v9  ;;  %v580_v5 = vpop.permute.xlu1 %579  ;;  %v1605_v27 = vsel %vm1549_vm7, %v1540_v4, %v1141_v48  ;;  %v1957_v38 = vshll.u32 %v1156_v10, 16 }
 0x217   : > { %v1906_v44 = vshll.u32 %v1605_v27, 16  ;;  %3273 = vrot.lane.b32.xlu0 %v6094_v11, %s4687_s6  ;;  %v1217_v9 = vsel %vm1159_vm1, %v5683_v22, %v580_v5 }
 0x218   : > { %v2780_v16 = vshrl.u32 %v2726_v1, 16  ;;  %3240 = vrot.lane.b32.xlu1 %v6119_v18, %s4685_s16  ;;  %v1905_v32 = vor.u32 %v1904_v42, %v1900_v26  ;;  %v2783_v3 = vshll.u32 %v2726_v1, 16 }
 0x219   : > { %v1908_v45 = vrot.slane %v1906_v44, 1  ;;  %v582_v23 = vpop.permute.xlu0 %581  ;;  %v1955_v44 = vshrl.u32 %v1156_v10, 16 }
 0x21a   : > { %v2782_v8 = vrot.slane %v2780_v16, 7  ;;  %v647_v33 = vpop.permute.xlu1 %646  ;;  %v1219_v4 = vsel %vm1159_vm1, %v5736_v17, %v582_v23  ;;  %v1959_v16 = vrot.slane %v1957_v38, 1 }
 0x21b   : > { %3353 = vrot.lane.b32.xlu0 %v6155_v25, %s4690_s17  ;;  %v1909_v59 = vsel %vm654_vm0, %v1905_v32, %v1908_v45  ;;  %v1282_v63 = vsel %vm1224_vm2, %v1217_v9, %v647_v33 }
 0x21c   : > { %v2785_v61 = vor.u32 %v2783_v3, %v2782_v8  ;;  %v2916_v58 = vsel %vm5770_vm10, %v2782_v8, 0  ;;  %3317 = vrot.lane.b32.xlu1 %v2998_v21, %s4688_s7  ;;  %2665 = vmatmul.mubr.bf16.gmra.mrb[52].mxu0 %v1909_v59  ;;  %v1962_v3 = vshll.u32 %v1157_v2, 16 }
 0x21d   : > { %v649_v29 = vpop.permute.xlu0 %648  ;;  %4368 = vmatprep.mubr.msk.bf16.mxu0 %vm1159_vm1, %v1943_v57  ;;  %v3007_v51 = vshll.u32 %v2916_v58, 16  ;;  %v3203_v52 = vrot.slane %v2916_v58, 1 }
 0x21e   : > { %v856_v24 = vpop.permute.xlu1 %855  ;;  %v6168_v37 = vsel %vm5770_vm10, 0, %v2785_v61  ;;  %v1284_v27 = vsel %vm1224_vm2, %v1219_v4, %v649_v29  ;;  %v1964_v55 = vrot.slane %v1962_v3, 1 }
 0x21f   : > { %v3002_v19 = vshll.u32 %v6168_v37, 16  ;;  %v3000_v28 = vshrl.u32 %v6168_v37, 16  ;;  %v3009_v31 = vrot.slane %v3007_v51, 1  ;;  %v3202_v49 = vrot.slane %v6168_v37, 1 }
 0x220   : > { %3385 = vrot.lane.b32.xlu1 %v6168_v37, %s4689_s10  ;;  %v1347_v0 = vsel %vm1289_vm3, %v1282_v63, %v856_v24 }
 0x221   : > { %v858_v56 = vpop.permute.xlu0 %857  ;;  %v3004_v39 = vrot.slane %v3002_v19, 1  ;;  %v6195_v42 = vsel %vm3183_vm11, %v3202_v49, %v3203_v52  ;;  %v1960_v19 = vor.u32 %v1959_v16, %v1955_v44 }
 0x222   : > { %v927_v47 = vpop.permute.xlu1 %926  ;;  %v1349_v13 = vsel %vm1289_vm3, %v1284_v27, %v858_v56 }
 0x223   : > { %v3005_v41 = vor.u32 %v3004_v39, %v3000_v28  ;;  %v1412_v1 = vsel %vm1354_vm4, %v1347_v0, %v927_v47  ;;  %v1965_v52 = vsel %vm654_vm0, %v1960_v19, %v1964_v55 }
 0x224   : > { %3129 = vrot.lane.b32.xlu1 %v2998_v21, %s4686_s25 }
 0x225   : > { %v929_v54 = vpop.permute.xlu0 %928  ;;  %v6176_v60 = vsel %vm654_vm0, %v3005_v41, %v3009_v31 }
 0x226   : > { %v1000_v36 = vpop.permute.xlu1 %999  ;;  %3417 = vrot.lane.b32.xlu0 %v6176_v60, %s4691_s30  ;;  %v1414_v33 = vsel %vm1354_vm4, %v1349_v13, %v929_v54 }
 0x227   : > { %v1477_v43 = vsel %vm1419_vm5, %v1412_v1, %v1000_v36 }
 0x228   : > { %3275 = vrot.lane.b32.xlu1 %v6168_v37, %s4687_s6 }
 0x229   : > { %v1002_v21 = vpop.permute.xlu0 %1001 }
 0x22a   : > { %v1076_v48 = vpop.permute.xlu1 %1075  ;;  %3242 = vrot.lane.b32.xlu0 %v6155_v25, %s4685_s16  ;;  %v1479_v59 = vsel %vm1419_vm5, %v1414_v33, %v1002_v21 }
 0x22b   : > { %v2610_v22 = vpop.f32.mrb[24].mxu0  ;;  %v1542_v32 = vsel %vm1484_vm6, %v1477_v43, %v1076_v48 }
 0x22c   : > { %3355 = vrot.lane.b32.xlu1 %v6195_v42, %s4690_s17  ;;  %v2611_v5 = vadd.f32 %v6137_v7, %v2610_v22  ;;  %v2612_v17 = vpop.f32.mrb[25].mxu0 }
 0x22d   : > { %v2613_v26 = vpop.f32.mrb[26].mxu0  ;;  %v1078_v15 = vpop.permute.xlu0 %1077 }
 0x22e   : > { %v1143_v45 = vpop.permute.xlu1 %1142  ;;  %v2614_v23 = vadd.f32 %v6137_v7, %v2613_v26  ;;  %v2615_v8 = vpop.f32.mrb[27].mxu0  ;;  %3319 = vrot.lane.b32.xlu0 %v6176_v60, %s4688_s7  ;;  %v2701_v61 = vmax.f32 %v2611_v5, 0.0  ;;  %v1544_v62 = vsel %vm1484_vm6, %v1479_v59, %v1078_v15 }
 0x22f   : > { %v1607_v57 = vsel %vm1549_vm7, %v1542_v32, %v1143_v45 }
 0x230   : > { %v1924_v58 = vshll.u32 %v1607_v57, 16  ;;  %v2702_v29 = vmax.f32 %v2614_v23, 0.0  ;;  %v1922_v47 = vshrl.u32 %v1607_v57, 16 }
 0x231   : > { %v1145_v24 = vpop.permute.xlu0 %1144 }
 0x232   : > { %v1926_v51 = vrot.slane %v1924_v58, 1  ;;  %v2727_v56 = vpack.c.bf16 %v2702_v29, %v2701_v61  ;;  %v584_v28 = vpop.permute.xlu1 %583  ;;  %v1609_v39 = vsel %vm1549_vm7, %v1544_v62, %v1145_v24 }
 0x233   : > { %v1928_v41 = vshll.u32 %v1609_v39, 16  ;;  %v1221_v23 = vsel %vm1159_vm1, %v5764_v20, %v584_v28 }
 0x234   : > { %v2787_v31 = vshrl.u32 %v2727_v56, 16  ;;  %v1927_v54 = vor.u32 %v1926_v51, %v1922_v47  ;;  %v2790_v9 = vshll.u32 %v2727_v56, 16 }
 0x235   : > { %v1930_v36 = vrot.slane %v1928_v41, 1  ;;  %v586_v10 = vpop.permute.xlu0 %585 }
 0x236   : > { %v2789_v49 = vrot.slane %v2787_v31, 7  ;;  %v651_v21 = vpop.permute.xlu1 %650  ;;  %v1223_v57 = vsel %vm1159_vm1, %v5839_v53, %v586_v10 }
 0x237   : > { %v1931_v38 = vsel %vm654_vm0, %v1927_v54, %v1930_v36  ;;  %v1286_v8 = vsel %vm1224_vm2, %v1221_v23, %v651_v21 }
 0x238   : > { %v2792_v63 = vor.u32 %v2790_v9, %v2789_v49  ;;  %v2917_v4 = vsel %vm5770_vm10, %v2789_v49, 0  ;;  %2673 = vmatmul.mubr.bf16.gmra.mrb[56].mxu0 %v1931_v38 }
 0x239   : > { %v653_v48 = vpop.permute.xlu0 %652  ;;  %4369 = vmatprep.mubr.msk.bf16.mxu0 %vm1159_vm1, %v1965_v52  ;;  %v3019_v1 = vshll.u32 %v2917_v4, 16  ;;  %v3206_v45 = vrot.slane %v2917_v4, 1 }
 0x23a   : > { %v860_v2 = vpop.permute.xlu1 %859  ;;  %v6220_v0 = vsel %vm5770_vm10, 0, %v2792_v63  ;;  %v1288_v51 = vsel %vm1224_vm2, %v1223_v57, %v653_v48 }
 0x23b   : > { %3387 = vrot.lane.b32.xlu0 %v6220_v0, %s4689_s10  ;;  %v3014_v22 = vshll.u32 %v6220_v0, 16  ;;  %v3012_v17 = vshrl.u32 %v6220_v0, 16  ;;  %v3021_v15 = vrot.slane %v3019_v1, 1  ;;  %v3205_v32 = vrot.slane %v6220_v0, 1 }
 0x23c   : > { %v1351_v59 = vsel %vm1289_vm3, %v1286_v8, %v860_v2 }
 0x23d   : > { %v862_v5 = vpop.permute.xlu0 %861  ;;  %v3016_v27 = vrot.slane %v3014_v22, 1  ;;  %v6242_v33 = vsel %vm3183_vm11, %v3205_v32, %v3206_v45 }
 0x23e   : > { %v931_v43 = vpop.permute.xlu1 %930  ;;  %v1353_v55 = vsel %vm1289_vm3, %v1288_v51, %v862_v5 }
 0x23f   : > { %3131 = vrot.lane.b32.xlu0 %v6176_v60, %s4686_s25  ;;  %v3017_v26 = vor.u32 %v3016_v27, %v3012_v17  ;;  %v1416_v20 = vsel %vm1354_vm4, %v1351_v59, %v931_v43 }
 0x241   : > { %v933_v44 = vpop.permute.xlu0 %932  ;;  %v6229_v16 = vsel %vm654_vm0, %v3017_v26, %v3021_v15 }
 0x242   : > { %v1004_v13 = vpop.permute.xlu1 %1003  ;;  %3419 = vrot.lane.b32.xlu1 %v6229_v16, %s4691_s30  ;;  %v1418_v41 = vsel %vm1354_vm4, %v1353_v55, %v933_v44 }
 0x243   : > { %3277 = vrot.lane.b32.xlu0 %v6220_v0, %s4687_s6  ;;  %v1481_v62 = vsel %vm1419_vm5, %v1416_v20, %v1004_v13 }
 0x245   : > { %v1006_v60 = vpop.permute.xlu0 %1005 }
 0x246   : > { %v1080_v3 = vpop.permute.xlu1 %1079  ;;  %3244 = vrot.lane.b32.xlu1 %v6195_v42, %s4685_s16  ;;  %v1483_v10 = vsel %vm1419_vm5, %v1418_v41, %v1006_v60 }
 0x247   : > { %v2618_v61 = vpop.f32.mrb[28].mxu0  ;;  %3357 = vrot.lane.b32.xlu0 %v6242_v33, %s4690_s17  ;;  %v1546_v56 = vsel %vm1484_vm6, %v1481_v62, %v1080_v3 }
 0x248   : > { %v2619_v58 = vadd.f32 %v6137_v7, %v2618_v61  ;;  %v2620_v29 = vpop.f32.mrb[29].mxu0 }
 0x249   : > { %v2621_v24 = vpop.f32.mrb[30].mxu0  ;;  %v1082_v19 = vpop.permute.xlu0 %1081 }
 0x24a   : > { %v1147_v53 = vpop.permute.xlu1 %1146  ;;  %v2622_v28 = vadd.f32 %v6137_v7, %v2621_v24  ;;  %3321 = vrot.lane.b32.xlu1 %v6229_v16, %s4688_s7  ;;  %v2623_v39 = vpop.f32.mrb[31].mxu0  ;;  %v2703_v31 = vmax.f32 %v2619_v58, 0.0  ;;  %v1548_v52 = vsel %vm1484_vm6, %v1483_v10, %v1082_v19 }
 0x24b   : > { %v1611_v47 = vsel %vm1549_vm7, %v1546_v56, %v1147_v53 }
 0x24c   : > { %v1946_v54 = vshll.u32 %v1611_v47, 16  ;;  %v2704_v36 = vmax.f32 %v2622_v28, 0.0  ;;  %v1944_v4 = vshrl.u32 %v1611_v47, 16 }
 0x24d   : > { %v3120_v49 = vpop.permute.xlu0 %3119 }
 0x24e   : > { %v1948_v9 = vrot.slane %v1946_v54, 1  ;;  %v2728_v21 = vpack.c.bf16 %v2704_v36, %v2703_v31  ;;  %v1149_v38 = vpop.permute.xlu1 %1148  ;;  %v3442_v22 = vsel %vm1159_vm1, %v5897_v6, %v3120_v49 }
 0x24f   : > { %v1613_v63 = vsel %vm1549_vm7, %v1548_v52, %v1149_v38 }
 0x250   : > { %v2794_v48 = vshrl.u32 %v2728_v21, 16  ;;  %v1950_v2 = vshll.u32 %v1613_v63, 16  ;;  %v1949_v5 = vor.u32 %v1948_v9, %v1944_v4  ;;  %v2797_v27 = vshll.u32 %v2728_v21, 16 }
 0x251   : > { %v3266_v1 = vpop.permute.xlu0 %3265 }
 0x252   : > { %v2796_v17 = vrot.slane %v2794_v48, 7  ;;  %v1952_v43 = vrot.slane %v1950_v2, 1  ;;  %v3233_v26 = vpop.permute.xlu1 %3232 }
 0x253   : > { %v3474_v15 = vsel %vm1224_vm2, %v3442_v22, %v3233_v26 }
 0x254   : > { %v2799_v44 = vor.u32 %v2797_v27, %v2796_v17  ;;  %v2918_v13 = vsel %vm5770_vm10, %v2796_v17, 0  ;;  %v1953_v32 = vsel %vm654_vm0, %v1949_v5, %v1952_v43  ;;  %v3506_v23 = vsel %vm1289_vm3, %v3474_v15, %v3266_v1 }
 0x255   : > { %2681 = vmatmul.mubr.bf16.gmra.mrb[60].mxu0 %v1953_v32  ;;  %v3346_v45 = vpop.permute.xlu0 %3345  ;;  %v3031_v59 = vshll.u32 %v2918_v13, 16 }
 0x256   : > { %v3310_v60 = vpop.permute.xlu1 %3309  ;;  %v6272_v8 = vsel %vm5770_vm10, 0, %v2799_v44 }
 0x257   : > { %v3538_v3 = vsel %vm1354_vm4, %v3506_v23, %v3310_v60  ;;  %3389 = vrot.lane.b32.xlu1 %v6272_v8, %s4689_s10  ;;  %v3026_v57 = vshll.u32 %v6272_v8, 16  ;;  %v3024_v20 = vshrl.u32 %v6272_v8, 16  ;;  %v3033_v51 = vrot.slane %v3031_v59, 1 }
 0x258   : > { %v3570_v29 = vsel %vm1419_vm5, %v3538_v3, %v3346_v45  ;;  %v3208_v55 = vrot.slane %v6272_v8, 1 }
 0x259   : > { %v3410_v61 = vpop.permute.xlu0 %3409  ;;  %v3028_v58 = vrot.slane %v3026_v57, 1 }
 0x25a   : > { %v3378_v62 = vpop.permute.xlu1 %3377 }
 0x25b   : > { %v3602_v24 = vsel %vm1484_vm6, %v3570_v29, %v3378_v62  ;;  %3133 = vrot.lane.b32.xlu1 %v6229_v16, %s4686_s25  ;;  %v3029_v19 = vor.u32 %v3028_v58, %v3024_v20  ;;  %v3209_v16 = vrot.slane %v2918_v13, 1 }
 0x25c   : > { %v3634_v56 = vsel %vm1549_vm7, %v3602_v24, %v3410_v61 }
 0x25d   : > { %3841 = vmatmul.mubr.bf16.vlgmr.msra.gmra.mrb[0].mxu1 %v3634_v56  ;;  %v3235_v53 = vpop.permute.xlu0 %3234  ;;  %v3034_v28 = vsel %vm654_vm0, %v3029_v19, %v3033_v51 }
 0x25e   : > { %v3122_v39 = vpop.permute.xlu1 %3121  ;;  %4381 = vmatprep.mubr.msk.bf16.mxu1 %vm1159_vm1, %v6081_v14  ;;  %3421 = vrot.lane.b32.xlu0 %v3034_v28, %s4691_s30  ;;  %v6297_v14 = vsel %vm3183_vm11, %v3208_v55, %v3209_v16 }
 0x25f   : > { %v3444_v47 = vsel %vm1159_vm1, %v5946_v35, %v3122_v39  ;;  %3279 = vrot.lane.b32.xlu1 %v6272_v8, %s4687_s6 }
 0x260   : > { %v3476_v31 = vsel %vm1224_vm2, %v3444_v47, %v3235_v53 }
 0x261   : > { %v3312_v41 = vpop.permute.xlu0 %3311 }
 0x262   : > { %v3268_v54 = vpop.permute.xlu1 %3267  ;;  %3246 = vrot.lane.b32.xlu0 %v6242_v33, %s4685_s16 }
 0x263   : > { %v3508_v36 = vsel %vm1289_vm3, %v3476_v31, %v3268_v54  ;;  %3359 = vrot.lane.b32.xlu1 %v6297_v14, %s4690_s17  ;;  %v2626_v35 = vpop.f32.mrb[32].mxu0 }
 0x264   : > { %v2627_v10 = vadd.f32 %v6137_v7, %v2626_v35  ;;  %v2628_v49 = vpop.f32.mrb[33].mxu0  ;;  %v3540_v52 = vsel %vm1354_vm4, %v3508_v36, %v3312_v41 }
 0x265   : > { %v2629_v9 = vpop.f32.mrb[34].mxu0  ;;  %v3380_v21 = vpop.permute.xlu0 %3379 }
 0x266   : > { %v3348_v38 = vpop.permute.xlu1 %3347  ;;  %v2630_v63 = vadd.f32 %v6137_v7, %v2629_v9  ;;  %v2631_v4 = vpop.f32.mrb[35].mxu0  ;;  %3323 = vrot.lane.b32.xlu0 %v3034_v28, %s4688_s7  ;;  %v2705_v2 = vmax.f32 %v2627_v10, 0.0 }
 0x267   : > { %v3572_v48 = vsel %vm1419_vm5, %v3540_v52, %v3348_v38 }
 0x268   : > { %v2706_v22 = vmax.f32 %v2630_v63, 0.0  ;;  %v3604_v17 = vsel %vm1484_vm6, %v3572_v48, %v3380_v21 }
 0x269   : > { %v3124_v1 = vpop.permute.xlu0 %3123 }
 0x26a   : > { %v2729_v5 = vpack.c.bf16 %v2706_v22, %v2705_v2  ;;  %v3412_v27 = vpop.permute.xlu1 %3411  ;;  %v3446_v32 = vsel %vm1159_vm1, %v5789_v12, %v3124_v1 }
 0x26b   : > { %v3637_v43 = vsel %vm1549_vm7, %v3604_v17, %v3412_v27 }
 0x26c   : > { %v2801_v26 = vshrl.u32 %v2729_v5, 16  ;;  %3849 = vmatmul.mubr.bf16.gmra.mrb[4].mxu1 %v3637_v43  ;;  %v2804_v13 = vshll.u32 %v2729_v5, 16 }
 0x26d   : > { %4382 = vmatprep.mubr.msk.bf16.mxu1 %vm1159_vm1, %v6119_v18  ;;  %v3270_v15 = vpop.permute.xlu0 %3269 }
 0x26e   : > { %v2803_v44 = vrot.slane %v2801_v26, 7  ;;  %v3237_v45 = vpop.permute.xlu1 %3236 }
 0x26f   : > { %v3478_v23 = vsel %vm1224_vm2, %v3446_v32, %v3237_v45 }
 0x270   : > { %v2806_v60 = vor.u32 %v2804_v13, %v2803_v44  ;;  %v2919_v3 = vsel %vm5770_vm10, %v2803_v44, 0  ;;  %v3510_v59 = vsel %vm1289_vm3, %v3478_v23, %v3270_v15 }
 0x271   : > { %v3350_v57 = vpop.permute.xlu0 %3349  ;;  %v3043_v58 = vshll.u32 %v2919_v3, 16 }
 0x272   : > { %v3314_v61 = vpop.permute.xlu1 %3313  ;;  %v6319_v18 = vsel %vm5770_vm10, 0, %v2806_v60 }
 0x273   : > { %v3542_v20 = vsel %vm1354_vm4, %v3510_v59, %v3314_v61  ;;  %3391 = vrot.lane.b32.xlu0 %v6319_v18, %s4689_s10  ;;  %v3038_v12 = vshll.u32 %v6319_v18, 16  ;;  %v3036_v62 = vshrl.u32 %v6319_v18, 16  ;;  %v3045_v39 = vrot.slane %v3043_v58, 1 }
 0x274   : > { %v3574_v19 = vsel %vm1419_vm5, %v3542_v20, %v3350_v57  ;;  %v3211_v31 = vrot.slane %v6319_v18, 1 }
 0x275   : > { %v3414_v29 = vpop.permute.xlu0 %3413  ;;  %v3040_v24 = vrot.slane %v3038_v12, 1 }
 0x276   : > { %v3382_v51 = vpop.permute.xlu1 %3381 }
 0x277   : > { %v3606_v56 = vsel %vm1484_vm6, %v3574_v19, %v3382_v51  ;;  %3135 = vrot.lane.b32.xlu0 %v3034_v28, %s4686_s25  ;;  %v3041_v53 = vor.u32 %v3040_v24, %v3036_v62  ;;  %v3212_v28 = vrot.slane %v2919_v3, 1 }
 0x278   : > { %v3640_v55 = vsel %vm1549_vm7, %v3606_v56, %v3414_v29 }
 0x279   : > { %3857 = vmatmul.mubr.bf16.gmra.mrb[8].mxu1 %v3640_v55  ;;  %v3239_v47 = vpop.permute.xlu0 %3238  ;;  %v3046_v16 = vsel %vm654_vm0, %v3041_v53, %v3045_v39 }
 0x27a   : > { %v3126_v41 = vpop.permute.xlu1 %3125  ;;  %4383 = vmatprep.mubr.msk.bf16.mxu1 %vm1159_vm1, %v6155_v25  ;;  %3423 = vrot.lane.b32.xlu1 %v3046_v16, %s4691_s30  ;;  %v6343_v25 = vsel %vm3183_vm11, %v3211_v31, %v3212_v28 }
 0x27b   : > { %v3448_v54 = vsel %vm1159_vm1, %v6020_v50, %v3126_v41  ;;  %3281 = vrot.lane.b32.xlu0 %v6319_v18, %s4687_s6 }
 0x27c   : > { %v3480_v35 = vsel %vm1224_vm2, %v3448_v54, %v3239_v47 }
 0x27d   : > { %v3316_v36 = vpop.permute.xlu0 %3315 }
 0x27e   : > { %v3272_v10 = vpop.permute.xlu1 %3271  ;;  %3248 = vrot.lane.b32.xlu1 %v6297_v14, %s4685_s16 }
 0x27f   : > { %v3512_v49 = vsel %vm1289_vm3, %v3480_v35, %v3272_v10  ;;  %v2634_v9 = vpop.f32.mrb[36].mxu0  ;;  %3361 = vrot.lane.b32.xlu0 %v6343_v25, %s4690_s17 }
 0x280   : > { %v2635_v50 = vadd.f32 %v6137_v7, %v2634_v9  ;;  %v2636_v21 = vpop.f32.mrb[37].mxu0  ;;  %v3544_v63 = vsel %vm1354_vm4, %v3512_v49, %v3316_v36 }
 0x281   : > { %v2637_v52 = vpop.f32.mrb[38].mxu0  ;;  %v3384_v38 = vpop.permute.xlu0 %3383 }
 0x282   : > { %v3352_v4 = vpop.permute.xlu1 %3351  ;;  %v2638_v48 = vadd.f32 %v6137_v7, %v2637_v52  ;;  %3325 = vrot.lane.b32.xlu1 %v3046_v16, %s4688_s7  ;;  %v2639_v2 = vpop.f32.mrb[39].mxu0  ;;  %v2707_v1 = vmax.f32 %v2635_v50, 0.0 }
 0x283   : > { %v3576_v22 = vsel %vm1419_vm5, %v3544_v63, %v3352_v4 }
 0x284   : > { %v2708_v5 = vmax.f32 %v2638_v48, 0.0  ;;  %v3608_v27 = vsel %vm1484_vm6, %v3576_v22, %v3384_v38 }
 0x285   : > { %v3128_v44 = vpop.permute.xlu0 %3127 }
 0x286   : > { %v2730_v17 = vpack.c.bf16 %v2708_v5, %v2707_v1  ;;  %v3416_v43 = vpop.permute.xlu1 %3415  ;;  %v3450_v59 = vsel %vm1159_vm1, %v6046_v34, %v3128_v44 }
 0x287   : > { %v3643_v26 = vsel %vm1549_vm7, %v3608_v27, %v3416_v43 }
 0x288   : > { %v2808_v15 = vshrl.u32 %v2730_v17, 16  ;;  %3865 = vmatmul.mubr.bf16.gmra.mrb[12].mxu1 %v3643_v26  ;;  %v2811_v32 = vshll.u32 %v2730_v17, 16 }
 0x289   : > { %4384 = vmatprep.mubr.msk.bf16.mxu1 %vm1159_vm1, %v6195_v42  ;;  %v3274_v3 = vpop.permute.xlu0 %3273 }
 0x28a   : > { %v2810_v13 = vrot.slane %v2808_v15, 7  ;;  %v3241_v45 = vpop.permute.xlu1 %3240 }
 0x28b   : > { %v3482_v12 = vsel %vm1224_vm2, %v3450_v59, %v3241_v45 }
 0x28c   : > { %v2813_v23 = vor.u32 %v2811_v32, %v2810_v13  ;;  %v2920_v60 = vsel %vm5770_vm10, %v2810_v13, 0  ;;  %v3514_v62 = vsel %vm1289_vm3, %v3482_v12, %v3274_v3 }
 0x28d   : > { %v3055_v20 = vshll.u32 %v2920_v60, 16  ;;  %v3354_v51 = vpop.permute.xlu0 %3353  ;;  %v3215_v41 = vrot.slane %v2920_v60, 1 }
 0x28e   : > { %v6361_v57 = vsel %vm5770_vm10, 0, %v2813_v23  ;;  %v3318_v61 = vpop.permute.xlu1 %3317 }
 0x28f   : > { %3393 = vrot.lane.b32.xlu1 %v6361_v57, %s4689_s10  ;;  %v3050_v42 = vshll.u32 %v6361_v57, 16  ;;  %v3048_v58 = vshrl.u32 %v6361_v57, 16  ;;  %v3057_v19 = vrot.slane %v3055_v20, 1  ;;  %v3546_v34 = vsel %vm1354_vm4, %v3514_v62, %v3318_v61 }
 0x290   : > { %v3214_v39 = vrot.slane %v6361_v57, 1  ;;  %v3578_v55 = vsel %vm1419_vm5, %v3546_v34, %v3354_v51 }
 0x291   : > { %v3052_v29 = vrot.slane %v3050_v42, 1 }
 0x292   : > { %v3386_v56 = vpop.permute.xlu1 %3385  ;;  %v6384_v54 = vsel %vm3183_vm11, %v3214_v39, %v3215_v41 }
 0x293   : > { %3137 = vrot.lane.b32.xlu1 %v3046_v16, %s4686_s25  ;;  %v3053_v24 = vor.u32 %v3052_v29, %v3048_v58  ;;  %v3610_v47 = vsel %vm1484_vm6, %v3578_v55, %v3386_v56 }
 0x295   : > { %v3058_v53 = vsel %vm654_vm0, %v3053_v24, %v3057_v19 }
 0x296   : > { %3425 = vrot.lane.b32.xlu0 %v3058_v53, %s4691_s30  ;;  %v3130_v38 = vpop.permute.xlu1 %3129 }
 0x297   : > { %3283 = vrot.lane.b32.xlu1 %v6361_v57, %s4687_s6  ;;  %v3452_v17 = vsel %vm1159_vm1, %v6094_v11, %v3130_v38 }
 0x298   : > { %v3418_v16 = vpop.permute.xlu0 %3417 }
 0x299   : > { %v3646_v31 = vsel %vm1549_vm7, %v3610_v47, %v3418_v16 }
 0x29a   : > { %3250 = vrot.lane.b32.xlu0 %v6343_v25, %s4685_s16  ;;  %3873 = vmatmul.mubr.bf16.gmra.mrb[16].mxu1 %v3646_v31  ;;  %v3276_v1 = vpop.permute.xlu1 %3275 }
 0x29b   : > { %3363 = vrot.lane.b32.xlu1 %v6384_v54, %s4690_s17  ;;  %v2642_v28 = vpop.f32.mrb[40].mxu0  ;;  %4385 = vmatprep.mubr.msk.bf16.mxu1 %vm1159_vm1, %v6242_v33 }
 0x29c   : > { %v2643_v36 = vadd.f32 %v6137_v7, %v2642_v28  ;;  %v2644_v35 = vpop.f32.mrb[41].mxu0  ;;  %v3243_v2 = vpop.permute.xlu0 %3242 }
 0x29d   : > { %v2645_v10 = vpop.f32.mrb[42].mxu0  ;;  %v3484_v26 = vsel %vm1224_vm2, %v3452_v17, %v3243_v2 }
 0x29e   : > { %v2646_v49 = vadd.f32 %v6137_v7, %v2645_v10  ;;  %v2647_v9 = vpop.f32.mrb[43].mxu0  ;;  %3327 = vrot.lane.b32.xlu0 %v3058_v53, %s4688_s7  ;;  %v2709_v50 = vmax.f32 %v2643_v36, 0.0  ;;  %v3516_v32 = vsel %vm1289_vm3, %v3484_v26, %v3276_v1  ;;  %v3356_v60 = vpop.permute.xlu1 %3355 }
 0x2a0   : > { %v2710_v21 = vmax.f32 %v2646_v49, 0.0  ;;  %v3320_v15 = vpop.permute.xlu0 %3319 }
 0x2a1   : > { %v3548_v11 = vsel %vm1354_vm4, %v3516_v32, %v3320_v15 }
 0x2a2   : > { %v2731_v52 = vpack.c.bf16 %v2710_v21, %v2709_v50  ;;  %v3580_v42 = vsel %vm1419_vm5, %v3548_v11, %v3356_v60 }
 0x2a4   : > { %v2815_v63 = vshrl.u32 %v2731_v52, 16  ;;  %v2818_v48 = vshll.u32 %v2731_v52, 16 }
 0x2a6   : > { %v2817_v4 = vrot.slane %v2815_v63, 7 }
 0x2a8   : > { %v2820_v22 = vor.u32 %v2818_v48, %v2817_v4  ;;  %v2921_v33 = vsel %vm5770_vm10, %v2817_v4, 0 }
 0x2a9   : > { %v3067_v43 = vshll.u32 %v2921_v33, 16  ;;  %v3218_v58 = vrot.slane %v2921_v33, 1 }
 0x2aa   : > { %v6397_v5 = vsel %vm5770_vm10, 0, %v2820_v22 }
 0x2ab   : > { %3395 = vrot.lane.b32.xlu0 %v6397_v5, %s4689_s10  ;;  %v3062_v27 = vshll.u32 %v6397_v5, 16  ;;  %v3060_v44 = vshrl.u32 %v6397_v5, 16  ;;  %v3069_v23 = vrot.slane %v3067_v43, 1  ;;  %v3217_v61 = vrot.slane %v6397_v5, 1 }
 0x2ad   : > { %v3064_v13 = vrot.slane %v3062_v27, 1  ;;  %v3388_v3 = vpop.permute.xlu0 %3387  ;;  %v6420_v62 = vsel %vm3183_vm11, %v3217_v61, %v3218_v58 }
 0x2ae   : > { %v3612_v20 = vsel %vm1484_vm6, %v3580_v42, %v3388_v3 }
 0x2af   : > { %3139 = vrot.lane.b32.xlu0 %v3058_v53, %s4686_s25  ;;  %v3065_v45 = vor.u32 %v3064_v13, %v3060_v44 }
 0x2b1   : > { %v3070_v59 = vsel %vm654_vm0, %v3065_v45, %v3069_v23  ;;  %v3132_v16 = vpop.permute.xlu0 %3131 }
 0x2b2   : > { %3427 = vrot.lane.b32.xlu1 %v3070_v59, %s4691_s30  ;;  %v3454_v9 = vsel %vm1159_vm1, %v6168_v37, %v3132_v16 }
 0x2b3   : > { %3285 = vrot.lane.b32.xlu0 %v6397_v5, %s4687_s6 }
 0x2b4   : > { %v3420_v12 = vpop.permute.xlu1 %3419 }
 0x2b5   : > { %v3649_v29 = vsel %vm1549_vm7, %v3612_v20, %v3420_v12  ;;  %v3278_v10 = vpop.permute.xlu0 %3277 }
 0x2b6   : > { %3252 = vrot.lane.b32.xlu1 %v6384_v54, %s4685_s16  ;;  %3881 = vmatmul.mubr.bf16.gmra.mrb[20].mxu1 %v3649_v29 }
 0x2b7   : > { %v2650_v24 = vpop.f32.mrb[44].mxu0  ;;  %3365 = vrot.lane.b32.xlu0 %v6420_v62, %s4690_s17  ;;  %4386 = vmatprep.mubr.msk.bf16.mxu1 %vm1159_vm1, %v6297_v14 }
 0x2b8   : > { %v2651_v19 = vadd.f32 %v6137_v7, %v2650_v24  ;;  %v2652_v34 = vpop.f32.mrb[45].mxu0  ;;  %v3245_v36 = vpop.permute.xlu1 %3244 }
 0x2b9   : > { %v2653_v51 = vpop.f32.mrb[46].mxu0  ;;  %v3486_v52 = vsel %vm1224_vm2, %v3454_v9, %v3245_v36  ;;  %v3358_v33 = vpop.permute.xlu0 %3357 }
 0x2ba   : > { %v2654_v56 = vadd.f32 %v6137_v7, %v2653_v51  ;;  %3329 = vrot.lane.b32.xlu1 %v3070_v59, %s4688_s7  ;;  %v2655_v53 = vpop.f32.mrb[47].mxu0  ;;  %v2711_v39 = vmax.f32 %v2651_v19, 0.0  ;;  %v3518_v48 = vsel %vm1289_vm3, %v3486_v52, %v3278_v10 }
 0x2bc   : > { %v2712_v55 = vmax.f32 %v2654_v56, 0.0  ;;  %v3322_v38 = vpop.permute.xlu1 %3321 }
 0x2bd   : > { %v3550_v37 = vsel %vm1354_vm4, %v3518_v48, %v3322_v38 }
 0x2be   : > { %v2732_v47 = vpack.c.bf16 %v2712_v55, %v2711_v39  ;;  %v3582_v43 = vsel %vm1419_vm5, %v3550_v37, %v3358_v33 }
 0x2c0   : > { %v2822_v41 = vshrl.u32 %v2732_v47, 16  ;;  %v2825_v28 = vshll.u32 %v2732_v47, 16 }
 0x2c2   : > { %v2824_v31 = vrot.slane %v2822_v41, 7 }
 0x2c4   : > { %v2827_v35 = vor.u32 %v2825_v28, %v2824_v31  ;;  %v2922_v14 = vsel %vm5770_vm10, %v2824_v31, 0 }
 0x2c5   : > { %v3079_v21 = vshll.u32 %v2922_v14, 16  ;;  %v3221_v44 = vrot.slane %v2922_v14, 1 }
 0x2c6   : > { %v6433_v49 = vsel %vm5770_vm10, 0, %v2827_v35 }
 0x2c7   : > { %3397 = vrot.lane.b32.xlu1 %v6433_v49, %s4689_s10  ;;  %v3074_v50 = vshll.u32 %v6433_v49, 16  ;;  %v3072_v63 = vshrl.u32 %v6433_v49, 16  ;;  %v3081_v22 = vrot.slane %v3079_v21, 1  ;;  %v3220_v27 = vrot.slane %v6433_v49, 1 }
 0x2c9   : > { %v3076_v4 = vrot.slane %v3074_v50, 1  ;;  %v3390_v1 = vpop.permute.xlu1 %3389  ;;  %v6456_v32 = vsel %vm3183_vm11, %v3220_v27, %v3221_v44 }
 0x2ca   : > { %v3614_v26 = vsel %vm1484_vm6, %v3582_v43, %v3390_v1 }
 0x2cb   : > { %3141 = vrot.lane.b32.xlu1 %v3070_v59, %s4686_s25  ;;  %v3077_v2 = vor.u32 %v3076_v4, %v3072_v63 }
 0x2cd   : > { %v3082_v17 = vsel %vm654_vm0, %v3077_v2, %v3081_v22  ;;  %v3134_v12 = vpop.permute.xlu1 %3133 }
 0x2ce   : > { %3429 = vrot.lane.b32.xlu0 %v3082_v17, %s4691_s30  ;;  %v3456_v53 = vsel %vm1159_vm1, %v6220_v0, %v3134_v12 }
 0x2cf   : > { %3287 = vrot.lane.b32.xlu1 %v6433_v49, %s4687_s6 }
 0x2d0   : > { %v3422_v15 = vpop.permute.xlu0 %3421 }
 0x2d1   : > { %v3652_v13 = vsel %vm1549_vm7, %v3614_v26, %v3422_v15  ;;  %v3280_v51 = vpop.permute.xlu1 %3279 }
 0x2d2   : > { %3254 = vrot.lane.b32.xlu0 %v6420_v62, %s4685_s16  ;;  %3889 = vmatmul.mubr.bf16.gmra.mrb[24].mxu1 %v3652_v13 }
 0x2d3   : > { %3367 = vrot.lane.b32.xlu1 %v6456_v32, %s4690_s17  ;;  %v2658_v45 = vpop.f32.mrb[48].mxu0  ;;  %4387 = vmatprep.mubr.msk.bf16.mxu1 %vm1159_vm1, %v6343_v25 }
 0x2d4   : > { %v2659_v23 = vadd.f32 %v6137_v7, %v2658_v45  ;;  %v2660_v60 = vpop.f32.mrb[49].mxu0  ;;  %v3247_v19 = vpop.permute.xlu0 %3246 }
 0x2d5   : > { %v2661_v11 = vpop.f32.mrb[50].mxu0  ;;  %v3488_v47 = vsel %vm1224_vm2, %v3456_v53, %v3247_v19  ;;  %v3360_v14 = vpop.permute.xlu1 %3359 }
 0x2d6   : > { %v2662_v3 = vadd.f32 %v6137_v7, %v2661_v11  ;;  %v2663_v59 = vpop.f32.mrb[51].mxu0  ;;  %3331 = vrot.lane.b32.xlu0 %v3082_v17, %s4688_s7  ;;  %v2713_v61 = vmax.f32 %v2659_v23, 0.0  ;;  %v3520_v28 = vsel %vm1289_vm3, %v3488_v47, %v3280_v51 }
 0x2d8   : > { %v2714_v42 = vmax.f32 %v2662_v3, 0.0  ;;  %v3324_v16 = vpop.permute.xlu0 %3323 }
 0x2d9   : > { %v3552_v0 = vsel %vm1354_vm4, %v3520_v28, %v3324_v16 }
 0x2da   : > { %v2733_v20 = vpack.c.bf16 %v2714_v42, %v2713_v61  ;;  %v3584_v21 = vsel %vm1419_vm5, %v3552_v0, %v3360_v14 }
 0x2dc   : > { %v2829_v58 = vshrl.u32 %v2733_v20, 16  ;;  %v2832_v24 = vshll.u32 %v2733_v20, 16 }
 0x2de   : > { %v2831_v29 = vrot.slane %v2829_v58, 7 }
 0x2e0   : > { %v2834_v34 = vor.u32 %v2832_v24, %v2831_v29  ;;  %v2923_v25 = vsel %vm5770_vm10, %v2831_v29, 0 }
 0x2e1   : > { %v3091_v55 = vshll.u32 %v2923_v25, 16  ;;  %v3224_v63 = vrot.slane %v2923_v25, 1 }
 0x2e2   : > { %v6469_v56 = vsel %vm5770_vm10, 0, %v2834_v34 }
 0x2e3   : > { %3399 = vrot.lane.b32.xlu0 %v6469_v56, %s4689_s10  ;;  %v3086_v39 = vshll.u32 %v6469_v56, 16  ;;  %v3084_v41 = vshrl.u32 %v6469_v56, 16  ;;  %v3093_v35 = vrot.slane %v3091_v55, 1  ;;  %v3223_v50 = vrot.slane %v6469_v56, 1 }
 0x2e5   : > { %v3088_v31 = vrot.slane %v3086_v39, 1  ;;  %v3392_v10 = vpop.permute.xlu0 %3391  ;;  %v6492_v48 = vsel %vm3183_vm11, %v3223_v50, %v3224_v63 }
 0x2e6   : > { %v3616_v52 = vsel %vm1484_vm6, %v3584_v21, %v3392_v10 }
 0x2e7   : > { %3143 = vrot.lane.b32.xlu0 %v3082_v17, %s4686_s25  ;;  %v3089_v36 = vor.u32 %v3088_v31, %v3084_v41 }
 0x2e9   : > { %v3094_v9 = vsel %vm654_vm0, %v3089_v36, %v3093_v35  ;;  %v3136_v15 = vpop.permute.xlu0 %3135  ;;  %v6537_v36 = vld [vmem:[%s6949_s2] ss:$0 sm:$0xff] }
 0x2ea   : > { %3431 = vrot.lane.b32.xlu1 %v3094_v9, %s4691_s30 }
 0x2eb   : > { %3289 = vrot.lane.b32.xlu0 %v6469_v56, %s4687_s6 }
 0x2ec   : > { %v3424_v38 = vpop.permute.xlu1 %3423 }
 0x2ed   : > { %v3655_v4 = vsel %vm1549_vm7, %v3616_v52, %v3424_v38  ;;  %v3282_v11 = vpop.permute.xlu0 %3281 }
 0x2ee   : > { %3256 = vrot.lane.b32.xlu1 %v6456_v32, %s4685_s16  ;;  %3897 = vmatmul.mubr.bf16.gmra.mrb[28].mxu1 %v3655_v4 }
 0x2ef   : > { %v2666_v2 = vpop.f32.mrb[52].mxu0  ;;  %3369 = vrot.lane.b32.xlu0 %v6492_v48, %s4690_s17  ;;  %4388 = vmatprep.mubr.msk.bf16.mxu1 %vm1159_vm1, %v6384_v54 }
 0x2f0   : > { %v2667_v22 = vadd.f32 %v6137_v7, %v2666_v2  ;;  %v2668_v33 = vpop.f32.mrb[53].mxu0  ;;  %v3249_v23 = vpop.permute.xlu1 %3248 }
 0x2f1   : > { %v2669_v37 = vpop.f32.mrb[54].mxu0  ;;  %v3362_v34 = vpop.permute.xlu0 %3361 }
 0x2f2   : > { %v2670_v1 = vadd.f32 %v6137_v7, %v2669_v37  ;;  %3333 = vrot.lane.b32.xlu1 %v3094_v9, %s4688_s7  ;;  %v2671_v17 = vpop.f32.mrb[55].mxu0  ;;  %v2715_v27 = vmax.f32 %v2667_v22, 0.0  ;;  %v3458_v7 = vsel %vm1159_vm1, %v6272_v8, %v3136_v15  ;;  %v4571_v15 = vld [vmem:[%s4786_s13 + $0xc] sm:$0xf] }
 0x2f3   : > { %v3490_v42 = vsel %vm1224_vm2, %v3458_v7, %v3249_v23 }
 0x2f4   : > { %v2716_v43 = vmax.f32 %v2670_v1, 0.0  ;;  %v3326_v20 = vpop.permute.xlu1 %3325  ;;  %v3522_v29 = vsel %vm1289_vm3, %v3490_v42, %v3282_v11 }
 0x2f5   : > { %v3554_v8 = vsel %vm1354_vm4, %v3522_v29, %v3326_v20 }
 0x2f6   : > { %v2734_v26 = vpack.c.bf16 %v2716_v43, %v2715_v27  ;;  %v3586_v39 = vsel %vm1419_vm5, %v3554_v8, %v3362_v34 }
 0x2f8   : > { %v2836_v44 = vshrl.u32 %v2734_v26, 16  ;;  %v2839_v45 = vshll.u32 %v2734_v26, 16 }
 0x2fa   : > { %v2838_v13 = vrot.slane %v2836_v44, 7  ;;  %v1986_v44 = vshrl.u32 %v4571_v15, 16 }
 0x2fc   : > { %v2841_v60 = vor.u32 %v2839_v45, %v2838_v13  ;;  %v2924_v54 = vsel %vm5770_vm10, %v2838_v13, 0  ;;  %v1989_v13 = vshll.u32 %v4571_v15, 16 }
 0x2fd   : > { %v3103_v61 = vshll.u32 %v2924_v54, 16  ;;  %v3227_v16 = vrot.slane %v2924_v54, 1  ;;  %v4572_v54 = vld [vmem:[%s4786_s13 + $0x10] sm:$0xf] }
 0x2fe   : > { %v6505_v3 = vsel %vm5770_vm10, 0, %v2841_v60  ;;  %v1995_v11 = vshll.u32 %v4572_v54, 16  ;;  %v1999_v7 = vshrl.u32 %v4572_v54, 16 }
 0x2ff   : > { %3401 = vrot.lane.b32.xlu1 %v6505_v3, %s4689_s10  ;;  %v3098_v59 = vshll.u32 %v6505_v3, 16  ;;  %v3096_v12 = vshrl.u32 %v6505_v3, 16  ;;  %v3105_v19 = vrot.slane %v3103_v61, 1  ;;  %v3226_v53 = vrot.slane %v6505_v3, 1 }
 0x300   : > { %v1997_v34 = vrot.slane %v1995_v11, 5  ;;  %v2001_v8 = vrot.slane %v1999_v7, 4 }
 0x301   : > { %v3100_v58 = vrot.slane %v3098_v59, 1  ;;  %v3394_v25 = vpop.permute.xlu1 %3393  ;;  %v6528_v31 = vsel %vm3183_vm11, %v3226_v53, %v3227_v16 }
 0x302   : > { %v3618_v55 = vsel %vm1484_vm6, %v3586_v39, %v3394_v25 }
 0x303   : > { %3145 = vrot.lane.b32.xlu1 %v3094_v9, %s4686_s25  ;;  %v3101_v24 = vor.u32 %v3100_v58, %v3096_v12  ;;  %v1988_v12 = vrot.slane %v1986_v44, 4  ;;  %v1991_v58 = vrot.slane %v1989_v13, 5 }
 0x305   : > { %v3106_v51 = vsel %vm654_vm0, %v3101_v24, %v3105_v19  ;;  %v3138_v38 = vpop.permute.xlu1 %3137 }
 0x306   : > { %3433 = vrot.lane.b32.xlu0 %v3106_v51, %s4691_s30  ;;  %v3460_v17 = vsel %vm1159_vm1, %v6319_v18, %v3138_v38 }
 0x307   : > { %3291 = vrot.lane.b32.xlu1 %v6505_v3, %s4687_s6 }
 0x308   : > { %v3426_v47 = vpop.permute.xlu0 %3425 }
 0x309   : > { %v3658_v41 = vsel %vm1549_vm7, %v3618_v55, %v3426_v47  ;;  %v3284_v37 = vpop.permute.xlu1 %3283  ;;  %v1992_v55 = vor.u32 %v1991_v58, %v1988_v12 }
 0x30a   : > { %3258 = vrot.lane.b32.xlu0 %v6492_v48, %s4685_s16  ;;  %3905 = vmatmul.mubr.bf16.gmra.mrb[32].mxu1 %v3658_v41  ;;  %v2002_v41 = vor.u32 %v2001_v8, %v1997_v34 }
 0x30b   : > { %3371 = vrot.lane.b32.xlu1 %v6528_v31, %s4690_s17  ;;  %v2674_v28 = vpop.f32.mrb[56].mxu0  ;;  %4389 = vmatprep.mubr.msk.bf16.mxu1 %vm1159_vm1, %v6420_v62 }
 0x30c   : > { %v2675_v35 = vadd.f32 %v6537_v36, %v2674_v28  ;;  %v2676_v14 = vpop.f32.mrb[57].mxu0  ;;  %v3251_v2 = vpop.permute.xlu0 %3250  ;;  %v4573_v28 = vld [vmem:[%s4786_s13 + $0x14] sm:$0x1] }
 0x30d   : > { %v2677_v0 = vpop.f32.mrb[58].mxu0  ;;  %v3492_v26 = vsel %vm1224_vm2, %v3460_v17, %v3251_v2  ;;  %v3364_v42 = vpop.permute.xlu1 %3363 }
 0x30e   : > { %v2678_v10 = vadd.f32 %v6537_v36, %v2677_v0  ;;  %v2679_v9 = vpop.f32.mrb[59].mxu0  ;;  %3335 = vrot.lane.b32.xlu0 %v3106_v51, %s4688_s7  ;;  %v2717_v50 = vmax.f32 %v2675_v35, 0.0  ;;  %v3524_v18 = vsel %vm1289_vm3, %v3492_v26, %v3284_v37  ;;  %v2005_v35 = vshll.u32 %v4573_v28, 16  ;;  %v6596_v26 = vld [vmem:[%s6951_s4] ss:$0 sm:$0xff] }
 0x30f   : > { %v1993_v0 = vrot.slane %v1992_v55, 4 }
 0x310   : > { %v2718_v21 = vmax.f32 %v2678_v10, 0.0  ;;  %v3328_v45 = vpop.permute.xlu0 %3327  ;;  %v2007_v38 = vrot.slane %v2005_v35, 5 }
 0x311   : > { %v3556_v20 = vsel %vm1354_vm4, %v3524_v18, %v3328_v45 }
 0x312   : > { %v2735_v52 = vpack.c.bf16 %v2718_v21, %v2717_v50  ;;  %v3588_v25 = vsel %vm1419_vm5, %v3556_v20, %v3364_v42 }
 0x314   : > { %v2843_v62 = vshrl.u32 %v2735_v52, 16  ;;  %v2846_v4 = vshll.u32 %v2735_v52, 16  ;;  %v2003_v52 = vrot.slane %v2002_v41, 4 }
 0x316   : > { %v2845_v63 = vrot.slane %v2843_v62, 7  ;;  %v4574_v62 = vld [vmem:[%s4786_s13 + $0x18] sm:$0xf]  ;;  %v2008_v15 = vsel %vm6582_vm14, %v2003_v52, %v2007_v38 }
 0x318   : > { %v2848_v22 = vor.u32 %v2846_v4, %v2845_v63  ;;  %v2925_v33 = vsel %vm5770_vm10, %v2845_v63, 0  ;;  %v2010_v63 = vshrl.u32 %v4574_v62, 16  ;;  %v2013_v4 = vshll.u32 %v4574_v62, 16 }
 0x319   : > { %v3115_v43 = vshll.u32 %v2925_v33, 16  ;;  %v3230_v39 = vrot.slane %v2925_v33, 1  ;;  %v4575_v33 = vld [vmem:[%s4786_s13 + $0x1c] sm:$0xf] }
 0x31a   : > { %v6546_v1 = vsel %vm5770_vm10, 0, %v2848_v22  ;;  %v1998_v22 = vsel %vm6582_vm14, %v1993_v0, %v1997_v34  ;;  %v2019_v37 = vshll.u32 %v4575_v33, 16  ;;  %v2023_v17 = vshrl.u32 %v4575_v33, 16 }
 0x31b   : > { %3403 = vrot.lane.b32.xlu0 %v6546_v1, %s4689_s10  ;;  %v3110_v27 = vshll.u32 %v6546_v1, 16  ;;  %v3108_v23 = vshrl.u32 %v6546_v1, 16  ;;  %v3117_v61 = vrot.slane %v3115_v43, 1  ;;  %v3229_v19 = vrot.slane %v6546_v1, 1 }
 0x31c   : > { %v2012_v44 = vrot.slane %v2010_v63, 4  ;;  %v2015_v13 = vrot.slane %v2013_v4, 5  ;;  %v3969_v45 = vunpack.c.l.bf16 %v1998_v22  ;;  %v2021_v54 = vrot.slane %v2019_v37, 5  ;;  %v4578_v37 = vld [vmem:[%s4786_s13 + $0x28] sm:$0xf] }
 0x31d   : > { %v3112_v60 = vrot.slane %v3110_v27, 1  ;;  %v3396_v29 = vpop.permute.xlu0 %3395  ;;  %v6574_v16 = vsel %vm3183_vm11, %v3229_v19, %v3230_v39  ;;  %v2025_v11 = vrot.slane %v2023_v17, 4  ;;  %v2043_v17 = vshll.u32 %v4578_v37, 16 }
 0x31e   : > { %v2016_v20 = vor.u32 %v2015_v13, %v2012_v44 }
 0x31f   : > { %3147 = vrot.lane.b32.xlu0 %v3106_v51, %s4686_s25  ;;  %v3113_v59 = vor.u32 %v3112_v60, %v3108_v23  ;;  %v3620_v51 = vsel %vm1484_vm6, %v3588_v25, %v3396_v29  ;;  %v2026_v25 = vor.u32 %v2025_v11, %v2021_v54 }
 0x320   : > { %v2017_v35 = vrot.slane %v2016_v20, 4 }
 0x321   : > { %v6561_v24 = vsel %vm654_vm0, %v3113_v59, %v3117_v61  ;;  %v3140_v23 = vpop.permute.xlu0 %3139  ;;  %v3970_v61 = vunpack.c.l.bf16 %v2008_v15 }
 0x322   : > { %3435 = vrot.lane.b32.xlu1 %v6561_v24, %s4691_s30  ;;  %v2022_v15 = vsel %vm6582_vm14, %v2017_v35, %v2021_v54  ;;  %v4579_v35 = vld [vmem:[%s4786_s13 + $0x2c] sm:$0x1] }
 0x323   : > { %3293 = vrot.lane.b32.xlu0 %v6546_v1, %s4687_s6 }
 0x324   : > { %v3428_v53 = vpop.permute.xlu1 %3427 }
 0x325   : > { %v3661_v47 = vsel %vm1549_vm7, %v3620_v51, %v3428_v53  ;;  %v4576_v51 = vld [vmem:[%s4786_s13 + $0x20] sm:$0x1]  ;;  %v3286_v28 = vpop.permute.xlu0 %3285 }
 0x326   : > { %3260 = vrot.lane.b32.xlu1 %v6528_v31, %s4685_s16  ;;  %3913 = vmatmul.mubr.bf16.gmra.mrb[36].mxu1 %v3661_v47  ;;  %v2029_v53 = vshll.u32 %v4576_v51, 16 }
 0x327   : > { %3373 = vrot.lane.b32.xlu0 %v6574_v16, %s4690_s17  ;;  %4390 = vmatprep.mubr.msk.bf16.mxu1 %vm1159_vm1, %v6456_v32 }
 0x328   : > { %v2682_v14 = vpop.f32.mrb[60].mxu0  ;;  %v3253_v12 = vpop.permute.xlu1 %3252  ;;  %v2031_v22 = vrot.slane %v2029_v53, 5 }
 0x329   : > { %v2683_v10 = vadd.f32 %v6537_v36, %v2682_v14  ;;  %v2684_v9 = vpop.f32.mrb[61].mxu0  ;;  %v4577_v14 = vld [vmem:[%s4786_s13 + $0x24] sm:$0xf]  ;;  %v3366_v13 = vpop.permute.xlu0 %3365 }
 0x32a   : > { %v2685_v21 = vpop.f32.mrb[62].mxu0  ;;  %3337 = vrot.lane.b32.xlu1 %v6561_v24, %s4688_s7  ;;  %v2034_v0 = vshrl.u32 %v4577_v14, 16  ;;  %v2037_v4 = vshll.u32 %v4577_v14, 16  ;;  %v2053_v14 = vshll.u32 %v4579_v35, 16 }
 0x32b   : > { %v2686_v32 = vadd.f32 %v6537_v36, %v2685_v21  ;;  %v2687_v2 = vpop.f32.mrb[63].mxu0  ;;  %v2719_v27 = vmax.f32 %v2683_v10, 0.0  ;;  %v3462_v10 = vsel %vm1159_vm1, %v6361_v57, %v3140_v23 }
 0x32c   : > { %v3494_v38 = vsel %vm1224_vm2, %v3462_v10, %v3253_v12  ;;  %v2027_v2 = vrot.slane %v2026_v25, 4  ;;  %v2036_v44 = vrot.slane %v2034_v0, 4 }
 0x32d   : > { %v2720_v43 = vmax.f32 %v2686_v32, 0.0  ;;  %v3330_v32 = vpop.permute.xlu1 %3329 }
 0x32f   : > { %v2736_v36 = vpack.c.bf16 %v2720_v43, %v2719_v27  ;;  %v2047_v27 = vshrl.u32 %v4578_v37, 16  ;;  %v3526_v43 = vsel %vm1289_vm3, %v3494_v38, %v3286_v28 }
 0x330   : > { %v3842_v60 = vpop.f32.mrb[0].mxu1 }
 0x331   : > { %v2850_v7 = vshrl.u32 %v2736_v36, 16  ;;  %v3843_v18 = vadd.f32 %v6596_v26, %v3842_v60  ;;  %v3844_v59 = vpop.f32.mrb[1].mxu1  ;;  %v2853_v29 = vshll.u32 %v2736_v36, 16  ;;  %v3558_v36 = vsel %vm1354_vm4, %v3526_v43, %v3330_v32 }
 0x332   : > { %v3845_v42 = vpop.f32.mrb[2].mxu1  ;;  %v2039_v60 = vrot.slane %v2037_v4, 5  ;;  %v3971_v59 = vunpack.c.l.bf16 %v2022_v15  ;;  %v3590_v54 = vsel %vm1419_vm5, %v3558_v36, %v3366_v13 }
 0x333   : > { %v2852_v58 = vrot.slane %v2850_v7, 7  ;;  %v4001_v19 = vadd.f32 %v3969_v45, %v3843_v18  ;;  %v3846_v34 = vadd.f32 %v6596_v26, %v3845_v42  ;;  %v3847_v8 = vpop.f32.mrb[3].mxu1  ;;  %v2032_v7 = vsel %vm6582_vm14, %v2027_v2, %v2031_v22  ;;  %v4581_v2 = vld [vmem:[%s4786_s13 + $0x34] sm:$0xf] }
 0x334   : > { %v2049_v42 = vrot.slane %v2047_v27, 4  ;;  %v2040_v8 = vor.u32 %v2039_v60, %v2036_v44  ;;  %v2067_v22 = vshll.u32 %v4581_v2, 16 }
 0x335   : > { %v2855_v39 = vor.u32 %v2853_v29, %v2852_v58  ;;  %v6608_v55 = vsel %vm5770_vm10, %v2852_v58, 0  ;;  %v4033_v47 = vmax.f32 %v4001_v19, 0.0  ;;  %v4002_v41 = vadd.f32 %v3970_v61, %v3846_v34 }
 0x336   : > { %v3305_v63 = vshll.u32 %v6608_v55, 16  ;;  %v2045_v61 = vrot.slane %v2043_v17, 5  ;;  %v3972_v19 = vunpack.c.l.bf16 %v2032_v7  ;;  %v3343_v53 = vrot.slane %v6608_v55, 1 }
 0x337   : > { %v4433_v9 = vpack.c.bf16 %v4033_v47, %v4033_v47  ;;  %v4034_v21 = vmax.f32 %v4002_v41, 0.0  ;;  %v2909_v52 = vsel %vm5770_vm10, 0, %v2855_v39  ;;  %v2069_v36 = vrot.slane %v2067_v22, 5 }
 0x338   : > { %3405 = vrot.lane.b32.xlu1 %v2909_v52, %s4689_s10  ;;  %v3300_v62 = vshll.u32 %v2909_v52, 16  ;;  %v3298_v40 = vshrl.u32 %v2909_v52, 16  ;;  %v3307_v23 = vrot.slane %v3305_v63, 1  ;;  %v3342_v12 = vrot.slane %v2909_v52, 1  ;;  %v4580_v63 = vld [vmem:[%s4786_s13 + $0x30] sm:$0xf] }
 0x339   : > { %4194 = vst.msk [vmem:[%s6618_s14] sm:$0xf] %vm4193_vm15, %v4433_v9  ;;  %v4434_v57 = vpack.c.bf16 %v4034_v21, %v4034_v21  ;;  %v3398_v11 = vpop.permute.xlu1 %3397  ;;  %v2050_v28 = vor.u32 %v2049_v42, %v2045_v61  ;;  %v2041_v9 = vrot.slane %v2040_v8, 4  ;;  %v2058_v4 = vshrl.u32 %v4580_v63, 16 }
 0x33a   : > { %v3302_v33 = vrot.slane %v3300_v62, 1  ;;  %v6646_v0 = vsel %vm3183_vm11, %v3342_v12, %v3343_v53  ;;  %v2055_v62 = vrot.slane %v2053_v14, 5  ;;  %v2061_v32 = vshll.u32 %v4580_v63, 16  ;;  %v4583_v14 = vld [vmem:[%s4786_s13 + $0x3c] sm:$0xf] }
 0x33b   : > { %4195 = vst.msk [vmem:[%s6618_s14 + $0x4] sm:$0xf] %vm4193_vm15, %v4434_v57  ;;  %v2051_v38 = vrot.slane %v2050_v28, 4  ;;  %v2046_v57 = vsel %vm6582_vm14, %v2041_v9, %v2045_v61  ;;  %v2060_v17 = vrot.slane %v2058_v4, 4 }
 0x33c   : > { %3149 = vrot.lane.b32.xlu1 %v6561_v24, %s4686_s25  ;;  %v3303_v45 = vor.u32 %v3302_v33, %v3298_v40  ;;  %v3622_v24 = vsel %vm1484_vm6, %v3590_v54, %v3398_v11  ;;  %v2071_v40 = vshrl.u32 %v4581_v2, 16  ;;  %v3973_v37 = vunpack.c.l.bf16 %v2046_v57  ;;  %v4582_v54 = vld [vmem:[%s4786_s13 + $0x38] sm:$0x1] }
 0x33d   : > { %v2056_v33 = vsel %vm6582_vm14, %v2051_v38, %v2055_v62  ;;  %v2063_v27 = vrot.slane %v2061_v32, 5  ;;  %v3142_v43 = vpop.permute.xlu1 %3141  ;;  %v4584_v38 = vld [vmem:[%s4786_s13 + $0x40] sm:$0xf] }
 0x33e   : > { %v3308_v18 = vsel %vm654_vm0, %v3303_v45, %v3307_v23  ;;  %v3974_v13 = vunpack.c.l.bf16 %v2056_v33  ;;  %v2073_v45 = vrot.slane %v2071_v40, 4  ;;  %v2091_v62 = vshll.u32 %v4584_v38, 16 }
 0x33f   : > { %3437 = vrot.lane.b32.xlu0 %v3308_v18, %s4691_s30  ;;  %v3850_v20 = vpop.f32.mrb[4].mxu1  ;;  %v2095_v63 = vshrl.u32 %v4584_v38, 16 }
 0x340   : > { %v3851_v58 = vadd.f32 %v6596_v26, %v3850_v20  ;;  %3295 = vrot.lane.b32.xlu1 %v2909_v52, %s4687_s6  ;;  %v3852_v29 = vpop.f32.mrb[5].mxu1  ;;  %v3430_v34 = vpop.permute.xlu0 %3429  ;;  %v2074_v42 = vor.u32 %v2073_v45, %v2069_v36  ;;  %v2077_v20 = vshll.u32 %v4582_v54, 16  ;;  %s4240_s6 = sshll.u32 %s6618_s14, 4  ;;  %s6898_s6 = int_to_ptr.vmem [resolvable:$true] %s4240_s6 }
 0x341   : > { %v3853_v25 = vpop.f32.mrb[6].mxu1  ;;  %v3664_v51 = vsel %vm1549_vm7, %v3622_v24, %v3430_v34  ;;  %v3288_v12 = vpop.permute.xlu1 %3287  ;;  %v3464_v24 = vsel %vm1159_vm1, %v6397_v5, %v3142_v43  ;;  %s4620_s15 = scalar_lea.vmem %s6898_s6, 2048  ;;  %p4627_p0 = scmp.lt.s32.totalorder %s6898_s6, %s4625_s26 }
 0x342   : > { %v4003_v39 = vadd.f32 %v3971_v59, %v3851_v58  ;;  %v3854_v47 = vadd.f32 %v6596_v26, %v3853_v25  ;;  %v3855_v41 = vpop.f32.mrb[7].mxu1  ;;  %3921 = vmatmul.mubr.bf16.gmra.mrb[40].mxu1 %v3664_v51  ;;  %v2075_v51 = vrot.slane %v2074_v42, 4  ;;  %v2079_v53 = vrot.slane %v2077_v20, 5  ;;  %p4621_p11 = scmp.ne.s32.totalorder %s6898_s6, %s4620_s15  ;;  %p4628_p1 = scmp.lt.s32.totalorder %s4626_s8, %s4620_s15 }
 0x343   : > { %3262 = vrot.lane.b32.xlu0 %v6574_v16, %s4685_s16  ;;  %4391 = vmatprep.mubr.msk.bf16.mxu1 %vm1159_vm1, %v6492_v48 }
 0x344   : > { %v4035_v55 = vmax.f32 %v4003_v39, 0.0  ;;  %v4004_v10 = vadd.f32 %v3972_v19, %v3854_v47  ;;  %3375 = vrot.lane.b32.xlu1 %v6646_v0, %s4690_s17  ;;  %v3255_v60 = vpop.permute.xlu0 %3254  ;;  %v2080_v35 = vsel %vm6582_vm14, %v2075_v51, %v2079_v53  ;;  %p4622_p12 = pnand %p4621_p11, %p4762_p5  ;;  %p4629_p2 = por %p4628_p1, %p4627_p0 }
 0x345   : > { %v3496_v34 = vsel %vm1224_vm2, %v3464_v24, %v3255_v60  ;;  %v3368_v47 = vpop.permute.xlu1 %3367  ;;  %v3976_v2 = vunpack.c.l.bf16 %v2080_v35 }
 0x346   : > { %v4435_v21 = vpack.c.bf16 %v4035_v55, %v4035_v55  ;;  %v4036_v52 = vmax.f32 %v4004_v10, 0.0  ;;  %v3528_v39 = vsel %vm1289_vm3, %v3496_v34, %v3288_v12  ;;  %v2082_v55 = vshrl.u32 %v4583_v14, 16  ;;  %p4623_p13 = pneg %p4622_p12 }
 0x347   : > { %3339 = vrot.lane.b32.xlu0 %v3308_v18, %s4688_s7  ;;  %v2085_v10 = vshll.u32 %v4583_v14, 16 }
 0x348   : > { %4196 = vst.msk [vmem:[%s6618_s14 + $0x8] sm:$0xf] %vm4193_vm15, %v4435_v21  ;;  %v4436_v48 = vpack.c.bf16 %v4036_v52, %v4036_v52  ;;  %3439 = vrot.lane.b32.xlu1 %v5962_v46, %s4691_s30  ;;  %v3332_v8 = vpop.permute.xlu0 %3331  ;;  %v2084_v33 = vrot.slane %v2082_v55, 4  ;;  %p4630_p3 = pnand %p4629_p2, %p4623_p13 }
 0x349   : > { %v3560_v41 = vsel %vm1354_vm4, %v3528_v39, %v3332_v8 }
 0x34a   : > { %4197 = vst.msk [vmem:[%s6618_s14 + $0xc] sm:$0xf] %vm4193_vm15, %v4436_v48  ;;  %v3592_v21 = vsel %vm1419_vm5, %v3560_v41, %v3368_v47 }
 0x34b   : > { %3407 = vrot.lane.b32.xlu0 %v5897_v6, %s4689_s10  ;;  %v2064_v6 = vor.u32 %v2063_v27, %v2060_v17 }
 0x34c   : > { %v3858_v46 = vpop.f32.mrb[8].mxu1 }
 0x34d   : > { %v3859_v15 = vadd.f32 %v6596_v26, %v3858_v46  ;;  %v3860_v44 = vpop.f32.mrb[9].mxu1  ;;  %v2065_v19 = vrot.slane %v2064_v6, 4  ;;  %v2093_v46 = vrot.slane %v2091_v62, 5 }
 0x34e   : > { %v3861_v23 = vpop.f32.mrb[10].mxu1 }
 0x34f   : > { %v4005_v11 = vadd.f32 %v3973_v37, %v3859_v15  ;;  %v3862_v7 = vadd.f32 %v6596_v26, %v3861_v23  ;;  %v3863_v18 = vpop.f32.mrb[11].mxu1  ;;  %v2070_v5 = vsel %vm6582_vm14, %v2065_v19, %v2069_v36  ;;  %v2087_v37 = vrot.slane %v2085_v10, 5 }
 0x350   : > { %v3975_v9 = vunpack.c.l.bf16 %v2070_v5  ;;  %v2097_v15 = vrot.slane %v2095_v63, 4 }
 0x351   : > { %v4037_v59 = vmax.f32 %v4005_v11, 0.0  ;;  %v4006_v61 = vadd.f32 %v3974_v13, %v3862_v7  ;;  %v2088_v36 = vor.u32 %v2087_v37, %v2084_v33  ;;  %v4585_v11 = vld [vmem:[%s4786_s13 + $0x44] sm:$0x1] }
 0x352   : > { %v2098_v60 = vor.u32 %v2097_v15, %v2093_v46  ;;  %v2101_v7 = vshll.u32 %v4585_v11, 16 }
 0x353   : > { %v4437_v58 = vpack.c.bf16 %v4037_v59, %v4037_v59  ;;  %v4038_v29 = vmax.f32 %v4006_v61, 0.0  ;;  %v2089_v6 = vrot.slane %v2088_v36, 4 }
 0x354   : > { %v2099_v59 = vrot.slane %v2098_v60, 4  ;;  %v2103_v61 = vrot.slane %v2101_v7, 5 }
 0x355   : > { %4198 = vst.msk [vmem:[%s6618_s14 + $0x10] sm:$0xf] %vm4193_vm15, %v4437_v58  ;;  %v4438_v25 = vpack.c.bf16 %v4038_v29, %v4038_v29  ;;  %v3400_v28 = vpop.permute.xlu0 %3399 }
 0x356   : > { %v3624_v4 = vsel %vm1484_vm6, %v3592_v21, %v3400_v28  ;;  %v2104_v20 = vsel %vm6582_vm14, %v2099_v59, %v2103_v61  ;;  %v4586_v21 = vld [vmem:[%s4786_s13 + $0x48] sm:$0xf] }
 0x357   : > { %4199 = vst.msk [vmem:[%s6618_s14 + $0x14] sm:$0xf] %vm4193_vm15, %v4438_v25  ;;  %v3978_v34 = vunpack.c.l.bf16 %v2104_v20  ;;  %v2109_v38 = vshll.u32 %v4586_v21, 16 }
 0x359   : > { %v3144_v42 = vpop.permute.xlu0 %3143  ;;  %v2111_v33 = vrot.slane %v2109_v38, 5 }
 0x35a   : > { %v3466_v8 = vsel %vm1159_vm1, %v6433_v49, %v3144_v42 }
 0x35b   : > { %v3866_v52 = vpop.f32.mrb[12].mxu1 }
 0x35c   : > { %v3867_v32 = vadd.f32 %v6596_v26, %v3866_v52  ;;  %v3868_v48 = vpop.f32.mrb[13].mxu1  ;;  %v3432_v57 = vpop.permute.xlu1 %3431  ;;  %v2106_v52 = vshrl.u32 %v4586_v21, 16 }
 0x35d   : > { %v3869_v22 = vpop.f32.mrb[14].mxu1  ;;  %v3667_v40 = vsel %vm1549_vm7, %v3624_v4, %v3432_v57  ;;  %v3290_v58 = vpop.permute.xlu0 %3289  ;;  %v4587_v4 = vld [vmem:[%s4786_s13 + $0x4c] sm:$0xf] }
 0x35e   : > { %v4007_v17 = vadd.f32 %v3975_v9, %v3867_v32  ;;  %v3870_v27 = vadd.f32 %v6596_v26, %v3869_v22  ;;  %v3871_v43 = vpop.f32.mrb[15].mxu1  ;;  %3929 = vmatmul.mubr.bf16.gmra.mrb[44].mxu1 %v3667_v40  ;;  %v2115_v32 = vshll.u32 %v4587_v4, 16  ;;  %v2119_v48 = vshrl.u32 %v4587_v4, 16 }
 0x35f   : > { %4392 = vmatprep.mubr.msk.bf16.mxu1 %vm1159_vm1, %v6528_v31  ;;  %v2094_v31 = vsel %vm6582_vm14, %v2089_v6, %v2093_v46  ;;  %v2108_v40 = vrot.slane %v2106_v52, 4  ;;  %v4588_v46 = vld [vmem:[%s4786_s13 + $0x50] sm:$0x1] }
 0x360   : > { %v4039_v44 = vmax.f32 %v4007_v17, 0.0  ;;  %v4008_v13 = vadd.f32 %v3976_v2, %v3870_v27  ;;  %v3257_v54 = vpop.permute.xlu1 %3256  ;;  %v3977_v12 = vunpack.c.l.bf16 %v2094_v31  ;;  %v2117_v37 = vrot.slane %v2115_v32, 5  ;;  %v4591_v32 = vld [vmem:[%s4786_s13 + $0x5c] sm:$0x1] }
 0x361   : > { %v3498_v51 = vsel %vm1224_vm2, %v3466_v8, %v3257_v54  ;;  %v3370_v14 = vpop.permute.xlu0 %3369  ;;  %v2121_v17 = vrot.slane %v2119_v48, 4  ;;  %v2112_v27 = vor.u32 %v2111_v33, %v2108_v40  ;;  %v2125_v15 = vshll.u32 %v4588_v46, 16 }
 0x362   : > { %v4439_v45 = vpack.c.bf16 %v4039_v44, %v4039_v44  ;;  %v4040_v23 = vmax.f32 %v4008_v13, 0.0  ;;  %v3530_v35 = vsel %vm1289_vm3, %v3498_v51, %v3290_v58  ;;  %v2149_v48 = vshll.u32 %v4591_v32, 16 }
 0x363   : > { %v2122_v43 = vor.u32 %v2121_v17, %v2117_v37  ;;  %v2113_v44 = vrot.slane %v2112_v27, 4  ;;  %v2127_v36 = vrot.slane %v2125_v15, 5 }
 0x364   : > { %4200 = vst.msk [vmem:[%s6618_s14 + $0x18] sm:$0xf] %vm4193_vm15, %v4439_v45  ;;  %v4440_v18 = vpack.c.bf16 %v4040_v23, %v4040_v23  ;;  %v3334_v47 = vpop.permute.xlu1 %3333 }
 0x365   : > { %v3562_v55 = vsel %vm1354_vm4, %v3530_v35, %v3334_v47  ;;  %v2123_v13 = vrot.slane %v2122_v43, 4  ;;  %v2118_v23 = vsel %vm6582_vm14, %v2113_v44, %v2117_v37  ;;  %v4590_v35 = vld [vmem:[%s4786_s13 + $0x58] sm:$0xf] }
 0x366   : > { %4201 = vst.msk [vmem:[%s6618_s14 + $0x1c] sm:$0xf] %vm4193_vm15, %v4440_v18  ;;  %v3594_v63 = vsel %vm1419_vm5, %v3562_v55, %v3370_v14  ;;  %v3979_v7 = vunpack.c.l.bf16 %v2118_v23  ;;  %v2139_v14 = vshll.u32 %v4590_v35, 16  ;;  %v2143_v55 = vshrl.u32 %v4590_v35, 16 }
 0x367   : > { %v2128_v11 = vsel %vm6582_vm14, %v2123_v13, %v2127_v36 }
 0x368   : > { %v3980_v61 = vunpack.c.l.bf16 %v2128_v11  ;;  %v2141_v38 = vrot.slane %v2139_v14, 5 }
 0x36d   : > { %v3874_v24 = vpop.f32.mrb[16].mxu1 }
 0x36e   : > { %v3875_v29 = vadd.f32 %v6596_v26, %v3874_v24  ;;  %v3876_v19 = vpop.f32.mrb[17].mxu1 }
 0x36f   : > { %v3877_v25 = vpop.f32.mrb[18].mxu1 }
 0x370   : > { %v4009_v53 = vadd.f32 %v3977_v12, %v3875_v29  ;;  %v3878_v39 = vadd.f32 %v6596_v26, %v3877_v25  ;;  %v3879_v5 = vpop.f32.mrb[19].mxu1 }
 0x371   : > { %v3402_v9 = vpop.permute.xlu1 %3401 }
 0x372   : > { %v4041_v41 = vmax.f32 %v4009_v53, 0.0  ;;  %v4010_v28 = vadd.f32 %v3978_v34, %v3878_v39  ;;  %v3626_v57 = vsel %vm1484_vm6, %v3594_v63, %v3402_v9  ;;  %v4589_v39 = vld [vmem:[%s4786_s13 + $0x54] sm:$0xf] }
 0x373   : > { %v2130_v5 = vshrl.u32 %v4589_v39, 16  ;;  %v2133_v47 = vshll.u32 %v4589_v39, 16 }
 0x374   : > { %v4441_v10 = vpack.c.bf16 %v4041_v41, %v4041_v41  ;;  %v4042_v49 = vmax.f32 %v4010_v28, 0.0 }
 0x375   : > { %v3146_v45 = vpop.permute.xlu1 %3145  ;;  %v2132_v21 = vrot.slane %v2130_v5, 4  ;;  %v2135_v52 = vrot.slane %v2133_v47, 5 }
 0x376   : > { %4202 = vst.msk [vmem:[%s6618_s14 + $0x20] sm:$0xf] %vm4193_vm15, %v4441_v10  ;;  %v4442_v62 = vpack.c.bf16 %v4042_v49, %v4042_v49  ;;  %v3468_v42 = vsel %vm1159_vm1, %v6469_v56, %v3146_v45 }
 0x377   : > { %v2136_v63 = vor.u32 %v2135_v52, %v2132_v21 }
 0x378   : > { %4203 = vst.msk [vmem:[%s6618_s14 + $0x24] sm:$0xf] %vm4193_vm15, %v4442_v62  ;;  %v3434_v2 = vpop.permute.xlu0 %3433  ;;  %v2145_v62 = vrot.slane %v2143_v55, 4 }
 0x379   : > { %v3670_v22 = vsel %vm1549_vm7, %v3626_v57, %v3434_v2  ;;  %v2137_v57 = vrot.slane %v2136_v63, 4 }
 0x37a   : > { %3937 = vmatmul.mubr.bf16.gmra.mrb[48].mxu1 %v3670_v22  ;;  %v2146_v4 = vor.u32 %v2145_v62, %v2141_v38  ;;  %v2151_v22 = vrot.slane %v2149_v48, 5 }
 0x37b   : > { %4393 = vmatprep.mubr.msk.bf16.mxu1 %vm1159_vm1, %v6574_v16  ;;  %v3292_v16 = vpop.permute.xlu1 %3291  ;;  %v2142_v37 = vsel %vm6582_vm14, %v2137_v57, %v2141_v38 }
 0x37c   : > { %v3259_v60 = vpop.permute.xlu0 %3258  ;;  %v2147_v2 = vrot.slane %v2146_v4, 4  ;;  %v3981_v27 = vunpack.c.l.bf16 %v2142_v37 }
 0x37d   : > { %v3500_v54 = vsel %vm1224_vm2, %v3468_v42, %v3259_v60 }
 0x37e   : > { %v3532_v34 = vsel %vm1289_vm3, %v3500_v54, %v3292_v16  ;;  %v2152_v17 = vsel %vm6582_vm14, %v2147_v2, %v2151_v22 }
 0x37f   : > { %v3372_v8 = vpop.permute.xlu1 %3371  ;;  %v3982_v44 = vunpack.c.l.bf16 %v2152_v17 }
 0x380   : > { %v3336_v58 = vpop.permute.xlu0 %3335 }
 0x381   : > { %v3564_v25 = vsel %vm1354_vm4, %v3532_v34, %v3336_v58 }
 0x382   : > { %v3596_v28 = vsel %vm1419_vm5, %v3564_v25, %v3372_v8 }
 0x389   : > { %v3882_v18 = vpop.f32.mrb[20].mxu1 }
 0x38a   : > { %v3883_v6 = vadd.f32 %v6596_v26, %v3882_v18  ;;  %v3884_v59 = vpop.f32.mrb[21].mxu1 }
 0x38b   : > { %v3885_v31 = vpop.f32.mrb[22].mxu1 }
 0x38c   : > { %v4011_v20 = vadd.f32 %v3979_v7, %v3883_v6  ;;  %v3886_v12 = vadd.f32 %v6596_v26, %v3885_v31  ;;  %v3887_v24 = vpop.f32.mrb[23].mxu1 }
 0x38d   : > { %v3404_v53 = vpop.permute.xlu0 %3403 }
 0x38e   : > { %v4043_v29 = vmax.f32 %v4011_v20, 0.0  ;;  %v4012_v19 = vadd.f32 %v3980_v61, %v3886_v12  ;;  %v3628_v10 = vsel %vm1484_vm6, %v3596_v28, %v3404_v53 }
 0x390   : > { %v4443_v51 = vpack.c.bf16 %v4043_v29, %v4043_v29  ;;  %v4044_v56 = vmax.f32 %v4012_v19, 0.0  ;;  %v4593_v29 = vld [vmem:[%s4786_s13 + $0x64] sm:$0xf] }
 0x391   : > { %v3148_v33 = vpop.permute.xlu0 %3147  ;;  %v2163_v19 = vshll.u32 %v4593_v29, 16  ;;  %v2167_v34 = vshrl.u32 %v4593_v29, 16 }
 0x392   : > { %4204 = vst.msk [vmem:[%s6618_s14 + $0x28] sm:$0xf] %vm4193_vm15, %v4443_v51  ;;  %v4444_v41 = vpack.c.bf16 %v4044_v56, %v4044_v56  ;;  %v3470_v45 = vsel %vm1159_vm1, %v6505_v3, %v3148_v33  ;;  %v4592_v3 = vld [vmem:[%s4786_s13 + $0x60] sm:$0xf] }
 0x393   : > { %v2154_v20 = vshrl.u32 %v4592_v3, 16  ;;  %v2157_v12 = vshll.u32 %v4592_v3, 16  ;;  %v2165_v47 = vrot.slane %v2163_v19, 5 }
 0x394   : > { %4205 = vst.msk [vmem:[%s6618_s14 + $0x2c] sm:$0xf] %vm4193_vm15, %v4444_v41  ;;  %v3436_v49 = vpop.permute.xlu1 %3435  ;;  %v2169_v41 = vrot.slane %v2167_v34, 4 }
 0x395   : > { %v3673_v9 = vsel %vm1549_vm7, %v3628_v10, %v3436_v49  ;;  %v3294_v13 = vpop.permute.xlu0 %3293  ;;  %v2156_v56 = vrot.slane %v2154_v20, 4  ;;  %v2159_v53 = vrot.slane %v2157_v12, 5  ;;  %v4594_v49 = vld [vmem:[%s4786_s13 + $0x68] sm:$0x1]  ;;  %v4597_v12 = vld [vmem:[%s4786_s13 + $0x74] sm:$0x1] }
 0x396   : > { %3945 = vmatmul.mubr.bf16.gmra.mrb[52].mxu1 %v3673_v9  ;;  %v2170_v10 = vor.u32 %v2169_v41, %v2165_v47  ;;  %v2173_v9 = vshll.u32 %v4594_v49, 16  ;;  %v4598_v49 = vld [vmem:[%s4786_s13 + $0x78] sm:$0xf] }
 0x397   : > { %4394 = vmatprep.mubr.msk.bf16.mxu1 %vm1159_vm1, %v6646_v0  ;;  %v2160_v14 = vor.u32 %v2159_v53, %v2156_v56 }
 0x398   : > { %v3261_v40 = vpop.permute.xlu1 %3260  ;;  %v2171_v4 = vrot.slane %v2170_v10, 4  ;;  %v2175_v32 = vrot.slane %v2173_v9, 5  ;;  %v2202_v9 = vshrl.u32 %v4598_v49, 16 }
 0x399   : > { %v3502_v7 = vsel %vm1224_vm2, %v3470_v45, %v3261_v40  ;;  %v3374_v31 = vpop.permute.xlu0 %3373  ;;  %v2161_v62 = vrot.slane %v2160_v14, 4 }
 0x39a   : > { %v3534_v59 = vsel %vm1289_vm3, %v3502_v7, %v3294_v13  ;;  %v2176_v40 = vsel %vm6582_vm14, %v2171_v4, %v2175_v32  ;;  %v2204_v4 = vrot.slane %v2202_v9, 4 }
 0x39b   : > { %v2166_v57 = vsel %vm6582_vm14, %v2161_v62, %v2165_v47 }
 0x39c   : > { %v3338_v0 = vpop.permute.xlu1 %3337  ;;  %v3983_v33 = vunpack.c.l.bf16 %v2166_v57 }
 0x39d   : > { %v3566_v54 = vsel %vm1354_vm4, %v3534_v59, %v3338_v0 }
 0x39e   : > { %v3598_v8 = vsel %vm1419_vm5, %v3566_v54, %v3374_v31 }
 0x3a5   : > { %v3890_v43 = vpop.f32.mrb[24].mxu1 }
 0x3a6   : > { %v3891_v46 = vadd.f32 %v6596_v26, %v3890_v43  ;;  %v3892_v15 = vpop.f32.mrb[25].mxu1  ;;  %v3984_v43 = vunpack.c.l.bf16 %v2176_v40 }
 0x3a7   : > { %v3893_v36 = vpop.f32.mrb[26].mxu1 }
 0x3a8   : > { %v4013_v23 = vadd.f32 %v3981_v27, %v3891_v46  ;;  %v3894_v60 = vadd.f32 %v6596_v26, %v3893_v36  ;;  %v3895_v11 = vpop.f32.mrb[27].mxu1 }
 0x3aa   : > { %v4045_v18 = vmax.f32 %v4013_v23, 0.0  ;;  %v4014_v16 = vadd.f32 %v3982_v44, %v3894_v60  ;;  %v3406_v6 = vpop.permute.xlu1 %3405  ;;  %v4595_v60 = vld [vmem:[%s4786_s13 + $0x6c] sm:$0xf] }
 0x3ab   : > { %v3630_v25 = vsel %vm1484_vm6, %v3598_v8, %v3406_v6  ;;  %v2178_v11 = vshrl.u32 %v4595_v60, 16  ;;  %v2181_v7 = vshll.u32 %v4595_v60, 16 }
 0x3ac   : > { %v4445_v61 = vpack.c.bf16 %v4045_v18, %v4045_v18  ;;  %v4046_v42 = vmax.f32 %v4014_v16, 0.0  ;;  %v4596_v16 = vld [vmem:[%s4786_s13 + $0x70] sm:$0xf] }
 0x3ad   : > { %v2187_v6 = vshll.u32 %v4596_v16, 16  ;;  %v2191_v59 = vshrl.u32 %v4596_v16, 16  ;;  %v4601_v16 = vld [vmem:[%s4786_s13 + $0x84] sm:$0xf] }
 0x3ae   : > { %4206 = vst.msk [vmem:[%s6618_s14 + $0x30] sm:$0xf] %vm4193_vm15, %v4445_v61  ;;  %v4446_v24 = vpack.c.bf16 %v4046_v42, %v4046_v42  ;;  %v3150_v58 = vpop.permute.xlu1 %3149  ;;  %v2180_v61 = vrot.slane %v2178_v11, 4  ;;  %v2183_v42 = vrot.slane %v2181_v7, 5 }
 0x3af   : > { %v3472_v28 = vsel %vm1159_vm1, %v6546_v1, %v3150_v58  ;;  %v2189_v31 = vrot.slane %v2187_v6, 5  ;;  %v2193_v54 = vrot.slane %v2191_v59, 4  ;;  %v2226_v6 = vshrl.u32 %v4601_v16, 16 }
 0x3b0   : > { %4207 = vst.msk [vmem:[%s6618_s14 + $0x34] sm:$0xf] %vm4193_vm15, %v4446_v24  ;;  %v2184_v3 = vor.u32 %v2183_v42, %v2180_v61  ;;  %v2197_v24 = vshll.u32 %v4597_v12, 16  ;;  %v2229_v59 = vshll.u32 %v4601_v16, 16  ;;  %v4602_v42 = vld [vmem:[%s4786_s13 + $0x88] sm:$0xf] }
 0x3b1   : > { %v3438_v51 = vpop.permute.xlu0 %3437  ;;  %v2194_v20 = vor.u32 %v2193_v54, %v2189_v31  ;;  %v2239_v54 = vshrl.u32 %v4602_v42, 16 }
 0x3b2   : > { %v3296_v39 = vpop.permute.xlu1 %3295  ;;  %v3676_v5 = vsel %vm1549_vm7, %v3630_v25, %v3438_v51  ;;  %v2185_v58 = vrot.slane %v2184_v3, 4  ;;  %v2199_v19 = vrot.slane %v2197_v24, 5  ;;  %v2228_v3 = vrot.slane %v2226_v6, 4 }
 0x3b3   : > { %3953 = vmatmul.mubr.bf16.gmra.mrb[56].mxu1 %v3676_v5  ;;  %v2195_v29 = vrot.slane %v2194_v20, 4  ;;  %v2231_v20 = vrot.slane %v2229_v59, 5  ;;  %v2241_v24 = vrot.slane %v2239_v54, 4 }
 0x3b4   : > { %4395 = vmatprep.mubr.msk.bf16.mxu1 %vm1159_vm1, %v5974_v30  ;;  %v2190_v34 = vsel %vm6582_vm14, %v2185_v58, %v2189_v31  ;;  %v2235_v31 = vshll.u32 %v4602_v42, 16  ;;  %v4607_v42 = vld [vmem:[%s4786_s13 + $0x9c] sm:$0xf] }
 0x3b5   : > { %v3263_v35 = vpop.permute.xlu0 %3262  ;;  %v2200_v8 = vsel %vm6582_vm14, %v2195_v29, %v2199_v19  ;;  %v3985_v25 = vunpack.c.l.bf16 %v2190_v34  ;;  %v2232_v58 = vor.u32 %v2231_v20, %v2228_v3  ;;  %v4603_v19 = vld [vmem:[%s4786_s13 + $0x8c] sm:$0x1]  ;;  %v2277_v54 = vshll.u32 %v4607_v42, 16  ;;  %v4608_v20 = vld [vmem:[%s4786_s13 + $0xa0] sm:$0xf] }
 0x3b6   : > { %v3504_v55 = vsel %vm1224_vm2, %v3472_v28, %v3263_v35  ;;  %v3376_v21 = vpop.permute.xlu1 %3375  ;;  %v2237_v12 = vrot.slane %v2235_v31, 5  ;;  %v2245_v34 = vshll.u32 %v4603_v19, 16  ;;  %v2274_v31 = vshrl.u32 %v4607_v42, 16 }
 0x3b7   : > { %v3536_v52 = vsel %vm1289_vm3, %v3504_v55, %v3296_v39  ;;  %v3986_v39 = vunpack.c.l.bf16 %v2200_v8  ;;  %v2233_v8 = vrot.slane %v2232_v58, 4 }
 0x3b8   : > { %v2242_v29 = vor.u32 %v2241_v24, %v2237_v12  ;;  %v2287_v24 = vshrl.u32 %v4608_v20, 16  ;;  %v2276_v58 = vrot.slane %v2274_v31, 4 }
 0x3b9   : > { %v3340_v38 = vpop.permute.xlu0 %3339 }
 0x3ba   : > { %v3568_v63 = vsel %vm1354_vm4, %v3536_v52, %v3340_v38  ;;  %v3440_v30 = vpop.permute.xlu1 %3439  ;;  %v4599_v38 = vld [vmem:[%s4786_s13 + $0x7c] sm:$0xf] }
 0x3bb   : > { %v3600_v48 = vsel %vm1419_vm5, %v3568_v63, %v3376_v21  ;;  %v2205_v21 = vshll.u32 %v4598_v49, 16  ;;  %v2211_v62 = vshll.u32 %v4599_v38, 16  ;;  %v2215_v63 = vshrl.u32 %v4599_v38, 16  ;;  %v4604_v38 = vld [vmem:[%s4786_s13 + $0x90] sm:$0xf] }
 0x3bd   : > { %v3408_v1 = vpop.permute.xlu0 %3407  ;;  %v2207_v32 = vrot.slane %v2205_v21, 5 }
 0x3be   : > { %v3632_v2 = vsel %vm1484_vm6, %v3600_v48, %v3408_v1  ;;  %v2217_v48 = vrot.slane %v2215_v63, 4  ;;  %v2253_v63 = vshll.u32 %v4604_v38, 16 }
 0x3bf   : > { %v3679_v22 = vsel %vm1549_vm7, %v3632_v2, %v3440_v30  ;;  %v2213_v30 = vrot.slane %v2211_v62, 5  ;;  %v2208_v1 = vor.u32 %v2207_v32, %v2204_v4  ;;  %v4600_v2 = vld [vmem:[%s4786_s13 + $0x80] sm:$0x1]  ;;  %v2250_v62 = vshrl.u32 %v4604_v38, 16  ;;  %v4605_v32 = vld [vmem:[%s4786_s13 + $0x94] sm:$0xf] }
 0x3c0   : > { %3961 = vmatmul.mubr.bf16.gmra.mrb[60].mxu1 %v3679_v22  ;;  %v2221_v22 = vshll.u32 %v4600_v2, 16 }
 0x3c1   : > { %v3898_v37 = vpop.f32.mrb[28].mxu1  ;;  %v2218_v57 = vor.u32 %v2217_v48, %v2213_v30  ;;  %v2209_v40 = vrot.slane %v2208_v1, 4  ;;  %v2263_v48 = vshrl.u32 %v4605_v32, 16  ;;  %v2252_v1 = vrot.slane %v2250_v62, 4 }
 0x3c2   : > { %v3899_v17 = vadd.f32 %v6596_v26, %v3898_v37  ;;  %v3900_v27 = vpop.f32.mrb[29].mxu1  ;;  %v2223_v37 = vrot.slane %v2221_v22, 5 }
 0x3c3   : > { %v3901_v0 = vpop.f32.mrb[30].mxu1  ;;  %v2265_v22 = vrot.slane %v2263_v48, 4 }
 0x3c4   : > { %v4015_v46 = vadd.f32 %v3983_v33, %v3899_v17  ;;  %v3902_v15 = vadd.f32 %v6596_v26, %v3901_v0  ;;  %v3903_v44 = vpop.f32.mrb[31].mxu1  ;;  %v2219_v33 = vrot.slane %v2218_v57, 4  ;;  %v2214_v17 = vsel %vm6582_vm14, %v2209_v40, %v2213_v30 }
 0x3c5   : > { %v2259_v30 = vshll.u32 %v4605_v32, 16  ;;  %v2255_v57 = vrot.slane %v2253_v63, 5 }
 0x3c6   : > { %v4047_v13 = vmax.f32 %v4015_v46, 0.0  ;;  %v4016_v36 = vadd.f32 %v3984_v43, %v3902_v15  ;;  %v2224_v27 = vsel %vm6582_vm14, %v2219_v33, %v2223_v37  ;;  %v3987_v43 = vunpack.c.l.bf16 %v2214_v17  ;;  %v4606_v37 = vld [vmem:[%s4786_s13 + $0x98] sm:$0x1] }
 0x3c7   : > { %v3988_v44 = vunpack.c.l.bf16 %v2224_v27  ;;  %v2261_v2 = vrot.slane %v2259_v30, 5  ;;  %v2256_v40 = vor.u32 %v2255_v57, %v2252_v1  ;;  %v2269_v17 = vshll.u32 %v4606_v37, 16  ;;  %v4612_v57 = vld [vmem:[%s4786_s13 + $0xac] sm:$0xf] }
 0x3c8   : > { %v4447_v45 = vpack.c.bf16 %v4047_v13, %v4047_v13  ;;  %v4048_v23 = vmax.f32 %v4016_v36, 0.0 }
 0x3c9   : > { %v2266_v33 = vor.u32 %v2265_v22, %v2261_v2  ;;  %v2257_v27 = vrot.slane %v2256_v40, 4  ;;  %v2311_v22 = vshrl.u32 %v4612_v57, 16 }
 0x3ca   : > { %4208 = vst.msk [vmem:[%s6618_s14 + $0x38] sm:$0xf] %vm4193_vm15, %v4447_v45  ;;  %v4448_v18 = vpack.c.bf16 %v4048_v23, %v4048_v23 }
 0x3cc   : > { %4209 = vst.msk [vmem:[%s6618_s14 + $0x3c] sm:$0xf] %vm4193_vm15, %v4448_v18 }
 0x3dd   : > { %v3906_v51 = vpop.f32.mrb[32].mxu1 }
 0x3de   : > { %v3907_v56 = vadd.f32 %v6596_v26, %v3906_v51  ;;  %v3908_v53 = vpop.f32.mrb[33].mxu1  ;;  %v2247_v51 = vrot.slane %v2245_v34, 5  ;;  %v2289_v34 = vrot.slane %v2287_v24, 4 }
 0x3df   : > { %v3909_v5 = vpop.f32.mrb[34].mxu1 }
 0x3e0   : > { %v4017_v47 = vadd.f32 %v3985_v25, %v3907_v56  ;;  %v3910_v41 = vadd.f32 %v6596_v26, %v3909_v5  ;;  %v3911_v28 = vpop.f32.mrb[35].mxu1  ;;  %v2243_v25 = vrot.slane %v2242_v29, 4  ;;  %v2238_v56 = vsel %vm6582_vm14, %v2233_v8, %v2237_v12 }
 0x3e1   : > { %v2283_v12 = vshll.u32 %v4608_v20, 16  ;;  %v2279_v29 = vrot.slane %v2277_v54, 5 }
 0x3e2   : > { %v4049_v35 = vmax.f32 %v4017_v47, 0.0  ;;  %v4018_v14 = vadd.f32 %v3986_v39, %v3910_v41  ;;  %v2248_v53 = vsel %vm6582_vm14, %v2243_v25, %v2247_v51  ;;  %v3989_v39 = vunpack.c.l.bf16 %v2238_v56  ;;  %v4609_v51 = vld [vmem:[%s4786_s13 + $0xa4] sm:$0x1] }
 0x3e3   : > { %v3990_v28 = vunpack.c.l.bf16 %v2248_v53  ;;  %v2285_v19 = vrot.slane %v2283_v12, 5  ;;  %v2280_v8 = vor.u32 %v2279_v29, %v2276_v58  ;;  %v2293_v56 = vshll.u32 %v4609_v51, 16  ;;  %v4614_v12 = vld [vmem:[%s4786_s13 + $0xb4] sm:$0xf]  ;;  %v4615_v29 = vld [vmem:[%s4786_s13 + $0xb8] sm:$0xf] }
 0x3e4   : > { %v4449_v55 = vpack.c.bf16 %v4049_v35, %v4049_v35  ;;  %v4050_v10 = vmax.f32 %v4018_v14, 0.0  ;;  %v2322_v24 = vshrl.u32 %v4614_v12, 16  ;;  %v2325_v58 = vshll.u32 %v4614_v12, 16 }
 0x3e5   : > { %v2290_v25 = vor.u32 %v2289_v34, %v2285_v19  ;;  %v2281_v53 = vrot.slane %v2280_v8, 4  ;;  %v2335_v34 = vshrl.u32 %v4615_v29, 16 }
 0x3e6   : > { %4210 = vst.msk [vmem:[%s6618_s14 + $0x40] sm:$0xf] %vm4193_vm15, %v4449_v55  ;;  %v4450_v52 = vpack.c.bf16 %v4050_v10, %v4050_v10  ;;  %v2324_v8 = vrot.slane %v2322_v24, 4 }
 0x3e8   : > { %4211 = vst.msk [vmem:[%s6618_s14 + $0x44] sm:$0xf] %vm4193_vm15, %v4450_v52 }
 0x3f9   : > { %v3914_v0 = vpop.f32.mrb[36].mxu1 }
 0x3fa   : > { %v3915_v46 = vadd.f32 %v6596_v26, %v3914_v0  ;;  %v3916_v15 = vpop.f32.mrb[37].mxu1  ;;  %v2271_v0 = vrot.slane %v2269_v17, 5  ;;  %v2313_v17 = vrot.slane %v2311_v22, 4 }
 0x3fb   : > { %v3917_v13 = vpop.f32.mrb[38].mxu1 }
 0x3fc   : > { %v4019_v36 = vadd.f32 %v3987_v43, %v3915_v46  ;;  %v3918_v45 = vadd.f32 %v6596_v26, %v3917_v13  ;;  %v3919_v23 = vpop.f32.mrb[39].mxu1  ;;  %v2267_v43 = vrot.slane %v2266_v33, 4  ;;  %v2262_v46 = vsel %vm6582_vm14, %v2257_v27, %v2261_v2 }
 0x3fd   : > { %v2307_v2 = vshll.u32 %v4612_v57, 16 }
 0x3fe   : > { %v4051_v60 = vmax.f32 %v4019_v36, 0.0  ;;  %v4020_v11 = vadd.f32 %v3988_v44, %v3918_v45  ;;  %v2272_v15 = vsel %vm6582_vm14, %v2267_v43, %v2271_v0  ;;  %v3991_v44 = vunpack.c.l.bf16 %v2262_v46  ;;  %v4613_v0 = vld [vmem:[%s4786_s13 + $0xb0] sm:$0x1] }
 0x3ff   : > { %v3992_v23 = vunpack.c.l.bf16 %v2272_v15  ;;  %v2309_v37 = vrot.slane %v2307_v2, 5  ;;  %v2317_v46 = vshll.u32 %v4613_v0, 16 }
 0x400   : > { %v4451_v7 = vpack.c.bf16 %v4051_v60, %v4051_v60  ;;  %v4052_v18 = vmax.f32 %v4020_v11, 0.0 }
 0x401   : > { %v2314_v43 = vor.u32 %v2313_v17, %v2309_v37 }
 0x402   : > { %4212 = vst.msk [vmem:[%s6618_s14 + $0x48] sm:$0xf] %vm4193_vm15, %v4451_v7  ;;  %v4452_v61 = vpack.c.bf16 %v4052_v18, %v4052_v18 }
 0x404   : > { %4213 = vst.msk [vmem:[%s6618_s14 + $0x4c] sm:$0xf] %vm4193_vm15, %v4452_v61 }
 0x415   : > { %v3922_v5 = vpop.f32.mrb[40].mxu1 }
 0x416   : > { %v3923_v47 = vadd.f32 %v6596_v26, %v3922_v5  ;;  %v3924_v41 = vpop.f32.mrb[41].mxu1  ;;  %v2295_v5 = vrot.slane %v2293_v56, 5  ;;  %v2337_v56 = vrot.slane %v2335_v34, 4 }
 0x417   : > { %v3925_v35 = vpop.f32.mrb[42].mxu1 }
 0x418   : > { %v4021_v14 = vadd.f32 %v3989_v39, %v3923_v47  ;;  %v3926_v55 = vadd.f32 %v6596_v26, %v3925_v35  ;;  %v3927_v10 = vpop.f32.mrb[43].mxu1  ;;  %v2291_v39 = vrot.slane %v2290_v25, 4  ;;  %v2286_v47 = vsel %vm6582_vm14, %v2281_v53, %v2285_v19 }
 0x419   : > { %v2331_v19 = vshll.u32 %v4615_v29, 16  ;;  %v2327_v25 = vrot.slane %v2325_v58, 5 }
 0x41a   : > { %v4053_v49 = vmax.f32 %v4021_v14, 0.0  ;;  %v4022_v9 = vadd.f32 %v3990_v28, %v3926_v55  ;;  %v2296_v41 = vsel %vm6582_vm14, %v2291_v39, %v2295_v5  ;;  %v3993_v28 = vunpack.c.l.bf16 %v2286_v47  ;;  %v4616_v5 = vld [vmem:[%s4786_s13 + $0xbc] sm:$0x1] }
 0x41b   : > { %v3994_v10 = vunpack.c.l.bf16 %v2296_v41  ;;  %v2333_v51 = vrot.slane %v2331_v19, 5  ;;  %v2328_v53 = vor.u32 %v2327_v25, %v2324_v8  ;;  %v2341_v47 = vshll.u32 %v4616_v5, 16 }
 0x41c   : > { %v4453_v21 = vpack.c.bf16 %v4053_v49, %v4053_v49  ;;  %v4054_v52 = vmax.f32 %v4022_v9, 0.0 }
 0x41d   : > { %v2338_v39 = vor.u32 %v2337_v56, %v2333_v51  ;;  %v2329_v41 = vrot.slane %v2328_v53, 4 }
 0x41e   : > { %4214 = vst.msk [vmem:[%s6618_s14 + $0x50] sm:$0xf] %vm4193_vm15, %v4453_v21  ;;  %v4454_v4 = vpack.c.bf16 %v4054_v52, %v4054_v52  ;;  %v6847_v21 = vld [vmem:[%s6951_s4] ss:$0 sm:$0xff] }
 0x420   : > { %4215 = vst.msk [vmem:[%s6618_s14 + $0x54] sm:$0xf] %vm4193_vm15, %v4454_v4 }
 0x431   : > { %v3930_v13 = vpop.f32.mrb[44].mxu1 }
 0x432   : > { %v3931_v36 = vadd.f32 %v6596_v26, %v3930_v13  ;;  %v3932_v45 = vpop.f32.mrb[45].mxu1  ;;  %v2319_v13 = vrot.slane %v2317_v46, 5 }
 0x433   : > { %v3933_v60 = vpop.f32.mrb[46].mxu1 }
 0x434   : > { %v4023_v11 = vadd.f32 %v3991_v44, %v3931_v36  ;;  %v3934_v7 = vadd.f32 %v6596_v26, %v3933_v60  ;;  %v3935_v18 = vpop.f32.mrb[47].mxu1  ;;  %v2315_v44 = vrot.slane %v2314_v43, 4 }
 0x436   : > { %v4055_v16 = vmax.f32 %v4023_v11, 0.0  ;;  %v4024_v6 = vadd.f32 %v3992_v23, %v3934_v7  ;;  %v2320_v45 = vsel %vm6582_vm14, %v2315_v44, %v2319_v13 }
 0x437   : > { %v3996_v18 = vunpack.c.l.bf16 %v2320_v45 }
 0x438   : > { %v4455_v59 = vpack.c.bf16 %v4055_v16, %v4055_v16  ;;  %v4056_v61 = vmax.f32 %v4024_v6, 0.0 }
 0x43a   : > { %4216 = vst.msk [vmem:[%s6618_s14 + $0x58] sm:$0xf] %vm4193_vm15, %v4455_v59  ;;  %v4456_v3 = vpack.c.bf16 %v4056_v61, %v4056_v61 }
 0x43c   : > { %4217 = vst.msk [vmem:[%s6618_s14 + $0x5c] sm:$0xf] %vm4193_vm15, %v4456_v3 }
 0x44d   : > { %v3938_v35 = vpop.f32.mrb[48].mxu1 }
 0x44e   : > { %v3939_v14 = vadd.f32 %v6596_v26, %v3938_v35  ;;  %v3940_v55 = vpop.f32.mrb[49].mxu1  ;;  %v4611_v26 = vld [vmem:[%s4786_s13 + $0xa8] sm:$0xf] }
 0x44f   : > { %v3941_v49 = vpop.f32.mrb[50].mxu1  ;;  %v2298_v30 = vshrl.u32 %v4611_v26, 16  ;;  %v2301_v48 = vshll.u32 %v4611_v26, 16  ;;  %v2339_v55 = vrot.slane %v2338_v39, 4 }
 0x450   : > { %v4025_v9 = vadd.f32 %v3993_v28, %v3939_v14  ;;  %v3942_v52 = vadd.f32 %v6847_v21, %v3941_v49  ;;  %v3943_v38 = vpop.f32.mrb[51].mxu1  ;;  %v4617_v28 = vld [vmem:[%s4786_s13 + $0xc0] sm:$0xf]  ;;  %v4618_v49 = vld [vmem:[%s4786_s13 + $0xc4] sm:$0xf] }
 0x451   : > { %v2300_v40 = vrot.slane %v2298_v30, 4  ;;  %v2303_v33 = vrot.slane %v2301_v48, 5  ;;  %v2346_v35 = vshrl.u32 %v4617_v28, 16  ;;  %v2349_v14 = vshll.u32 %v4617_v28, 16 }
 0x452   : > { %v4057_v62 = vmax.f32 %v4025_v9, 0.0  ;;  %v4026_v63 = vadd.f32 %v3994_v10, %v3942_v52  ;;  %v2343_v10 = vrot.slane %v2341_v47, 5  ;;  %v2355_v9 = vshll.u32 %v4618_v49, 16 }
 0x453   : > { %v2304_v27 = vor.u32 %v2303_v33, %v2300_v40  ;;  %v2359_v52 = vshrl.u32 %v4618_v49, 16  ;;  %v2334_v38 = vsel %vm6582_vm14, %v2329_v41, %v2333_v51  ;;  %v4619_v33 = vld [vmem:[%s4786_s13 + $0xc8] sm:$0x1]  ;;  %s4465_s13 = sshll.u32 %s4745_s22, 11  ;;  %s6904_s22 = scalar_lea.sflag [#allocation3], %s215_s11 }
 0x454   : > { %v4457_v4 = vpack.c.bf16 %v4057_v62, %v4057_v62  ;;  %v4058_v32 = vmax.f32 %v4026_v63, 0.0  ;;  %v2348_v62 = vrot.slane %v2346_v35, 4  ;;  %v2351_v63 = vrot.slane %v2349_v14, 5  ;;  %s6894_s30 = scalar_lea.hbm %s6952_s5, %s4465_s13 }
 0x455   : > { %v2305_v15 = vrot.slane %v2304_v27, 4  ;;  %v2357_v26 = vrot.slane %v2355_v9, 5  ;;  %v2361_v30 = vrot.slane %v2359_v52, 4 }
 0x456   : > { %4218 = vst.msk [vmem:[%s6618_s14 + $0x60] sm:$0xf] %vm4193_vm15, %v4457_v4  ;;  %v4458_v1 = vpack.c.bf16 %v4058_v32, %v4058_v32  ;;  %v2344_v4 = vsel %vm6582_vm14, %v2339_v55, %v2343_v10  ;;  %v3997_v32 = vunpack.c.l.bf16 %v2334_v38  ;;  %v2352_v22 = vor.u32 %v2351_v63, %v2348_v62 }
 0x457   : > { %v2310_v36 = vsel %vm6582_vm14, %v2305_v15, %v2309_v37  ;;  %v3998_v2 = vunpack.c.l.bf16 %v2344_v4  ;;  %v2365_v37 = vshll.u32 %v4619_v33, 16  ;;  %v2362_v0 = vor.u32 %v2361_v30, %v2357_v26 }
 0x458   : > { %4219 = vst.msk [vmem:[%s6618_s14 + $0x64] sm:$0xf] %vm4193_vm15, %v4458_v1  ;;  %v3995_v23 = vunpack.c.l.bf16 %v2310_v36  ;;  %v2353_v44 = vrot.slane %v2352_v22, 4 }
 0x459   : > { %v2363_v45 = vrot.slane %v2362_v0, 4 }
 0x469   : > { %v3946_v60 = vpop.f32.mrb[52].mxu1 }
 0x46a   : > { %v3947_v11 = vadd.f32 %v6847_v21, %v3946_v60  ;;  %v3948_v7 = vpop.f32.mrb[53].mxu1 }
 0x46b   : > { %v3949_v16 = vpop.f32.mrb[54].mxu1 }
 0x46c   : > { %v4027_v6 = vadd.f32 %v3995_v23, %v3947_v11  ;;  %v3950_v59 = vadd.f32 %v6847_v21, %v3949_v16  ;;  %v3951_v61 = vpop.f32.mrb[55].mxu1  ;;  %v2367_v23 = vrot.slane %v2365_v37, 5  ;;  %v2358_v11 = vsel %vm6582_vm14, %v2353_v44, %v2357_v26 }
 0x46e   : > { %v4059_v42 = vmax.f32 %v4027_v6, 0.0  ;;  %v4028_v31 = vadd.f32 %v3996_v18, %v3950_v59  ;;  %v2368_v7 = vsel %vm6582_vm14, %v2363_v45, %v2367_v23  ;;  %v3999_v18 = vunpack.c.l.bf16 %v2358_v11 }
 0x46f   : > { %v4000_v61 = vunpack.c.l.bf16 %v2368_v7 }
 0x470   : > { %v4459_v54 = vpack.c.bf16 %v4059_v42, %v4059_v42  ;;  %v4060_v3 = vmax.f32 %v4028_v31, 0.0 }
 0x472   : > { %4220 = vst.msk [vmem:[%s6618_s14 + $0x68] sm:$0xf] %vm4193_vm15, %v4459_v54  ;;  %v4460_v20 = vpack.c.bf16 %v4060_v3, %v4060_v3 }
 0x474   : > { %4221 = vst.msk [vmem:[%s6618_s14 + $0x6c] sm:$0xf] %vm4193_vm15, %v4460_v20 }
 0x486   : > { %v3954_v48 = vpop.f32.mrb[56].mxu1 }
 0x487   : > { %v3955_v1 = vadd.f32 %v6847_v21, %v3954_v48  ;;  %v3956_v57 = vpop.f32.mrb[57].mxu1 }
 0x488   : > { %v3957_v40 = vpop.f32.mrb[58].mxu1 }
 0x489   : > { %v4029_v17 = vadd.f32 %v3997_v32, %v3955_v1  ;;  %v3958_v27 = vadd.f32 %v6847_v21, %v3957_v40  ;;  %v3959_v43 = vpop.f32.mrb[59].mxu1 }
 0x48b   : > { %v4061_v46 = vmax.f32 %v4029_v17, 0.0  ;;  %v4030_v15 = vadd.f32 %v3998_v2, %v3958_v27 }
 0x48d   : > { %v4461_v13 = vpack.c.bf16 %v4061_v46, %v4061_v46  ;;  %v4062_v36 = vmax.f32 %v4030_v15, 0.0 }
 0x48f   : > { %4222 = vst.msk [vmem:[%s6618_s14 + $0x70] sm:$0xf] %vm4193_vm15, %v4461_v13  ;;  %v4462_v60 = vpack.c.bf16 %v4062_v36, %v4062_v36 }
 0x491   : > { %4223 = vst.msk [vmem:[%s6618_s14 + $0x74] sm:$0xf] %vm4193_vm15, %v4462_v60 }
 0x493   : > { %v3962_v16 = vpop.f32.mrb[60].mxu1 }
 0x494   : > { %v3963_v6 = vadd.f32 %v6847_v21, %v3962_v16  ;;  %v3964_v59 = vpop.f32.mrb[61].mxu1 }
 0x495   : > { %v3965_v42 = vpop.f32.mrb[62].mxu1 }
 0x496   : > { %v4031_v31 = vadd.f32 %v3999_v18, %v3963_v6  ;;  %v3966_v54 = vadd.f32 %v6847_v21, %v3965_v42  ;;  %v3967_v3 = vpop.f32.mrb[63].mxu1 }
 0x498   : > { %v4063_v20 = vmax.f32 %v4031_v31, 0.0  ;;  %v4032_v12 = vadd.f32 %v4000_v61, %v3966_v54 }
 0x49a   : > { %v4463_v50 = vpack.c.bf16 %v4063_v20, %v4063_v20  ;;  %v4064_v24 = vmax.f32 %v4032_v12, 0.0 }
 0x49c   : > { %4224 = vst.msk [vmem:[%s6618_s14 + $0x78] sm:$0xf] %vm4193_vm15, %v4463_v50  ;;  %v4464_v58 = vpack.c.bf16 %v4064_v24, %v4064_v24 }
 0x49e   : > { %4225 = vst.msk [vmem:[%s6618_s14 + $0x7c] sm:$0xf] %vm4193_vm15, %v4464_v58 }
 0x49f   : > { %4633 = shalt.err (!%p4630_p3)
}
 0x4a0   : > { %s4634_s9 = scalar_lea.hbm %s6894_s30, 2048  ;;  %s4638_s14 = scalar_lea.hbm %s6952_s5, 4096 }
 0x4a1   : > { %p4635_p4 = scmp.ne.s32.totalorder %s6894_s30, %s4634_s9  ;;  %p4639_p9 = scmp.lt.u32.totalorder %s6894_s30, %s6952_s5 }
 0x4a2   : > { %p4640_p10 = scmp.lt.u32.totalorder %s4638_s14, %s4634_s9  ;;  %p4642_p12 = scmp.lt.u32.totalorder %s4634_s9, %s6894_s30 }
 0x4a3   : > { %p4636_p7 = pnand %p4635_p4, %p4762_p5 }
 0x4a4   : > { %p4641_p11 = por %p4640_p10, %p4639_p9 }
 0x4a5   : > { %p4637_p8 = pneg %p4636_p7 }
 0x4a6   : > { %p4643_p13 = por %p4642_p12, %p4641_p11 }
 0x4a8   : > { %p4644_p0 = pnand %p4643_p13, %p4637_p8 }
 0x4aa   : > { %4647 = shalt.err (!%p4644_p0)
}
 0x4ab   : > { %s4693_s13 = smov 4  }
 0x4ac   : > { %4467 = dma.vmem_to_hbm [thread:$0]  (%p4762_p5), %s6898_s6, 2048, %s6894_s30, %s6904_s22, %s4688_s7, %s4688_s7, %s4693_s13  }
 0x4ad PF: > { %p4473_p1 = scmp.ge.s32.totalorder %s4682_s21, 2  ;;  %s4255_s10 = sand.u32 1, %s4670_s18  }
 0x4ae   : > { %s4256_s17 = scalar_lea.sflag [#allocation3], %s4255_s10 }
 0x4af   : > { %p4470_p2 = pnand %p4473_p1, %p4766_p6 }
 0x4b1   : > { %4665 = dma.done.wait (!%p4470_p2), %s4256_s17, 2048  }
 0x4b2   : > { %4667 = vsyncadd (!%p4470_p2), %s4256_s17, 4294965248  ;;  %p15_p3 = scmp.ge.s32.totalorder %s4749_s24, 4   ;;  %s6959_s18 = smov %s4674_s19 }
 0x4b3   : > { %s6960_s19 = smov %s4678_s20  ;;  %s6961_s20 = smov %s4760_s27 }
 0x4b4   : > { %s6962_s21 = smov %s4749_s24  ;;  %17 = sbr.rel (!%p15_p3) target bundleno = 3 (0x3), region = 75 }
 0x4bb   :  { %4261 = vsyncpa [#allocation3], 1 }
 0x4bc   :  { %4263 = vsyncpa [#allocation3 + $0x1], 1 }

</bundles_post_ra>
